<compile_context>
chip_gen: v5e
topology: v5e:2x2
jax: 0.10.0
libtpu: 0.0.40
codegen_flags: <defaults>
</compile_context>

<pallas_src>
import functools
import math

import jax
import jax.numpy as jnp
from jax.experimental import pallas as pl
from jax.experimental.pallas import tpu as pltpu


# ----------------------------------------------------------------------------
# Fused whole-model kernel (one grid step = one (batch, direction) pair)
# ----------------------------------------------------------------------------

def _fused_transformer_kernel(
        enc_in_ref, dec_in_ref,
        # encoder (stacked over layers L)
        e_ln_g_ref, e_ln_b_ref, e_wqkv_ref, e_bqkv_ref, e_wo_ref, e_bo_ref,
        e_w1_ref, e_b1_ref, e_w2_ref, e_b2_ref, e_ng_ref, e_nb_ref,
        # decoder (stacked over layers L)
        d_ln_g_ref, d_ln_b_ref,
        d_sa_wqkv_ref, d_sa_bqkv_ref, d_sa_wo_ref, d_sa_bo_ref,
        d_ca_wq_ref, d_ca_bq_ref, d_ca_wkv_ref, d_ca_bkv_ref,
        d_ca_wo_ref, d_ca_bo_ref,
        d_w1_ref, d_b1_ref, d_w2_ref, d_b2_ref, d_ng_ref, d_nb_ref,
        out_ref, *, n_heads, n_blocks, eps):
    d_model = e_wo_ref.shape[-1]
    d_k = d_model // n_heads

    def layer_norm(x, g, b):
        # a*(x-mean)/(std+eps)+b with UNBIASED std (matches torch.std / reference).
        mean = jnp.mean(x, axis=-1, keepdims=True)
        diff = x - mean
        var = jnp.sum(diff * diff, axis=-1, keepdims=True) * (1.0 / (d_model - 1))
        inv = pl.reciprocal(jnp.sqrt(var) + eps)            # EUP slot, VPU relief
        return g * diff * inv + b

    def mm(x_bf, w_bf, b):
        # bf16 operands, f32 accumulation, f32 bias add.
        y = jax.lax.dot_general(x_bf, w_bf, (((1,), (0,)), ((), ())),
                                preferred_element_type=jnp.float32)
        return y + b

    def mha_core(q, k, v, wo_bf, bo):
        # q is already scaled (1/sqrt(d_k) folded into wq/bq at packing time).
        q_bf = q.astype(jnp.bfloat16)
        k_bf = k.astype(jnp.bfloat16)
        v_bf = v.astype(jnp.bfloat16)
        acc = jnp.zeros((q.shape[0], d_model), jnp.float32)
        # concat(heads) @ Wo == sum_h head_h @ Wo[h*d_k:(h+1)*d_k, :]
        for h in range(n_heads):                            # static unrolled
            sl = slice(h * d_k, (h + 1) * d_k)
            s = jax.lax.dot_general(q_bf[:, sl], k_bf[:, sl],
                                    (((1,), (1,)), ((), ())),
                                    preferred_element_type=jnp.float32)   # (Nq,Nk)
            m = jnp.max(s, axis=-1, keepdims=True)
            e = jnp.exp(s - m)                                            # f32 softmax
            p = e * pl.reciprocal(jnp.sum(e, axis=-1, keepdims=True), approx=True)
            ctx = jax.lax.dot_general(p.astype(jnp.bfloat16), v_bf[:, sl],
                                      (((1,), (0,)), ((), ())),
                                      preferred_element_type=jnp.float32)  # (Nq,d_k)
            acc = acc + jax.lax.dot_general(ctx.astype(jnp.bfloat16), wo_bf[sl, :],
                                            (((1,), (0,)), ((), ())),
                                            preferred_element_type=jnp.float32)
        return acc + bo

    def self_attn(xn, wqkv_bf, bqkv, wo_bf, bo):
        qkv = mm(xn.astype(jnp.bfloat16), wqkv_bf, bqkv)    # one fused (N,3D) matmul
        q = qkv[:, :d_model]
        k = qkv[:, d_model:2 * d_model]
        v = qkv[:, 2 * d_model:]
        return mha_core(q, k, v, wo_bf, bo)

    def ffn(xn, w1_bf, b1, w2_bf, b2):
        h = mm(xn.astype(jnp.bfloat16), w1_bf, b1)
        h = jnp.maximum(h, 0.0)
        return mm(h.astype(jnp.bfloat16), w2_bf, b2)

    # -------------------- encoder: memory = Enc(enc_in) --------------------
    x = enc_in_ref[0].astype(jnp.float32)                   # (N, D)
    for l in range(n_blocks):                               # static layer loop
        ln_g = e_ln_g_ref[l]
        ln_b = e_ln_b_ref[l]
        xn = layer_norm(x, ln_g[0], ln_b[0])
        x = x + self_attn(xn, e_wqkv_ref[l], e_bqkv_ref[l], e_wo_ref[l], e_bo_ref[l])
        xn = layer_norm(x, ln_g[1], ln_b[1])
        x = x + ffn(xn, e_w1_ref[l], e_b1_ref[l], e_w2_ref[l], e_b2_ref[l])
    memory = layer_norm(x, e_ng_ref[...], e_nb_ref[...])
    mem_bf = memory.astype(jnp.bfloat16)

    # -------------------- decoder: out = Dec(dec_in, memory) ---------------
    y = dec_in_ref[0].astype(jnp.float32)
    for l in range(n_blocks):
        ln_g = d_ln_g_ref[l]
        ln_b = d_ln_b_ref[l]
        # self-attention sublayer (tgt_mask=None in the reference forward)
        yn = layer_norm(y, ln_g[0], ln_b[0])
        y = y + self_attn(yn, d_sa_wqkv_ref[l], d_sa_bqkv_ref[l],
                          d_sa_wo_ref[l], d_sa_bo_ref[l])
        # cross-attention sublayer: q from normalized y, k/v from RAW memory
        yn = layer_norm(y, ln_g[1], ln_b[1])
        q = mm(yn.astype(jnp.bfloat16), d_ca_wq_ref[l], d_ca_bq_ref[l])
        kv = mm(mem_bf, d_ca_wkv_ref[l], d_ca_bkv_ref[l])   # fused (N,2D) K/V
        y = y + mha_core(q, kv[:, :d_model], kv[:, d_model:],
                         d_ca_wo_ref[l], d_ca_bo_ref[l])
        # feed-forward sublayer
        yn = layer_norm(y, ln_g[2], ln_b[2])
        y = y + ffn(yn, d_w1_ref[l], d_b1_ref[l], d_w2_ref[l], d_b2_ref[l])
    out_ref[0] = layer_norm(y, d_ng_ref[...], d_nb_ref[...])


# ----------------------------------------------------------------------------
# pallas_call wrapper
# ----------------------------------------------------------------------------

_WEIGHT_KEYS = (
    'e_ln_g', 'e_ln_b', 'e_wqkv', 'e_bqkv', 'e_wo', 'e_bo',
    'e_w1', 'e_b1', 'e_w2', 'e_b2', 'e_ng', 'e_nb',
    'd_ln_g', 'd_ln_b',
    'd_sa_wqkv', 'd_sa_bqkv', 'd_sa_wo', 'd_sa_bo',
    'd_ca_wq', 'd_ca_bq', 'd_ca_wkv', 'd_ca_bkv', 'd_ca_wo', 'd_ca_bo',
    'd_w1', 'd_b1', 'd_w2', 'd_b2', 'd_ng', 'd_nb',
)


def _full_spec(shape):
    nd = len(shape)
    return pl.BlockSpec(tuple(shape), lambda b, _nd=nd: (0,) * _nd)


def dcp_transformer_fused(params, enc_in, dec_in, *, n_heads, n_blocks, eps=1e-6):
    """enc_in/dec_in: (2B, N, D). Returns (2B, N, D): [:B]=tgt_emb, [B:]=src_emb."""
    TB, N, D = enc_in.shape
    F = params['e_w1'].shape[-1]
    weights = [params[k] for k in _WEIGHT_KEYS]

    batch_spec = pl.BlockSpec((1, N, D), lambda b: (b, 0, 0))
    in_specs = [batch_spec, batch_spec] + [_full_spec(w.shape) for w in weights]

    # Rough, advisory cost estimate for the fused kernel.
    L = n_blocks
    flops = TB * (L * (8 * N * D * D + 4 * N * N * D + 4 * N * D * F)       # encoder
                  + L * (16 * N * D * D + 8 * N * N * D + 4 * N * D * F))   # decoder
    trans = TB * (3 * L * n_heads * N * N)
    byts = int(sum(int(w.size) * w.dtype.itemsize for w in weights)
               + 4 * 3 * TB * N * D)

    return pl.pallas_call(
        functools.partial(_fused_transformer_kernel, n_heads=n_heads,
                          n_blocks=n_blocks, eps=eps),
        out_shape=jax.ShapeDtypeStruct((TB, N, D), jnp.float32),
        grid=(TB,),
        in_specs=in_specs,
        out_specs=batch_spec,
        compiler_params=pltpu.CompilerParams(dimension_semantics=("parallel",)),
        cost_estimate=pl.CostEstimate(flops=int(flops), transcendentals=int(trans),
                                      bytes_accessed=byts),
    )(enc_in, dec_in, *weights)


def transformer_forward(params, src, tgt, *, n_heads):
    """Matches PyTorch Transformer.forward: channels-first (B, D, N) in/out."""
    n_blocks = params['e_wqkv'].shape[0]
    B = src.shape[0]
    src_t = jnp.swapaxes(src, 1, 2)                         # (B, N, D)
    tgt_t = jnp.swapaxes(tgt, 1, 2)
    # Stack both directions into one 2B batch (same shared weights):
    #   rows [0,B)  : encode src, decode tgt  -> tgt_embedding
    #   rows [B,2B) : encode tgt, decode src  -> src_embedding
    enc_in = jnp.concatenate([src_t, tgt_t], axis=0)
    dec_in = jnp.concatenate([tgt_t, src_t], axis=0)
    out = dcp_transformer_fused(params, enc_in, dec_in,
                                n_heads=n_heads, n_blocks=n_blocks)
    tgt_emb = jnp.swapaxes(out[:B], 1, 2)
    src_emb = jnp.swapaxes(out[B:], 1, 2)
    return src_emb, tgt_emb


# ----------------------------------------------------------------------------
# Parameter init + packing (nn.Linear-style init; LayerNorm a_2=1, b_2=0)
# QKV fused, 1/sqrt(d_k) folded into wq/bq, matmul weights pre-cast to bf16.
# ----------------------------------------------------------------------------

def init_params(key, d_model, d_ff, n_blocks, n_heads):
    d_k = d_model // n_heads
    q_scale = 1.0 / math.sqrt(d_k)

    def linear(k, d_in, d_out):
        kw, kb = jax.random.split(k)
        bound = 1.0 / math.sqrt(d_in)
        w = jax.random.uniform(kw, (d_in, d_out), jnp.float32, -bound, bound)
        b = jax.random.uniform(kb, (d_out,), jnp.float32, -bound, bound)
        return w, b

    def attn(k):
        kq, kk, kv, ko = jax.random.split(k, 4)
        wq, bq = linear(kq, d_model, d_model)
        wk, bk = linear(kk, d_model, d_model)
        wv, bv = linear(kv, d_model, d_model)
        wo, bo = linear(ko, d_model, d_model)
        return wq, bq, wk, bk, wv, bv, wo, bo

    def ffn_p(k):
        k1, k2 = jax.random.split(k)
        w1, b1 = linear(k1, d_model, d_ff)
        w2, b2 = linear(k2, d_ff, d_model)
        return w1, b1, w2, b2

    keys = jax.random.split(key, 2 * n_blocks)
    e_wqkv, e_bqkv, e_wo, e_bo = [], [], [], []
    e_w1, e_b1, e_w2, e_b2 = [], [], [], []
    for i in range(n_blocks):
        ka, kf = jax.random.split(keys[i])
        wq, bq, wk, bk, wv, bv, wo, bo = attn(ka)
        e_wqkv.append(jnp.concatenate([wq * q_scale, wk, wv], axis=1))
        e_bqkv.append(jnp.concatenate([bq * q_scale, bk, bv])[None, :])
        e_wo.append(wo); e_bo.append(bo[None, :])
        w1, b1, w2, b2 = ffn_p(kf)
        e_w1.append(w1); e_b1.append(b1[None, :])
        e_w2.append(w2); e_b2.append(b2[None, :])

    d_sa_wqkv, d_sa_bqkv, d_sa_wo, d_sa_bo = [], [], [], []
    d_ca_wq, d_ca_bq, d_ca_wkv, d_ca_bkv, d_ca_wo, d_ca_bo = [], [], [], [], [], []
    d_w1, d_b1, d_w2, d_b2 = [], [], [], []
    for i in range(n_blocks):
        ks_, kc, kf = jax.random.split(keys[n_blocks + i], 3)
        wq, bq, wk, bk, wv, bv, wo, bo = attn(ks_)
        d_sa_wqkv.append(jnp.concatenate([wq * q_scale, wk, wv], axis=1))
        d_sa_bqkv.append(jnp.concatenate([bq * q_scale, bk, bv])[None, :])
        d_sa_wo.append(wo); d_sa_bo.append(bo[None, :])
        wq, bq, wk, bk, wv, bv, wo, bo = attn(kc)
        d_ca_wq.append(wq * q_scale); d_ca_bq.append((bq * q_scale)[None, :])
        d_ca_wkv.append(jnp.concatenate([wk, wv], axis=1))
        d_ca_bkv.append(jnp.concatenate([bk, bv])[None, :])
        d_ca_wo.append(wo); d_ca_bo.append(bo[None, :])
        w1, b1, w2, b2 = ffn_p(kf)
        d_w1.append(w1); d_b1.append(b1[None, :])
        d_w2.append(w2); d_b2.append(b2[None, :])

    bf16 = jnp.bfloat16
    st = lambda lst, dt=jnp.float32: jnp.stack(lst).astype(dt)
    return dict(
        e_ln_g=jnp.ones((n_blocks, 2, d_model), jnp.float32),
        e_ln_b=jnp.zeros((n_blocks, 2, d_model), jnp.float32),
        e_wqkv=st(e_wqkv, bf16), e_bqkv=st(e_bqkv),
        e_wo=st(e_wo, bf16), e_bo=st(e_bo),
        e_w1=st(e_w1, bf16), e_b1=st(e_b1),
        e_w2=st(e_w2, bf16), e_b2=st(e_b2),
        e_ng=jnp.ones((1, d_model), jnp.float32),
        e_nb=jnp.zeros((1, d_model), jnp.float32),
        d_ln_g=jnp.ones((n_blocks, 3, d_model), jnp.float32),
        d_ln_b=jnp.zeros((n_blocks, 3, d_model), jnp.float32),
        d_sa_wqkv=st(d_sa_wqkv, bf16), d_sa_bqkv=st(d_sa_bqkv),
        d_sa_wo=st(d_sa_wo, bf16), d_sa_bo=st(d_sa_bo),
        d_ca_wq=st(d_ca_wq, bf16), d_ca_bq=st(d_ca_bq),
        d_ca_wkv=st(d_ca_wkv, bf16), d_ca_bkv=st(d_ca_bkv),
        d_ca_wo=st(d_ca_wo, bf16), d_ca_bo=st(d_ca_bo),
        d_w1=st(d_w1, bf16), d_b1=st(d_b1),
        d_w2=st(d_w2, bf16), d_b2=st(d_b2),
        d_ng=jnp.ones((1, d_model), jnp.float32),
        d_nb=jnp.zeros((1, d_model), jnp.float32),
    )


# ----------------------------------------------------------------------------
# Demo
# ----------------------------------------------------------------------------

if __name__ == "__main__":
    # Small shapes consistent with the module: batch=2, emb_dims=32, points=16,
    # n_heads=4 (d_k=8), ff_dims=64, n_blocks=1.
    B, EMB_DIMS, N_PTS = 2, 32, 16
    N_HEADS, FF_DIMS, N_BLOCKS = 4, 64, 1

    key = jax.random.PRNGKey(0)
    kp, ks, kt = jax.random.split(key, 3)
    params = init_params(kp, EMB_DIMS, FF_DIMS, N_BLOCKS, N_HEADS)
    src = jax.random.normal(ks, (B, EMB_DIMS, N_PTS), dtype=jnp.float32)
    tgt = jax.random.normal(kt, (B, EMB_DIMS, N_PTS), dtype=jnp.float32)

    fwd = jax.jit(functools.partial(transformer_forward, n_heads=N_HEADS))
    src_emb, tgt_emb = fwd(params, src, tgt)
    jax.block_until_ready((src_emb, tgt_emb))

    assert src_emb.shape == (B, EMB_DIMS, N_PTS)
    assert tgt_emb.shape == (B, EMB_DIMS, N_PTS)
    assert bool(jnp.all(jnp.isfinite(src_emb))) and bool(jnp.all(jnp.isfinite(tgt_emb)))
    # TODO(synk): attention masks and dropout are None/disabled in the reference
    # Transformer.forward, so they are intentionally omitted here.
    print("KERNEL_OK")
</pallas_src>

<mosaic_0001>
module attributes {stable_mosaic.version = 11 : i64} {
  func.func @_fused_transformer_kernel(%arg0: i32, %arg1: memref<1x16x32xf32, #tpu.memory_space<vmem>>, %arg2: memref<1x16x32xf32, #tpu.memory_space<vmem>>, %arg3: memref<1x2x32xf32, #tpu.memory_space<vmem>>, %arg4: memref<1x2x32xf32, #tpu.memory_space<vmem>>, %arg5: memref<1x32x96xbf16, #tpu.memory_space<vmem>>, %arg6: memref<1x1x96xf32, #tpu.memory_space<vmem>>, %arg7: memref<1x32x32xbf16, #tpu.memory_space<vmem>>, %arg8: memref<1x1x32xf32, #tpu.memory_space<vmem>>, %arg9: memref<1x32x64xbf16, #tpu.memory_space<vmem>>, %arg10: memref<1x1x64xf32, #tpu.memory_space<vmem>>, %arg11: memref<1x64x32xbf16, #tpu.memory_space<vmem>>, %arg12: memref<1x1x32xf32, #tpu.memory_space<vmem>>, %arg13: memref<1x32xf32, #tpu.memory_space<vmem>>, %arg14: memref<1x32xf32, #tpu.memory_space<vmem>>, %arg15: memref<1x3x32xf32, #tpu.memory_space<vmem>>, %arg16: memref<1x3x32xf32, #tpu.memory_space<vmem>>, %arg17: memref<1x32x96xbf16, #tpu.memory_space<vmem>>, %arg18: memref<1x1x96xf32, #tpu.memory_space<vmem>>, %arg19: memref<1x32x32xbf16, #tpu.memory_space<vmem>>, %arg20: memref<1x1x32xf32, #tpu.memory_space<vmem>>, %arg21: memref<1x32x32xbf16, #tpu.memory_space<vmem>>, %arg22: memref<1x1x32xf32, #tpu.memory_space<vmem>>, %arg23: memref<1x32x64xbf16, #tpu.memory_space<vmem>>, %arg24: memref<1x1x64xf32, #tpu.memory_space<vmem>>, %arg25: memref<1x32x32xbf16, #tpu.memory_space<vmem>>, %arg26: memref<1x1x32xf32, #tpu.memory_space<vmem>>, %arg27: memref<1x32x64xbf16, #tpu.memory_space<vmem>>, %arg28: memref<1x1x64xf32, #tpu.memory_space<vmem>>, %arg29: memref<1x64x32xbf16, #tpu.memory_space<vmem>>, %arg30: memref<1x1x32xf32, #tpu.memory_space<vmem>>, %arg31: memref<1x32xf32, #tpu.memory_space<vmem>>, %arg32: memref<1x32xf32, #tpu.memory_space<vmem>>, %arg33: memref<1x16x32xf32, #tpu.memory_space<vmem>>) attributes {dimension_semantics = [#tpu.dimension_semantics<parallel>], iteration_bounds = array<i64: 4>, scalar_prefetch = 0 : i64, scratch_operands = 0 : i64, tpu.core_type = #tpu.core_type<tc>, window_params = [{transform_indices = @transform_0, window_bounds = array<i64: 1, 16, 32>}, {transform_indices = @transform_1, window_bounds = array<i64: 1, 16, 32>}, {pipeline_mode = #tpu.pipeline_mode<synchronous>, transform_indices = @transform_2, window_bounds = array<i64: 1, 2, 32>}, {pipeline_mode = #tpu.pipeline_mode<synchronous>, transform_indices = @transform_3, window_bounds = array<i64: 1, 2, 32>}, {pipeline_mode = #tpu.pipeline_mode<synchronous>, transform_indices = @transform_4, window_bounds = array<i64: 1, 32, 96>}, {pipeline_mode = #tpu.pipeline_mode<synchronous>, transform_indices = @transform_5, window_bounds = array<i64: 1, 1, 96>}, {pipeline_mode = #tpu.pipeline_mode<synchronous>, transform_indices = @transform_6, window_bounds = array<i64: 1, 32, 32>}, {pipeline_mode = #tpu.pipeline_mode<synchronous>, transform_indices = @transform_7, window_bounds = array<i64: 1, 1, 32>}, {pipeline_mode = #tpu.pipeline_mode<synchronous>, transform_indices = @transform_8, window_bounds = array<i64: 1, 32, 64>}, {pipeline_mode = #tpu.pipeline_mode<synchronous>, transform_indices = @transform_9, window_bounds = array<i64: 1, 1, 64>}, {pipeline_mode = #tpu.pipeline_mode<synchronous>, transform_indices = @transform_10, window_bounds = array<i64: 1, 64, 32>}, {pipeline_mode = #tpu.pipeline_mode<synchronous>, transform_indices = @transform_11, window_bounds = array<i64: 1, 1, 32>}, {pipeline_mode = #tpu.pipeline_mode<synchronous>, transform_indices = @transform_12, window_bounds = array<i64: 1, 32>}, {pipeline_mode = #tpu.pipeline_mode<synchronous>, transform_indices = @transform_13, window_bounds = array<i64: 1, 32>}, {pipeline_mode = #tpu.pipeline_mode<synchronous>, transform_indices = @transform_14, window_bounds = array<i64: 1, 3, 32>}, {pipeline_mode = #tpu.pipeline_mode<synchronous>, transform_indices = @transform_15, window_bounds = array<i64: 1, 3, 32>}, {pipeline_mode = #tpu.pipeline_mode<synchronous>, transform_indices = @transform_16, window_bounds = array<i64: 1, 32, 96>}, {pipeline_mode = #tpu.pipeline_mode<synchronous>, transform_indices = @transform_17, window_bounds = array<i64: 1, 1, 96>}, {pipeline_mode = #tpu.pipeline_mode<synchronous>, transform_indices = @transform_18, window_bounds = array<i64: 1, 32, 32>}, {pipeline_mode = #tpu.pipeline_mode<synchronous>, transform_indices = @transform_19, window_bounds = array<i64: 1, 1, 32>}, {pipeline_mode = #tpu.pipeline_mode<synchronous>, transform_indices = @transform_20, window_bounds = array<i64: 1, 32, 32>}, {pipeline_mode = #tpu.pipeline_mode<synchronous>, transform_indices = @transform_21, window_bounds = array<i64: 1, 1, 32>}, {pipeline_mode = #tpu.pipeline_mode<synchronous>, transform_indices = @transform_22, window_bounds = array<i64: 1, 32, 64>}, {pipeline_mode = #tpu.pipeline_mode<synchronous>, transform_indices = @transform_23, window_bounds = array<i64: 1, 1, 64>}, {pipeline_mode = #tpu.pipeline_mode<synchronous>, transform_indices = @transform_24, window_bounds = array<i64: 1, 32, 32>}, {pipeline_mode = #tpu.pipeline_mode<synchronous>, transform_indices = @transform_25, window_bounds = array<i64: 1, 1, 32>}, {pipeline_mode = #tpu.pipeline_mode<synchronous>, transform_indices = @transform_26, window_bounds = array<i64: 1, 32, 64>}, {pipeline_mode = #tpu.pipeline_mode<synchronous>, transform_indices = @transform_27, window_bounds = array<i64: 1, 1, 64>}, {pipeline_mode = #tpu.pipeline_mode<synchronous>, transform_indices = @transform_28, window_bounds = array<i64: 1, 64, 32>}, {pipeline_mode = #tpu.pipeline_mode<synchronous>, transform_indices = @transform_29, window_bounds = array<i64: 1, 1, 32>}, {pipeline_mode = #tpu.pipeline_mode<synchronous>, transform_indices = @transform_30, window_bounds = array<i64: 1, 32>}, {pipeline_mode = #tpu.pipeline_mode<synchronous>, transform_indices = @transform_31, window_bounds = array<i64: 1, 32>}, {transform_indices = @transform_32, window_bounds = array<i64: 1, 16, 32>}]} {
    %c0 = arith.constant 0 : index
    %c0_0 = arith.constant 0 : index
    %c0_1 = arith.constant 0 : index
    %0 = vector.load %arg1[%c0, %c0_0, %c0_1] : memref<1x16x32xf32, #tpu.memory_space<vmem>>, vector<1x16x32xf32>
    %1 = vector.shape_cast %0 : vector<1x16x32xf32> to vector<16x32xf32>
    %c0_2 = arith.constant 0 : index
    %c0_3 = arith.constant 0 : index
    %c0_4 = arith.constant 0 : index
    %2 = vector.load %arg3[%c0_2, %c0_3, %c0_4] : memref<1x2x32xf32, #tpu.memory_space<vmem>>, vector<1x2x32xf32>
    %3 = vector.shape_cast %2 : vector<1x2x32xf32> to vector<2x32xf32>
    %c0_5 = arith.constant 0 : index
    %c0_6 = arith.constant 0 : index
    %c0_7 = arith.constant 0 : index
    %4 = vector.load %arg4[%c0_5, %c0_6, %c0_7] : memref<1x2x32xf32, #tpu.memory_space<vmem>>, vector<1x2x32xf32>
    %5 = vector.shape_cast %4 : vector<1x2x32xf32> to vector<2x32xf32>
    %6 = vector.extract_strided_slice %3 {offsets = [0, 0], sizes = [1, 32], strides = [1, 1]} : vector<2x32xf32> to vector<1x32xf32>
    %7 = vector.shape_cast %6 : vector<1x32xf32> to vector<32xf32>
    %8 = vector.extract_strided_slice %5 {offsets = [0, 0], sizes = [1, 32], strides = [1, 1]} : vector<2x32xf32> to vector<1x32xf32>
    %9 = vector.shape_cast %8 : vector<1x32xf32> to vector<32xf32>
    %cst = arith.constant dense<0.000000e+00> : vector<16xf32>
    %10 = vector.multi_reduction <add>, %1, %cst [1] : vector<16x32xf32> to vector<16xf32>
    %11 = vector.shape_cast %10 : vector<16xf32> to vector<16x1xf32>
    %cst_8 = arith.constant 3.200000e+01 : f32
    %12 = vector.broadcast %cst_8 : f32 to vector<16x1xf32>
    %13 = arith.divf %11, %12 : vector<16x1xf32>
    %14 = vector.broadcast %13 : vector<16x1xf32> to vector<16x32xf32>
    %15 = arith.subf %1, %14 : vector<16x32xf32>
    %16 = arith.mulf %15, %15 : vector<16x32xf32>
    %cst_9 = arith.constant dense<0.000000e+00> : vector<16xf32>
    %17 = vector.multi_reduction <add>, %16, %cst_9 [1] : vector<16x32xf32> to vector<16xf32>
    %18 = vector.shape_cast %17 : vector<16xf32> to vector<16x1xf32>
    %cst_10 = arith.constant 0.0322580636 : f32
    %19 = vector.broadcast %cst_10 : f32 to vector<16x1xf32>
    %20 = arith.mulf %18, %19 : vector<16x1xf32>
    %21 = math.sqrt %20 : vector<16x1xf32>
    %cst_11 = arith.constant 9.99999997E-7 : f32
    %22 = vector.broadcast %cst_11 : f32 to vector<16x1xf32>
    %23 = arith.addf %21, %22 : vector<16x1xf32>
    %24 = tpu.reciprocal %23 : vector<16x1xf32> -> vector<16x1xf32>
    %25 = vector.shape_cast %7 : vector<32xf32> to vector<1x32xf32>
    %26 = vector.broadcast %25 : vector<1x32xf32> to vector<16x32xf32>
    %27 = arith.mulf %26, %15 : vector<16x32xf32>
    %28 = vector.broadcast %24 : vector<16x1xf32> to vector<16x32xf32>
    %29 = arith.mulf %27, %28 : vector<16x32xf32>
    %30 = vector.shape_cast %9 : vector<32xf32> to vector<1x32xf32>
    %31 = vector.broadcast %30 : vector<1x32xf32> to vector<16x32xf32>
    %32 = arith.addf %29, %31 : vector<16x32xf32>
    %c0_12 = arith.constant 0 : index
    %c0_13 = arith.constant 0 : index
    %c0_14 = arith.constant 0 : index
    %33 = vector.load %arg5[%c0_12, %c0_13, %c0_14] : memref<1x32x96xbf16, #tpu.memory_space<vmem>>, vector<1x32x96xbf16>
    %34 = vector.shape_cast %33 : vector<1x32x96xbf16> to vector<32x96xbf16>
    %c0_15 = arith.constant 0 : index
    %c0_16 = arith.constant 0 : index
    %c0_17 = arith.constant 0 : index
    %35 = vector.load %arg6[%c0_15, %c0_16, %c0_17] : memref<1x1x96xf32, #tpu.memory_space<vmem>>, vector<1x1x96xf32>
    %36 = vector.shape_cast %35 : vector<1x1x96xf32> to vector<1x96xf32>
    %c0_18 = arith.constant 0 : index
    %c0_19 = arith.constant 0 : index
    %c0_20 = arith.constant 0 : index
    %37 = vector.load %arg7[%c0_18, %c0_19, %c0_20] : memref<1x32x32xbf16, #tpu.memory_space<vmem>>, vector<1x32x32xbf16>
    %38 = vector.shape_cast %37 : vector<1x32x32xbf16> to vector<32x32xbf16>
    %c0_21 = arith.constant 0 : index
    %c0_22 = arith.constant 0 : index
    %c0_23 = arith.constant 0 : index
    %39 = vector.load %arg8[%c0_21, %c0_22, %c0_23] : memref<1x1x32xf32, #tpu.memory_space<vmem>>, vector<1x1x32xf32>
    %40 = vector.shape_cast %39 : vector<1x1x32xf32> to vector<1x32xf32>
    %41 = arith.truncf %32 : vector<16x32xf32> to vector<16x32xbf16>
    %cst_24 = arith.constant dense<0.000000e+00> : vector<16x96xf32>
    %42 = tpu.matmul %41, %34, %cst_24 {dimension_numbers = #tpu.dot_dimension_numbers<[1], [0], [0], [1], [0, 0, 1, 1], [], []>} : vector<16x32xbf16>, vector<32x96xbf16>, vector<16x96xf32> -> vector<16x96xf32>
    %43 = vector.broadcast %36 : vector<1x96xf32> to vector<16x96xf32>
    %44 = arith.addf %42, %43 : vector<16x96xf32>
    %45 = vector.extract_strided_slice %44 {offsets = [0, 0], sizes = [16, 32], strides = [1, 1]} : vector<16x96xf32> to vector<16x32xf32>
    %46 = vector.extract_strided_slice %44 {offsets = [0, 32], sizes = [16, 32], strides = [1, 1]} : vector<16x96xf32> to vector<16x32xf32>
    %47 = vector.extract_strided_slice %44 {offsets = [0, 64], sizes = [16, 32], strides = [1, 1]} : vector<16x96xf32> to vector<16x32xf32>
    %48 = arith.truncf %45 : vector<16x32xf32> to vector<16x32xbf16>
    %49 = arith.truncf %46 : vector<16x32xf32> to vector<16x32xbf16>
    %50 = arith.truncf %47 : vector<16x32xf32> to vector<16x32xbf16>
    %cst_25 = arith.constant 0.000000e+00 : f32
    %51 = vector.broadcast %cst_25 : f32 to vector<16x32xf32>
    %52 = vector.extract_strided_slice %48 {offsets = [0, 0], sizes = [16, 8], strides = [1, 1]} : vector<16x32xbf16> to vector<16x8xbf16>
    %53 = vector.extract_strided_slice %49 {offsets = [0, 0], sizes = [16, 8], strides = [1, 1]} : vector<16x32xbf16> to vector<16x8xbf16>
    %cst_26 = arith.constant dense<0.000000e+00> : vector<16x16xf32>
    %54 = tpu.matmul %52, %53, %cst_26 {dimension_numbers = #tpu.dot_dimension_numbers<[1], [1], [0], [0], [0, 0, 1, 0], [], []>} : vector<16x8xbf16>, vector<16x8xbf16>, vector<16x16xf32> -> vector<16x16xf32>
    %cst_27 = arith.constant dense<0xFF800000> : vector<16xf32>
    %55 = vector.multi_reduction <maximumf>, %54, %cst_27 [1] : vector<16x16xf32> to vector<16xf32>
    %56 = vector.shape_cast %55 : vector<16xf32> to vector<16x1xf32>
    %57 = vector.broadcast %56 : vector<16x1xf32> to vector<16x16xf32>
    %58 = arith.subf %54, %57 : vector<16x16xf32>
    %59 = math.exp %58 : vector<16x16xf32>
    %cst_28 = arith.constant dense<0.000000e+00> : vector<16xf32>
    %60 = vector.multi_reduction <add>, %59, %cst_28 [1] : vector<16x16xf32> to vector<16xf32>
    %61 = vector.shape_cast %60 : vector<16xf32> to vector<16x1xf32>
    %62 = tpu.reciprocal %61 {approx = true} : vector<16x1xf32> -> vector<16x1xf32>
    %63 = vector.broadcast %62 : vector<16x1xf32> to vector<16x16xf32>
    %64 = arith.mulf %59, %63 : vector<16x16xf32>
    %65 = arith.truncf %64 : vector<16x16xf32> to vector<16x16xbf16>
    %66 = vector.extract_strided_slice %50 {offsets = [0, 0], sizes = [16, 8], strides = [1, 1]} : vector<16x32xbf16> to vector<16x8xbf16>
    %cst_29 = arith.constant dense<0.000000e+00> : vector<16x8xf32>
    %67 = tpu.matmul %65, %66, %cst_29 {dimension_numbers = #tpu.dot_dimension_numbers<[1], [0], [0], [1], [0, 0, 1, 1], [], []>} : vector<16x16xbf16>, vector<16x8xbf16>, vector<16x8xf32> -> vector<16x8xf32>
    %68 = arith.truncf %67 : vector<16x8xf32> to vector<16x8xbf16>
    %69 = vector.extract_strided_slice %38 {offsets = [0, 0], sizes = [8, 32], strides = [1, 1]} : vector<32x32xbf16> to vector<8x32xbf16>
    %cst_30 = arith.constant dense<0.000000e+00> : vector<16x32xf32>
    %70 = tpu.matmul %68, %69, %cst_30 {dimension_numbers = #tpu.dot_dimension_numbers<[1], [0], [0], [1], [0, 0, 1, 1], [], []>} : vector<16x8xbf16>, vector<8x32xbf16>, vector<16x32xf32> -> vector<16x32xf32>
    %71 = arith.addf %51, %70 : vector<16x32xf32>
    %72 = vector.extract_strided_slice %48 {offsets = [0, 8], sizes = [16, 8], strides = [1, 1]} : vector<16x32xbf16> to vector<16x8xbf16>
    %73 = vector.extract_strided_slice %49 {offsets = [0, 8], sizes = [16, 8], strides = [1, 1]} : vector<16x32xbf16> to vector<16x8xbf16>
    %cst_31 = arith.constant dense<0.000000e+00> : vector<16x16xf32>
    %74 = tpu.matmul %72, %73, %cst_31 {dimension_numbers = #tpu.dot_dimension_numbers<[1], [1], [0], [0], [0, 0, 1, 0], [], []>} : vector<16x8xbf16>, vector<16x8xbf16>, vector<16x16xf32> -> vector<16x16xf32>
    %cst_32 = arith.constant dense<0xFF800000> : vector<16xf32>
    %75 = vector.multi_reduction <maximumf>, %74, %cst_32 [1] : vector<16x16xf32> to vector<16xf32>
    %76 = vector.shape_cast %75 : vector<16xf32> to vector<16x1xf32>
    %77 = vector.broadcast %76 : vector<16x1xf32> to vector<16x16xf32>
    %78 = arith.subf %74, %77 : vector<16x16xf32>
    %79 = math.exp %78 : vector<16x16xf32>
    %cst_33 = arith.constant dense<0.000000e+00> : vector<16xf32>
    %80 = vector.multi_reduction <add>, %79, %cst_33 [1] : vector<16x16xf32> to vector<16xf32>
    %81 = vector.shape_cast %80 : vector<16xf32> to vector<16x1xf32>
    %82 = tpu.reciprocal %81 {approx = true} : vector<16x1xf32> -> vector<16x1xf32>
    %83 = vector.broadcast %82 : vector<16x1xf32> to vector<16x16xf32>
    %84 = arith.mulf %79, %83 : vector<16x16xf32>
    %85 = arith.truncf %84 : vector<16x16xf32> to vector<16x16xbf16>
    %86 = vector.extract_strided_slice %50 {offsets = [0, 8], sizes = [16, 8], strides = [1, 1]} : vector<16x32xbf16> to vector<16x8xbf16>
    %cst_34 = arith.constant dense<0.000000e+00> : vector<16x8xf32>
    %87 = tpu.matmul %85, %86, %cst_34 {dimension_numbers = #tpu.dot_dimension_numbers<[1], [0], [0], [1], [0, 0, 1, 1], [], []>} : vector<16x16xbf16>, vector<16x8xbf16>, vector<16x8xf32> -> vector<16x8xf32>
    %88 = arith.truncf %87 : vector<16x8xf32> to vector<16x8xbf16>
    %89 = vector.extract_strided_slice %38 {offsets = [8, 0], sizes = [8, 32], strides = [1, 1]} : vector<32x32xbf16> to vector<8x32xbf16>
    %cst_35 = arith.constant dense<0.000000e+00> : vector<16x32xf32>
    %90 = tpu.matmul %88, %89, %cst_35 {dimension_numbers = #tpu.dot_dimension_numbers<[1], [0], [0], [1], [0, 0, 1, 1], [], []>} : vector<16x8xbf16>, vector<8x32xbf16>, vector<16x32xf32> -> vector<16x32xf32>
    %91 = arith.addf %71, %90 : vector<16x32xf32>
    %92 = vector.extract_strided_slice %48 {offsets = [0, 16], sizes = [16, 8], strides = [1, 1]} : vector<16x32xbf16> to vector<16x8xbf16>
    %93 = vector.extract_strided_slice %49 {offsets = [0, 16], sizes = [16, 8], strides = [1, 1]} : vector<16x32xbf16> to vector<16x8xbf16>
    %cst_36 = arith.constant dense<0.000000e+00> : vector<16x16xf32>
    %94 = tpu.matmul %92, %93, %cst_36 {dimension_numbers = #tpu.dot_dimension_numbers<[1], [1], [0], [0], [0, 0, 1, 0], [], []>} : vector<16x8xbf16>, vector<16x8xbf16>, vector<16x16xf32> -> vector<16x16xf32>
    %cst_37 = arith.constant dense<0xFF800000> : vector<16xf32>
    %95 = vector.multi_reduction <maximumf>, %94, %cst_37 [1] : vector<16x16xf32> to vector<16xf32>
    %96 = vector.shape_cast %95 : vector<16xf32> to vector<16x1xf32>
    %97 = vector.broadcast %96 : vector<16x1xf32> to vector<16x16xf32>
    %98 = arith.subf %94, %97 : vector<16x16xf32>
    %99 = math.exp %98 : vector<16x16xf32>
    %cst_38 = arith.constant dense<0.000000e+00> : vector<16xf32>
    %100 = vector.multi_reduction <add>, %99, %cst_38 [1] : vector<16x16xf32> to vector<16xf32>
    %101 = vector.shape_cast %100 : vector<16xf32> to vector<16x1xf32>
    %102 = tpu.reciprocal %101 {approx = true} : vector<16x1xf32> -> vector<16x1xf32>
    %103 = vector.broadcast %102 : vector<16x1xf32> to vector<16x16xf32>
    %104 = arith.mulf %99, %103 : vector<16x16xf32>
    %105 = arith.truncf %104 : vector<16x16xf32> to vector<16x16xbf16>
    %106 = vector.extract_strided_slice %50 {offsets = [0, 16], sizes = [16, 8], strides = [1, 1]} : vector<16x32xbf16> to vector<16x8xbf16>
    %cst_39 = arith.constant dense<0.000000e+00> : vector<16x8xf32>
    %107 = tpu.matmul %105, %106, %cst_39 {dimension_numbers = #tpu.dot_dimension_numbers<[1], [0], [0], [1], [0, 0, 1, 1], [], []>} : vector<16x16xbf16>, vector<16x8xbf16>, vector<16x8xf32> -> vector<16x8xf32>
    %108 = arith.truncf %107 : vector<16x8xf32> to vector<16x8xbf16>
    %109 = vector.extract_strided_slice %38 {offsets = [16, 0], sizes = [8, 32], strides = [1, 1]} : vector<32x32xbf16> to vector<8x32xbf16>
    %cst_40 = arith.constant dense<0.000000e+00> : vector<16x32xf32>
    %110 = tpu.matmul %108, %109, %cst_40 {dimension_numbers = #tpu.dot_dimension_numbers<[1], [0], [0], [1], [0, 0, 1, 1], [], []>} : vector<16x8xbf16>, vector<8x32xbf16>, vector<16x32xf32> -> vector<16x32xf32>
    %111 = arith.addf %91, %110 : vector<16x32xf32>
    %112 = vector.extract_strided_slice %48 {offsets = [0, 24], sizes = [16, 8], strides = [1, 1]} : vector<16x32xbf16> to vector<16x8xbf16>
    %113 = vector.extract_strided_slice %49 {offsets = [0, 24], sizes = [16, 8], strides = [1, 1]} : vector<16x32xbf16> to vector<16x8xbf16>
    %cst_41 = arith.constant dense<0.000000e+00> : vector<16x16xf32>
    %114 = tpu.matmul %112, %113, %cst_41 {dimension_numbers = #tpu.dot_dimension_numbers<[1], [1], [0], [0], [0, 0, 1, 0], [], []>} : vector<16x8xbf16>, vector<16x8xbf16>, vector<16x16xf32> -> vector<16x16xf32>
    %cst_42 = arith.constant dense<0xFF800000> : vector<16xf32>
    %115 = vector.multi_reduction <maximumf>, %114, %cst_42 [1] : vector<16x16xf32> to vector<16xf32>
    %116 = vector.shape_cast %115 : vector<16xf32> to vector<16x1xf32>
    %117 = vector.broadcast %116 : vector<16x1xf32> to vector<16x16xf32>
    %118 = arith.subf %114, %117 : vector<16x16xf32>
    %119 = math.exp %118 : vector<16x16xf32>
    %cst_43 = arith.constant dense<0.000000e+00> : vector<16xf32>
    %120 = vector.multi_reduction <add>, %119, %cst_43 [1] : vector<16x16xf32> to vector<16xf32>
    %121 = vector.shape_cast %120 : vector<16xf32> to vector<16x1xf32>
    %122 = tpu.reciprocal %121 {approx = true} : vector<16x1xf32> -> vector<16x1xf32>
    %123 = vector.broadcast %122 : vector<16x1xf32> to vector<16x16xf32>
    %124 = arith.mulf %119, %123 : vector<16x16xf32>
    %125 = arith.truncf %124 : vector<16x16xf32> to vector<16x16xbf16>
    %126 = vector.extract_strided_slice %50 {offsets = [0, 24], sizes = [16, 8], strides = [1, 1]} : vector<16x32xbf16> to vector<16x8xbf16>
    %cst_44 = arith.constant dense<0.000000e+00> : vector<16x8xf32>
    %127 = tpu.matmul %125, %126, %cst_44 {dimension_numbers = #tpu.dot_dimension_numbers<[1], [0], [0], [1], [0, 0, 1, 1], [], []>} : vector<16x16xbf16>, vector<16x8xbf16>, vector<16x8xf32> -> vector<16x8xf32>
    %128 = arith.truncf %127 : vector<16x8xf32> to vector<16x8xbf16>
    %129 = vector.extract_strided_slice %38 {offsets = [24, 0], sizes = [8, 32], strides = [1, 1]} : vector<32x32xbf16> to vector<8x32xbf16>
    %cst_45 = arith.constant dense<0.000000e+00> : vector<16x32xf32>
    %130 = tpu.matmul %128, %129, %cst_45 {dimension_numbers = #tpu.dot_dimension_numbers<[1], [0], [0], [1], [0, 0, 1, 1], [], []>} : vector<16x8xbf16>, vector<8x32xbf16>, vector<16x32xf32> -> vector<16x32xf32>
    %131 = arith.addf %111, %130 : vector<16x32xf32>
    %132 = vector.broadcast %40 : vector<1x32xf32> to vector<16x32xf32>
    %133 = arith.addf %131, %132 : vector<16x32xf32>
    %134 = arith.addf %1, %133 : vector<16x32xf32>
    %135 = vector.extract_strided_slice %3 {offsets = [1, 0], sizes = [1, 32], strides = [1, 1]} : vector<2x32xf32> to vector<1x32xf32>
    %136 = vector.shape_cast %135 : vector<1x32xf32> to vector<32xf32>
    %137 = vector.extract_strided_slice %5 {offsets = [1, 0], sizes = [1, 32], strides = [1, 1]} : vector<2x32xf32> to vector<1x32xf32>
    %138 = vector.shape_cast %137 : vector<1x32xf32> to vector<32xf32>
    %cst_46 = arith.constant dense<0.000000e+00> : vector<16xf32>
    %139 = vector.multi_reduction <add>, %134, %cst_46 [1] : vector<16x32xf32> to vector<16xf32>
    %140 = vector.shape_cast %139 : vector<16xf32> to vector<16x1xf32>
    %cst_47 = arith.constant 3.200000e+01 : f32
    %141 = vector.broadcast %cst_47 : f32 to vector<16x1xf32>
    %142 = arith.divf %140, %141 : vector<16x1xf32>
    %143 = vector.broadcast %142 : vector<16x1xf32> to vector<16x32xf32>
    %144 = arith.subf %134, %143 : vector<16x32xf32>
    %145 = arith.mulf %144, %144 : vector<16x32xf32>
    %cst_48 = arith.constant dense<0.000000e+00> : vector<16xf32>
    %146 = vector.multi_reduction <add>, %145, %cst_48 [1] : vector<16x32xf32> to vector<16xf32>
    %147 = vector.shape_cast %146 : vector<16xf32> to vector<16x1xf32>
    %cst_49 = arith.constant 0.0322580636 : f32
    %148 = vector.broadcast %cst_49 : f32 to vector<16x1xf32>
    %149 = arith.mulf %147, %148 : vector<16x1xf32>
    %150 = math.sqrt %149 : vector<16x1xf32>
    %cst_50 = arith.constant 9.99999997E-7 : f32
    %151 = vector.broadcast %cst_50 : f32 to vector<16x1xf32>
    %152 = arith.addf %150, %151 : vector<16x1xf32>
    %153 = tpu.reciprocal %152 : vector<16x1xf32> -> vector<16x1xf32>
    %154 = vector.shape_cast %136 : vector<32xf32> to vector<1x32xf32>
    %155 = vector.broadcast %154 : vector<1x32xf32> to vector<16x32xf32>
    %156 = arith.mulf %155, %144 : vector<16x32xf32>
    %157 = vector.broadcast %153 : vector<16x1xf32> to vector<16x32xf32>
    %158 = arith.mulf %156, %157 : vector<16x32xf32>
    %159 = vector.shape_cast %138 : vector<32xf32> to vector<1x32xf32>
    %160 = vector.broadcast %159 : vector<1x32xf32> to vector<16x32xf32>
    %161 = arith.addf %158, %160 : vector<16x32xf32>
    %c0_51 = arith.constant 0 : index
    %c0_52 = arith.constant 0 : index
    %c0_53 = arith.constant 0 : index
    %162 = vector.load %arg9[%c0_51, %c0_52, %c0_53] : memref<1x32x64xbf16, #tpu.memory_space<vmem>>, vector<1x32x64xbf16>
    %163 = vector.shape_cast %162 : vector<1x32x64xbf16> to vector<32x64xbf16>
    %c0_54 = arith.constant 0 : index
    %c0_55 = arith.constant 0 : index
    %c0_56 = arith.constant 0 : index
    %164 = vector.load %arg10[%c0_54, %c0_55, %c0_56] : memref<1x1x64xf32, #tpu.memory_space<vmem>>, vector<1x1x64xf32>
    %165 = vector.shape_cast %164 : vector<1x1x64xf32> to vector<1x64xf32>
    %c0_57 = arith.constant 0 : index
    %c0_58 = arith.constant 0 : index
    %c0_59 = arith.constant 0 : index
    %166 = vector.load %arg11[%c0_57, %c0_58, %c0_59] : memref<1x64x32xbf16, #tpu.memory_space<vmem>>, vector<1x64x32xbf16>
    %167 = vector.shape_cast %166 : vector<1x64x32xbf16> to vector<64x32xbf16>
    %c0_60 = arith.constant 0 : index
    %c0_61 = arith.constant 0 : index
    %c0_62 = arith.constant 0 : index
    %168 = vector.load %arg12[%c0_60, %c0_61, %c0_62] : memref<1x1x32xf32, #tpu.memory_space<vmem>>, vector<1x1x32xf32>
    %169 = vector.shape_cast %168 : vector<1x1x32xf32> to vector<1x32xf32>
    %170 = arith.truncf %161 : vector<16x32xf32> to vector<16x32xbf16>
    %cst_63 = arith.constant dense<0.000000e+00> : vector<16x64xf32>
    %171 = tpu.matmul %170, %163, %cst_63 {dimension_numbers = #tpu.dot_dimension_numbers<[1], [0], [0], [1], [0, 0, 1, 1], [], []>} : vector<16x32xbf16>, vector<32x64xbf16>, vector<16x64xf32> -> vector<16x64xf32>
    %172 = vector.broadcast %165 : vector<1x64xf32> to vector<16x64xf32>
    %173 = arith.addf %171, %172 : vector<16x64xf32>
    %cst_64 = arith.constant 0.000000e+00 : f32
    %174 = vector.broadcast %cst_64 : f32 to vector<16x64xf32>
    %175 = arith.maximumf %173, %174 : vector<16x64xf32>
    %176 = arith.truncf %175 : vector<16x64xf32> to vector<16x64xbf16>
    %cst_65 = arith.constant dense<0.000000e+00> : vector<16x32xf32>
    %177 = tpu.matmul %176, %167, %cst_65 {dimension_numbers = #tpu.dot_dimension_numbers<[1], [0], [0], [1], [0, 0, 1, 1], [], []>} : vector<16x64xbf16>, vector<64x32xbf16>, vector<16x32xf32> -> vector<16x32xf32>
    %178 = vector.broadcast %169 : vector<1x32xf32> to vector<16x32xf32>
    %179 = arith.addf %177, %178 : vector<16x32xf32>
    %180 = arith.addf %134, %179 : vector<16x32xf32>
    %c0_66 = arith.constant 0 : index
    %c0_67 = arith.constant 0 : index
    %181 = vector.load %arg13[%c0_66, %c0_67] : memref<1x32xf32, #tpu.memory_space<vmem>>, vector<1x32xf32>
    %c0_68 = arith.constant 0 : index
    %c0_69 = arith.constant 0 : index
    %182 = vector.load %arg14[%c0_68, %c0_69] : memref<1x32xf32, #tpu.memory_space<vmem>>, vector<1x32xf32>
    %cst_70 = arith.constant dense<0.000000e+00> : vector<16xf32>
    %183 = vector.multi_reduction <add>, %180, %cst_70 [1] : vector<16x32xf32> to vector<16xf32>
    %184 = vector.shape_cast %183 : vector<16xf32> to vector<16x1xf32>
    %cst_71 = arith.constant 3.200000e+01 : f32
    %185 = vector.broadcast %cst_71 : f32 to vector<16x1xf32>
    %186 = arith.divf %184, %185 : vector<16x1xf32>
    %187 = vector.broadcast %186 : vector<16x1xf32> to vector<16x32xf32>
    %188 = arith.subf %180, %187 : vector<16x32xf32>
    %189 = arith.mulf %188, %188 : vector<16x32xf32>
    %cst_72 = arith.constant dense<0.000000e+00> : vector<16xf32>
    %190 = vector.multi_reduction <add>, %189, %cst_72 [1] : vector<16x32xf32> to vector<16xf32>
    %191 = vector.shape_cast %190 : vector<16xf32> to vector<16x1xf32>
    %cst_73 = arith.constant 0.0322580636 : f32
    %192 = vector.broadcast %cst_73 : f32 to vector<16x1xf32>
    %193 = arith.mulf %191, %192 : vector<16x1xf32>
    %194 = math.sqrt %193 : vector<16x1xf32>
    %cst_74 = arith.constant 9.99999997E-7 : f32
    %195 = vector.broadcast %cst_74 : f32 to vector<16x1xf32>
    %196 = arith.addf %194, %195 : vector<16x1xf32>
    %197 = tpu.reciprocal %196 : vector<16x1xf32> -> vector<16x1xf32>
    %198 = vector.broadcast %181 : vector<1x32xf32> to vector<16x32xf32>
    %199 = arith.mulf %198, %188 : vector<16x32xf32>
    %200 = vector.broadcast %197 : vector<16x1xf32> to vector<16x32xf32>
    %201 = arith.mulf %199, %200 : vector<16x32xf32>
    %202 = vector.broadcast %182 : vector<1x32xf32> to vector<16x32xf32>
    %203 = arith.addf %201, %202 : vector<16x32xf32>
    %204 = arith.truncf %203 : vector<16x32xf32> to vector<16x32xbf16>
    %c0_75 = arith.constant 0 : index
    %c0_76 = arith.constant 0 : index
    %c0_77 = arith.constant 0 : index
    %205 = vector.load %arg2[%c0_75, %c0_76, %c0_77] : memref<1x16x32xf32, #tpu.memory_space<vmem>>, vector<1x16x32xf32>
    %206 = vector.shape_cast %205 : vector<1x16x32xf32> to vector<16x32xf32>
    %c0_78 = arith.constant 0 : index
    %c0_79 = arith.constant 0 : index
    %c0_80 = arith.constant 0 : index
    %207 = vector.load %arg15[%c0_78, %c0_79, %c0_80] : memref<1x3x32xf32, #tpu.memory_space<vmem>>, vector<1x3x32xf32>
    %208 = vector.shape_cast %207 : vector<1x3x32xf32> to vector<3x32xf32>
    %c0_81 = arith.constant 0 : index
    %c0_82 = arith.constant 0 : index
    %c0_83 = arith.constant 0 : index
    %209 = vector.load %arg16[%c0_81, %c0_82, %c0_83] : memref<1x3x32xf32, #tpu.memory_space<vmem>>, vector<1x3x32xf32>
    %210 = vector.shape_cast %209 : vector<1x3x32xf32> to vector<3x32xf32>
    %211 = vector.extract_strided_slice %208 {offsets = [0, 0], sizes = [1, 32], strides = [1, 1]} : vector<3x32xf32> to vector<1x32xf32>
    %212 = vector.shape_cast %211 : vector<1x32xf32> to vector<32xf32>
    %213 = vector.extract_strided_slice %210 {offsets = [0, 0], sizes = [1, 32], strides = [1, 1]} : vector<3x32xf32> to vector<1x32xf32>
    %214 = vector.shape_cast %213 : vector<1x32xf32> to vector<32xf32>
    %cst_84 = arith.constant dense<0.000000e+00> : vector<16xf32>
    %215 = vector.multi_reduction <add>, %206, %cst_84 [1] : vector<16x32xf32> to vector<16xf32>
    %216 = vector.shape_cast %215 : vector<16xf32> to vector<16x1xf32>
    %cst_85 = arith.constant 3.200000e+01 : f32
    %217 = vector.broadcast %cst_85 : f32 to vector<16x1xf32>
    %218 = arith.divf %216, %217 : vector<16x1xf32>
    %219 = vector.broadcast %218 : vector<16x1xf32> to vector<16x32xf32>
    %220 = arith.subf %206, %219 : vector<16x32xf32>
    %221 = arith.mulf %220, %220 : vector<16x32xf32>
    %cst_86 = arith.constant dense<0.000000e+00> : vector<16xf32>
    %222 = vector.multi_reduction <add>, %221, %cst_86 [1] : vector<16x32xf32> to vector<16xf32>
    %223 = vector.shape_cast %222 : vector<16xf32> to vector<16x1xf32>
    %cst_87 = arith.constant 0.0322580636 : f32
    %224 = vector.broadcast %cst_87 : f32 to vector<16x1xf32>
    %225 = arith.mulf %223, %224 : vector<16x1xf32>
    %226 = math.sqrt %225 : vector<16x1xf32>
    %cst_88 = arith.constant 9.99999997E-7 : f32
    %227 = vector.broadcast %cst_88 : f32 to vector<16x1xf32>
    %228 = arith.addf %226, %227 : vector<16x1xf32>
    %229 = tpu.reciprocal %228 : vector<16x1xf32> -> vector<16x1xf32>
    %230 = vector.shape_cast %212 : vector<32xf32> to vector<1x32xf32>
    %231 = vector.broadcast %230 : vector<1x32xf32> to vector<16x32xf32>
    %232 = arith.mulf %231, %220 : vector<16x32xf32>
    %233 = vector.broadcast %229 : vector<16x1xf32> to vector<16x32xf32>
    %234 = arith.mulf %232, %233 : vector<16x32xf32>
    %235 = vector.shape_cast %214 : vector<32xf32> to vector<1x32xf32>
    %236 = vector.broadcast %235 : vector<1x32xf32> to vector<16x32xf32>
    %237 = arith.addf %234, %236 : vector<16x32xf32>
    %c0_89 = arith.constant 0 : index
    %c0_90 = arith.constant 0 : index
    %c0_91 = arith.constant 0 : index
    %238 = vector.load %arg17[%c0_89, %c0_90, %c0_91] : memref<1x32x96xbf16, #tpu.memory_space<vmem>>, vector<1x32x96xbf16>
    %239 = vector.shape_cast %238 : vector<1x32x96xbf16> to vector<32x96xbf16>
    %c0_92 = arith.constant 0 : index
    %c0_93 = arith.constant 0 : index
    %c0_94 = arith.constant 0 : index
    %240 = vector.load %arg18[%c0_92, %c0_93, %c0_94] : memref<1x1x96xf32, #tpu.memory_space<vmem>>, vector<1x1x96xf32>
    %241 = vector.shape_cast %240 : vector<1x1x96xf32> to vector<1x96xf32>
    %c0_95 = arith.constant 0 : index
    %c0_96 = arith.constant 0 : index
    %c0_97 = arith.constant 0 : index
    %242 = vector.load %arg19[%c0_95, %c0_96, %c0_97] : memref<1x32x32xbf16, #tpu.memory_space<vmem>>, vector<1x32x32xbf16>
    %243 = vector.shape_cast %242 : vector<1x32x32xbf16> to vector<32x32xbf16>
    %c0_98 = arith.constant 0 : index
    %c0_99 = arith.constant 0 : index
    %c0_100 = arith.constant 0 : index
    %244 = vector.load %arg20[%c0_98, %c0_99, %c0_100] : memref<1x1x32xf32, #tpu.memory_space<vmem>>, vector<1x1x32xf32>
    %245 = vector.shape_cast %244 : vector<1x1x32xf32> to vector<1x32xf32>
    %246 = arith.truncf %237 : vector<16x32xf32> to vector<16x32xbf16>
    %cst_101 = arith.constant dense<0.000000e+00> : vector<16x96xf32>
    %247 = tpu.matmul %246, %239, %cst_101 {dimension_numbers = #tpu.dot_dimension_numbers<[1], [0], [0], [1], [0, 0, 1, 1], [], []>} : vector<16x32xbf16>, vector<32x96xbf16>, vector<16x96xf32> -> vector<16x96xf32>
    %248 = vector.broadcast %241 : vector<1x96xf32> to vector<16x96xf32>
    %249 = arith.addf %247, %248 : vector<16x96xf32>
    %250 = vector.extract_strided_slice %249 {offsets = [0, 0], sizes = [16, 32], strides = [1, 1]} : vector<16x96xf32> to vector<16x32xf32>
    %251 = vector.extract_strided_slice %249 {offsets = [0, 32], sizes = [16, 32], strides = [1, 1]} : vector<16x96xf32> to vector<16x32xf32>
    %252 = vector.extract_strided_slice %249 {offsets = [0, 64], sizes = [16, 32], strides = [1, 1]} : vector<16x96xf32> to vector<16x32xf32>
    %253 = arith.truncf %250 : vector<16x32xf32> to vector<16x32xbf16>
    %254 = arith.truncf %251 : vector<16x32xf32> to vector<16x32xbf16>
    %255 = arith.truncf %252 : vector<16x32xf32> to vector<16x32xbf16>
    %cst_102 = arith.constant 0.000000e+00 : f32
    %256 = vector.broadcast %cst_102 : f32 to vector<16x32xf32>
    %257 = vector.extract_strided_slice %253 {offsets = [0, 0], sizes = [16, 8], strides = [1, 1]} : vector<16x32xbf16> to vector<16x8xbf16>
    %258 = vector.extract_strided_slice %254 {offsets = [0, 0], sizes = [16, 8], strides = [1, 1]} : vector<16x32xbf16> to vector<16x8xbf16>
    %cst_103 = arith.constant dense<0.000000e+00> : vector<16x16xf32>
    %259 = tpu.matmul %257, %258, %cst_103 {dimension_numbers = #tpu.dot_dimension_numbers<[1], [1], [0], [0], [0, 0, 1, 0], [], []>} : vector<16x8xbf16>, vector<16x8xbf16>, vector<16x16xf32> -> vector<16x16xf32>
    %cst_104 = arith.constant dense<0xFF800000> : vector<16xf32>
    %260 = vector.multi_reduction <maximumf>, %259, %cst_104 [1] : vector<16x16xf32> to vector<16xf32>
    %261 = vector.shape_cast %260 : vector<16xf32> to vector<16x1xf32>
    %262 = vector.broadcast %261 : vector<16x1xf32> to vector<16x16xf32>
    %263 = arith.subf %259, %262 : vector<16x16xf32>
    %264 = math.exp %263 : vector<16x16xf32>
    %cst_105 = arith.constant dense<0.000000e+00> : vector<16xf32>
    %265 = vector.multi_reduction <add>, %264, %cst_105 [1] : vector<16x16xf32> to vector<16xf32>
    %266 = vector.shape_cast %265 : vector<16xf32> to vector<16x1xf32>
    %267 = tpu.reciprocal %266 {approx = true} : vector<16x1xf32> -> vector<16x1xf32>
    %268 = vector.broadcast %267 : vector<16x1xf32> to vector<16x16xf32>
    %269 = arith.mulf %264, %268 : vector<16x16xf32>
    %270 = arith.truncf %269 : vector<16x16xf32> to vector<16x16xbf16>
    %271 = vector.extract_strided_slice %255 {offsets = [0, 0], sizes = [16, 8], strides = [1, 1]} : vector<16x32xbf16> to vector<16x8xbf16>
    %cst_106 = arith.constant dense<0.000000e+00> : vector<16x8xf32>
    %272 = tpu.matmul %270, %271, %cst_106 {dimension_numbers = #tpu.dot_dimension_numbers<[1], [0], [0], [1], [0, 0, 1, 1], [], []>} : vector<16x16xbf16>, vector<16x8xbf16>, vector<16x8xf32> -> vector<16x8xf32>
    %273 = arith.truncf %272 : vector<16x8xf32> to vector<16x8xbf16>
    %274 = vector.extract_strided_slice %243 {offsets = [0, 0], sizes = [8, 32], strides = [1, 1]} : vector<32x32xbf16> to vector<8x32xbf16>
    %cst_107 = arith.constant dense<0.000000e+00> : vector<16x32xf32>
    %275 = tpu.matmul %273, %274, %cst_107 {dimension_numbers = #tpu.dot_dimension_numbers<[1], [0], [0], [1], [0, 0, 1, 1], [], []>} : vector<16x8xbf16>, vector<8x32xbf16>, vector<16x32xf32> -> vector<16x32xf32>
    %276 = arith.addf %256, %275 : vector<16x32xf32>
    %277 = vector.extract_strided_slice %253 {offsets = [0, 8], sizes = [16, 8], strides = [1, 1]} : vector<16x32xbf16> to vector<16x8xbf16>
    %278 = vector.extract_strided_slice %254 {offsets = [0, 8], sizes = [16, 8], strides = [1, 1]} : vector<16x32xbf16> to vector<16x8xbf16>
    %cst_108 = arith.constant dense<0.000000e+00> : vector<16x16xf32>
    %279 = tpu.matmul %277, %278, %cst_108 {dimension_numbers = #tpu.dot_dimension_numbers<[1], [1], [0], [0], [0, 0, 1, 0], [], []>} : vector<16x8xbf16>, vector<16x8xbf16>, vector<16x16xf32> -> vector<16x16xf32>
    %cst_109 = arith.constant dense<0xFF800000> : vector<16xf32>
    %280 = vector.multi_reduction <maximumf>, %279, %cst_109 [1] : vector<16x16xf32> to vector<16xf32>
    %281 = vector.shape_cast %280 : vector<16xf32> to vector<16x1xf32>
    %282 = vector.broadcast %281 : vector<16x1xf32> to vector<16x16xf32>
    %283 = arith.subf %279, %282 : vector<16x16xf32>
    %284 = math.exp %283 : vector<16x16xf32>
    %cst_110 = arith.constant dense<0.000000e+00> : vector<16xf32>
    %285 = vector.multi_reduction <add>, %284, %cst_110 [1] : vector<16x16xf32> to vector<16xf32>
    %286 = vector.shape_cast %285 : vector<16xf32> to vector<16x1xf32>
    %287 = tpu.reciprocal %286 {approx = true} : vector<16x1xf32> -> vector<16x1xf32>
    %288 = vector.broadcast %287 : vector<16x1xf32> to vector<16x16xf32>
    %289 = arith.mulf %284, %288 : vector<16x16xf32>
    %290 = arith.truncf %289 : vector<16x16xf32> to vector<16x16xbf16>
    %291 = vector.extract_strided_slice %255 {offsets = [0, 8], sizes = [16, 8], strides = [1, 1]} : vector<16x32xbf16> to vector<16x8xbf16>
    %cst_111 = arith.constant dense<0.000000e+00> : vector<16x8xf32>
    %292 = tpu.matmul %290, %291, %cst_111 {dimension_numbers = #tpu.dot_dimension_numbers<[1], [0], [0], [1], [0, 0, 1, 1], [], []>} : vector<16x16xbf16>, vector<16x8xbf16>, vector<16x8xf32> -> vector<16x8xf32>
    %293 = arith.truncf %292 : vector<16x8xf32> to vector<16x8xbf16>
    %294 = vector.extract_strided_slice %243 {offsets = [8, 0], sizes = [8, 32], strides = [1, 1]} : vector<32x32xbf16> to vector<8x32xbf16>
    %cst_112 = arith.constant dense<0.000000e+00> : vector<16x32xf32>
    %295 = tpu.matmul %293, %294, %cst_112 {dimension_numbers = #tpu.dot_dimension_numbers<[1], [0], [0], [1], [0, 0, 1, 1], [], []>} : vector<16x8xbf16>, vector<8x32xbf16>, vector<16x32xf32> -> vector<16x32xf32>
    %296 = arith.addf %276, %295 : vector<16x32xf32>
    %297 = vector.extract_strided_slice %253 {offsets = [0, 16], sizes = [16, 8], strides = [1, 1]} : vector<16x32xbf16> to vector<16x8xbf16>
    %298 = vector.extract_strided_slice %254 {offsets = [0, 16], sizes = [16, 8], strides = [1, 1]} : vector<16x32xbf16> to vector<16x8xbf16>
    %cst_113 = arith.constant dense<0.000000e+00> : vector<16x16xf32>
    %299 = tpu.matmul %297, %298, %cst_113 {dimension_numbers = #tpu.dot_dimension_numbers<[1], [1], [0], [0], [0, 0, 1, 0], [], []>} : vector<16x8xbf16>, vector<16x8xbf16>, vector<16x16xf32> -> vector<16x16xf32>
    %cst_114 = arith.constant dense<0xFF800000> : vector<16xf32>
    %300 = vector.multi_reduction <maximumf>, %299, %cst_114 [1] : vector<16x16xf32> to vector<16xf32>
    %301 = vector.shape_cast %300 : vector<16xf32> to vector<16x1xf32>
    %302 = vector.broadcast %301 : vector<16x1xf32> to vector<16x16xf32>
    %303 = arith.subf %299, %302 : vector<16x16xf32>
    %304 = math.exp %303 : vector<16x16xf32>
    %cst_115 = arith.constant dense<0.000000e+00> : vector<16xf32>
    %305 = vector.multi_reduction <add>, %304, %cst_115 [1] : vector<16x16xf32> to vector<16xf32>
    %306 = vector.shape_cast %305 : vector<16xf32> to vector<16x1xf32>
    %307 = tpu.reciprocal %306 {approx = true} : vector<16x1xf32> -> vector<16x1xf32>
    %308 = vector.broadcast %307 : vector<16x1xf32> to vector<16x16xf32>
    %309 = arith.mulf %304, %308 : vector<16x16xf32>
    %310 = arith.truncf %309 : vector<16x16xf32> to vector<16x16xbf16>
    %311 = vector.extract_strided_slice %255 {offsets = [0, 16], sizes = [16, 8], strides = [1, 1]} : vector<16x32xbf16> to vector<16x8xbf16>
    %cst_116 = arith.constant dense<0.000000e+00> : vector<16x8xf32>
    %312 = tpu.matmul %310, %311, %cst_116 {dimension_numbers = #tpu.dot_dimension_numbers<[1], [0], [0], [1], [0, 0, 1, 1], [], []>} : vector<16x16xbf16>, vector<16x8xbf16>, vector<16x8xf32> -> vector<16x8xf32>
    %313 = arith.truncf %312 : vector<16x8xf32> to vector<16x8xbf16>
    %314 = vector.extract_strided_slice %243 {offsets = [16, 0], sizes = [8, 32], strides = [1, 1]} : vector<32x32xbf16> to vector<8x32xbf16>
    %cst_117 = arith.constant dense<0.000000e+00> : vector<16x32xf32>
    %315 = tpu.matmul %313, %314, %cst_117 {dimension_numbers = #tpu.dot_dimension_numbers<[1], [0], [0], [1], [0, 0, 1, 1], [], []>} : vector<16x8xbf16>, vector<8x32xbf16>, vector<16x32xf32> -> vector<16x32xf32>
    %316 = arith.addf %296, %315 : vector<16x32xf32>
    %317 = vector.extract_strided_slice %253 {offsets = [0, 24], sizes = [16, 8], strides = [1, 1]} : vector<16x32xbf16> to vector<16x8xbf16>
    %318 = vector.extract_strided_slice %254 {offsets = [0, 24], sizes = [16, 8], strides = [1, 1]} : vector<16x32xbf16> to vector<16x8xbf16>
    %cst_118 = arith.constant dense<0.000000e+00> : vector<16x16xf32>
    %319 = tpu.matmul %317, %318, %cst_118 {dimension_numbers = #tpu.dot_dimension_numbers<[1], [1], [0], [0], [0, 0, 1, 0], [], []>} : vector<16x8xbf16>, vector<16x8xbf16>, vector<16x16xf32> -> vector<16x16xf32>
    %cst_119 = arith.constant dense<0xFF800000> : vector<16xf32>
    %320 = vector.multi_reduction <maximumf>, %319, %cst_119 [1] : vector<16x16xf32> to vector<16xf32>
    %321 = vector.shape_cast %320 : vector<16xf32> to vector<16x1xf32>
    %322 = vector.broadcast %321 : vector<16x1xf32> to vector<16x16xf32>
    %323 = arith.subf %319, %322 : vector<16x16xf32>
    %324 = math.exp %323 : vector<16x16xf32>
    %cst_120 = arith.constant dense<0.000000e+00> : vector<16xf32>
    %325 = vector.multi_reduction <add>, %324, %cst_120 [1] : vector<16x16xf32> to vector<16xf32>
    %326 = vector.shape_cast %325 : vector<16xf32> to vector<16x1xf32>
    %327 = tpu.reciprocal %326 {approx = true} : vector<16x1xf32> -> vector<16x1xf32>
    %328 = vector.broadcast %327 : vector<16x1xf32> to vector<16x16xf32>
    %329 = arith.mulf %324, %328 : vector<16x16xf32>
    %330 = arith.truncf %329 : vector<16x16xf32> to vector<16x16xbf16>
    %331 = vector.extract_strided_slice %255 {offsets = [0, 24], sizes = [16, 8], strides = [1, 1]} : vector<16x32xbf16> to vector<16x8xbf16>
    %cst_121 = arith.constant dense<0.000000e+00> : vector<16x8xf32>
    %332 = tpu.matmul %330, %331, %cst_121 {dimension_numbers = #tpu.dot_dimension_numbers<[1], [0], [0], [1], [0, 0, 1, 1], [], []>} : vector<16x16xbf16>, vector<16x8xbf16>, vector<16x8xf32> -> vector<16x8xf32>
    %333 = arith.truncf %332 : vector<16x8xf32> to vector<16x8xbf16>
    %334 = vector.extract_strided_slice %243 {offsets = [24, 0], sizes = [8, 32], strides = [1, 1]} : vector<32x32xbf16> to vector<8x32xbf16>
    %cst_122 = arith.constant dense<0.000000e+00> : vector<16x32xf32>
    %335 = tpu.matmul %333, %334, %cst_122 {dimension_numbers = #tpu.dot_dimension_numbers<[1], [0], [0], [1], [0, 0, 1, 1], [], []>} : vector<16x8xbf16>, vector<8x32xbf16>, vector<16x32xf32> -> vector<16x32xf32>
    %336 = arith.addf %316, %335 : vector<16x32xf32>
    %337 = vector.broadcast %245 : vector<1x32xf32> to vector<16x32xf32>
    %338 = arith.addf %336, %337 : vector<16x32xf32>
    %339 = arith.addf %206, %338 : vector<16x32xf32>
    %340 = vector.extract_strided_slice %208 {offsets = [1, 0], sizes = [1, 32], strides = [1, 1]} : vector<3x32xf32> to vector<1x32xf32>
    %341 = vector.shape_cast %340 : vector<1x32xf32> to vector<32xf32>
    %342 = vector.extract_strided_slice %210 {offsets = [1, 0], sizes = [1, 32], strides = [1, 1]} : vector<3x32xf32> to vector<1x32xf32>
    %343 = vector.shape_cast %342 : vector<1x32xf32> to vector<32xf32>
    %cst_123 = arith.constant dense<0.000000e+00> : vector<16xf32>
    %344 = vector.multi_reduction <add>, %339, %cst_123 [1] : vector<16x32xf32> to vector<16xf32>
    %345 = vector.shape_cast %344 : vector<16xf32> to vector<16x1xf32>
    %cst_124 = arith.constant 3.200000e+01 : f32
    %346 = vector.broadcast %cst_124 : f32 to vector<16x1xf32>
    %347 = arith.divf %345, %346 : vector<16x1xf32>
    %348 = vector.broadcast %347 : vector<16x1xf32> to vector<16x32xf32>
    %349 = arith.subf %339, %348 : vector<16x32xf32>
    %350 = arith.mulf %349, %349 : vector<16x32xf32>
    %cst_125 = arith.constant dense<0.000000e+00> : vector<16xf32>
    %351 = vector.multi_reduction <add>, %350, %cst_125 [1] : vector<16x32xf32> to vector<16xf32>
    %352 = vector.shape_cast %351 : vector<16xf32> to vector<16x1xf32>
    %cst_126 = arith.constant 0.0322580636 : f32
    %353 = vector.broadcast %cst_126 : f32 to vector<16x1xf32>
    %354 = arith.mulf %352, %353 : vector<16x1xf32>
    %355 = math.sqrt %354 : vector<16x1xf32>
    %cst_127 = arith.constant 9.99999997E-7 : f32
    %356 = vector.broadcast %cst_127 : f32 to vector<16x1xf32>
    %357 = arith.addf %355, %356 : vector<16x1xf32>
    %358 = tpu.reciprocal %357 : vector<16x1xf32> -> vector<16x1xf32>
    %359 = vector.shape_cast %341 : vector<32xf32> to vector<1x32xf32>
    %360 = vector.broadcast %359 : vector<1x32xf32> to vector<16x32xf32>
    %361 = arith.mulf %360, %349 : vector<16x32xf32>
    %362 = vector.broadcast %358 : vector<16x1xf32> to vector<16x32xf32>
    %363 = arith.mulf %361, %362 : vector<16x32xf32>
    %364 = vector.shape_cast %343 : vector<32xf32> to vector<1x32xf32>
    %365 = vector.broadcast %364 : vector<1x32xf32> to vector<16x32xf32>
    %366 = arith.addf %363, %365 : vector<16x32xf32>
    %367 = arith.truncf %366 : vector<16x32xf32> to vector<16x32xbf16>
    %c0_128 = arith.constant 0 : index
    %c0_129 = arith.constant 0 : index
    %c0_130 = arith.constant 0 : index
    %368 = vector.load %arg21[%c0_128, %c0_129, %c0_130] : memref<1x32x32xbf16, #tpu.memory_space<vmem>>, vector<1x32x32xbf16>
    %369 = vector.shape_cast %368 : vector<1x32x32xbf16> to vector<32x32xbf16>
    %c0_131 = arith.constant 0 : index
    %c0_132 = arith.constant 0 : index
    %c0_133 = arith.constant 0 : index
    %370 = vector.load %arg22[%c0_131, %c0_132, %c0_133] : memref<1x1x32xf32, #tpu.memory_space<vmem>>, vector<1x1x32xf32>
    %371 = vector.shape_cast %370 : vector<1x1x32xf32> to vector<1x32xf32>
    %cst_134 = arith.constant dense<0.000000e+00> : vector<16x32xf32>
    %372 = tpu.matmul %367, %369, %cst_134 {dimension_numbers = #tpu.dot_dimension_numbers<[1], [0], [0], [1], [0, 0, 1, 1], [], []>} : vector<16x32xbf16>, vector<32x32xbf16>, vector<16x32xf32> -> vector<16x32xf32>
    %373 = vector.broadcast %371 : vector<1x32xf32> to vector<16x32xf32>
    %374 = arith.addf %372, %373 : vector<16x32xf32>
    %c0_135 = arith.constant 0 : index
    %c0_136 = arith.constant 0 : index
    %c0_137 = arith.constant 0 : index
    %375 = vector.load %arg23[%c0_135, %c0_136, %c0_137] : memref<1x32x64xbf16, #tpu.memory_space<vmem>>, vector<1x32x64xbf16>
    %376 = vector.shape_cast %375 : vector<1x32x64xbf16> to vector<32x64xbf16>
    %c0_138 = arith.constant 0 : index
    %c0_139 = arith.constant 0 : index
    %c0_140 = arith.constant 0 : index
    %377 = vector.load %arg24[%c0_138, %c0_139, %c0_140] : memref<1x1x64xf32, #tpu.memory_space<vmem>>, vector<1x1x64xf32>
    %378 = vector.shape_cast %377 : vector<1x1x64xf32> to vector<1x64xf32>
    %cst_141 = arith.constant dense<0.000000e+00> : vector<16x64xf32>
    %379 = tpu.matmul %204, %376, %cst_141 {dimension_numbers = #tpu.dot_dimension_numbers<[1], [0], [0], [1], [0, 0, 1, 1], [], []>} : vector<16x32xbf16>, vector<32x64xbf16>, vector<16x64xf32> -> vector<16x64xf32>
    %380 = vector.broadcast %378 : vector<1x64xf32> to vector<16x64xf32>
    %381 = arith.addf %379, %380 : vector<16x64xf32>
    %382 = vector.extract_strided_slice %381 {offsets = [0, 0], sizes = [16, 32], strides = [1, 1]} : vector<16x64xf32> to vector<16x32xf32>
    %383 = vector.extract_strided_slice %381 {offsets = [0, 32], sizes = [16, 32], strides = [1, 1]} : vector<16x64xf32> to vector<16x32xf32>
    %c0_142 = arith.constant 0 : index
    %c0_143 = arith.constant 0 : index
    %c0_144 = arith.constant 0 : index
    %384 = vector.load %arg25[%c0_142, %c0_143, %c0_144] : memref<1x32x32xbf16, #tpu.memory_space<vmem>>, vector<1x32x32xbf16>
    %385 = vector.shape_cast %384 : vector<1x32x32xbf16> to vector<32x32xbf16>
    %c0_145 = arith.constant 0 : index
    %c0_146 = arith.constant 0 : index
    %c0_147 = arith.constant 0 : index
    %386 = vector.load %arg26[%c0_145, %c0_146, %c0_147] : memref<1x1x32xf32, #tpu.memory_space<vmem>>, vector<1x1x32xf32>
    %387 = vector.shape_cast %386 : vector<1x1x32xf32> to vector<1x32xf32>
    %388 = arith.truncf %374 : vector<16x32xf32> to vector<16x32xbf16>
    %389 = arith.truncf %382 : vector<16x32xf32> to vector<16x32xbf16>
    %390 = arith.truncf %383 : vector<16x32xf32> to vector<16x32xbf16>
    %cst_148 = arith.constant 0.000000e+00 : f32
    %391 = vector.broadcast %cst_148 : f32 to vector<16x32xf32>
    %392 = vector.extract_strided_slice %388 {offsets = [0, 0], sizes = [16, 8], strides = [1, 1]} : vector<16x32xbf16> to vector<16x8xbf16>
    %393 = vector.extract_strided_slice %389 {offsets = [0, 0], sizes = [16, 8], strides = [1, 1]} : vector<16x32xbf16> to vector<16x8xbf16>
    %cst_149 = arith.constant dense<0.000000e+00> : vector<16x16xf32>
    %394 = tpu.matmul %392, %393, %cst_149 {dimension_numbers = #tpu.dot_dimension_numbers<[1], [1], [0], [0], [0, 0, 1, 0], [], []>} : vector<16x8xbf16>, vector<16x8xbf16>, vector<16x16xf32> -> vector<16x16xf32>
    %cst_150 = arith.constant dense<0xFF800000> : vector<16xf32>
    %395 = vector.multi_reduction <maximumf>, %394, %cst_150 [1] : vector<16x16xf32> to vector<16xf32>
    %396 = vector.shape_cast %395 : vector<16xf32> to vector<16x1xf32>
    %397 = vector.broadcast %396 : vector<16x1xf32> to vector<16x16xf32>
    %398 = arith.subf %394, %397 : vector<16x16xf32>
    %399 = math.exp %398 : vector<16x16xf32>
    %cst_151 = arith.constant dense<0.000000e+00> : vector<16xf32>
    %400 = vector.multi_reduction <add>, %399, %cst_151 [1] : vector<16x16xf32> to vector<16xf32>
    %401 = vector.shape_cast %400 : vector<16xf32> to vector<16x1xf32>
    %402 = tpu.reciprocal %401 {approx = true} : vector<16x1xf32> -> vector<16x1xf32>
    %403 = vector.broadcast %402 : vector<16x1xf32> to vector<16x16xf32>
    %404 = arith.mulf %399, %403 : vector<16x16xf32>
    %405 = arith.truncf %404 : vector<16x16xf32> to vector<16x16xbf16>
    %406 = vector.extract_strided_slice %390 {offsets = [0, 0], sizes = [16, 8], strides = [1, 1]} : vector<16x32xbf16> to vector<16x8xbf16>
    %cst_152 = arith.constant dense<0.000000e+00> : vector<16x8xf32>
    %407 = tpu.matmul %405, %406, %cst_152 {dimension_numbers = #tpu.dot_dimension_numbers<[1], [0], [0], [1], [0, 0, 1, 1], [], []>} : vector<16x16xbf16>, vector<16x8xbf16>, vector<16x8xf32> -> vector<16x8xf32>
    %408 = arith.truncf %407 : vector<16x8xf32> to vector<16x8xbf16>
    %409 = vector.extract_strided_slice %385 {offsets = [0, 0], sizes = [8, 32], strides = [1, 1]} : vector<32x32xbf16> to vector<8x32xbf16>
    %cst_153 = arith.constant dense<0.000000e+00> : vector<16x32xf32>
    %410 = tpu.matmul %408, %409, %cst_153 {dimension_numbers = #tpu.dot_dimension_numbers<[1], [0], [0], [1], [0, 0, 1, 1], [], []>} : vector<16x8xbf16>, vector<8x32xbf16>, vector<16x32xf32> -> vector<16x32xf32>
    %411 = arith.addf %391, %410 : vector<16x32xf32>
    %412 = vector.extract_strided_slice %388 {offsets = [0, 8], sizes = [16, 8], strides = [1, 1]} : vector<16x32xbf16> to vector<16x8xbf16>
    %413 = vector.extract_strided_slice %389 {offsets = [0, 8], sizes = [16, 8], strides = [1, 1]} : vector<16x32xbf16> to vector<16x8xbf16>
    %cst_154 = arith.constant dense<0.000000e+00> : vector<16x16xf32>
    %414 = tpu.matmul %412, %413, %cst_154 {dimension_numbers = #tpu.dot_dimension_numbers<[1], [1], [0], [0], [0, 0, 1, 0], [], []>} : vector<16x8xbf16>, vector<16x8xbf16>, vector<16x16xf32> -> vector<16x16xf32>
    %cst_155 = arith.constant dense<0xFF800000> : vector<16xf32>
    %415 = vector.multi_reduction <maximumf>, %414, %cst_155 [1] : vector<16x16xf32> to vector<16xf32>
    %416 = vector.shape_cast %415 : vector<16xf32> to vector<16x1xf32>
    %417 = vector.broadcast %416 : vector<16x1xf32> to vector<16x16xf32>
    %418 = arith.subf %414, %417 : vector<16x16xf32>
    %419 = math.exp %418 : vector<16x16xf32>
    %cst_156 = arith.constant dense<0.000000e+00> : vector<16xf32>
    %420 = vector.multi_reduction <add>, %419, %cst_156 [1] : vector<16x16xf32> to vector<16xf32>
    %421 = vector.shape_cast %420 : vector<16xf32> to vector<16x1xf32>
    %422 = tpu.reciprocal %421 {approx = true} : vector<16x1xf32> -> vector<16x1xf32>
    %423 = vector.broadcast %422 : vector<16x1xf32> to vector<16x16xf32>
    %424 = arith.mulf %419, %423 : vector<16x16xf32>
    %425 = arith.truncf %424 : vector<16x16xf32> to vector<16x16xbf16>
    %426 = vector.extract_strided_slice %390 {offsets = [0, 8], sizes = [16, 8], strides = [1, 1]} : vector<16x32xbf16> to vector<16x8xbf16>
    %cst_157 = arith.constant dense<0.000000e+00> : vector<16x8xf32>
    %427 = tpu.matmul %425, %426, %cst_157 {dimension_numbers = #tpu.dot_dimension_numbers<[1], [0], [0], [1], [0, 0, 1, 1], [], []>} : vector<16x16xbf16>, vector<16x8xbf16>, vector<16x8xf32> -> vector<16x8xf32>
    %428 = arith.truncf %427 : vector<16x8xf32> to vector<16x8xbf16>
    %429 = vector.extract_strided_slice %385 {offsets = [8, 0], sizes = [8, 32], strides = [1, 1]} : vector<32x32xbf16> to vector<8x32xbf16>
    %cst_158 = arith.constant dense<0.000000e+00> : vector<16x32xf32>
    %430 = tpu.matmul %428, %429, %cst_158 {dimension_numbers = #tpu.dot_dimension_numbers<[1], [0], [0], [1], [0, 0, 1, 1], [], []>} : vector<16x8xbf16>, vector<8x32xbf16>, vector<16x32xf32> -> vector<16x32xf32>
    %431 = arith.addf %411, %430 : vector<16x32xf32>
    %432 = vector.extract_strided_slice %388 {offsets = [0, 16], sizes = [16, 8], strides = [1, 1]} : vector<16x32xbf16> to vector<16x8xbf16>
    %433 = vector.extract_strided_slice %389 {offsets = [0, 16], sizes = [16, 8], strides = [1, 1]} : vector<16x32xbf16> to vector<16x8xbf16>
    %cst_159 = arith.constant dense<0.000000e+00> : vector<16x16xf32>
    %434 = tpu.matmul %432, %433, %cst_159 {dimension_numbers = #tpu.dot_dimension_numbers<[1], [1], [0], [0], [0, 0, 1, 0], [], []>} : vector<16x8xbf16>, vector<16x8xbf16>, vector<16x16xf32> -> vector<16x16xf32>
    %cst_160 = arith.constant dense<0xFF800000> : vector<16xf32>
    %435 = vector.multi_reduction <maximumf>, %434, %cst_160 [1] : vector<16x16xf32> to vector<16xf32>
    %436 = vector.shape_cast %435 : vector<16xf32> to vector<16x1xf32>
    %437 = vector.broadcast %436 : vector<16x1xf32> to vector<16x16xf32>
    %438 = arith.subf %434, %437 : vector<16x16xf32>
    %439 = math.exp %438 : vector<16x16xf32>
    %cst_161 = arith.constant dense<0.000000e+00> : vector<16xf32>
    %440 = vector.multi_reduction <add>, %439, %cst_161 [1] : vector<16x16xf32> to vector<16xf32>
    %441 = vector.shape_cast %440 : vector<16xf32> to vector<16x1xf32>
    %442 = tpu.reciprocal %441 {approx = true} : vector<16x1xf32> -> vector<16x1xf32>
    %443 = vector.broadcast %442 : vector<16x1xf32> to vector<16x16xf32>
    %444 = arith.mulf %439, %443 : vector<16x16xf32>
    %445 = arith.truncf %444 : vector<16x16xf32> to vector<16x16xbf16>
    %446 = vector.extract_strided_slice %390 {offsets = [0, 16], sizes = [16, 8], strides = [1, 1]} : vector<16x32xbf16> to vector<16x8xbf16>
    %cst_162 = arith.constant dense<0.000000e+00> : vector<16x8xf32>
    %447 = tpu.matmul %445, %446, %cst_162 {dimension_numbers = #tpu.dot_dimension_numbers<[1], [0], [0], [1], [0, 0, 1, 1], [], []>} : vector<16x16xbf16>, vector<16x8xbf16>, vector<16x8xf32> -> vector<16x8xf32>
    %448 = arith.truncf %447 : vector<16x8xf32> to vector<16x8xbf16>
    %449 = vector.extract_strided_slice %385 {offsets = [16, 0], sizes = [8, 32], strides = [1, 1]} : vector<32x32xbf16> to vector<8x32xbf16>
    %cst_163 = arith.constant dense<0.000000e+00> : vector<16x32xf32>
    %450 = tpu.matmul %448, %449, %cst_163 {dimension_numbers = #tpu.dot_dimension_numbers<[1], [0], [0], [1], [0, 0, 1, 1], [], []>} : vector<16x8xbf16>, vector<8x32xbf16>, vector<16x32xf32> -> vector<16x32xf32>
    %451 = arith.addf %431, %450 : vector<16x32xf32>
    %452 = vector.extract_strided_slice %388 {offsets = [0, 24], sizes = [16, 8], strides = [1, 1]} : vector<16x32xbf16> to vector<16x8xbf16>
    %453 = vector.extract_strided_slice %389 {offsets = [0, 24], sizes = [16, 8], strides = [1, 1]} : vector<16x32xbf16> to vector<16x8xbf16>
    %cst_164 = arith.constant dense<0.000000e+00> : vector<16x16xf32>
    %454 = tpu.matmul %452, %453, %cst_164 {dimension_numbers = #tpu.dot_dimension_numbers<[1], [1], [0], [0], [0, 0, 1, 0], [], []>} : vector<16x8xbf16>, vector<16x8xbf16>, vector<16x16xf32> -> vector<16x16xf32>
    %cst_165 = arith.constant dense<0xFF800000> : vector<16xf32>
    %455 = vector.multi_reduction <maximumf>, %454, %cst_165 [1] : vector<16x16xf32> to vector<16xf32>
    %456 = vector.shape_cast %455 : vector<16xf32> to vector<16x1xf32>
    %457 = vector.broadcast %456 : vector<16x1xf32> to vector<16x16xf32>
    %458 = arith.subf %454, %457 : vector<16x16xf32>
    %459 = math.exp %458 : vector<16x16xf32>
    %cst_166 = arith.constant dense<0.000000e+00> : vector<16xf32>
    %460 = vector.multi_reduction <add>, %459, %cst_166 [1] : vector<16x16xf32> to vector<16xf32>
    %461 = vector.shape_cast %460 : vector<16xf32> to vector<16x1xf32>
    %462 = tpu.reciprocal %461 {approx = true} : vector<16x1xf32> -> vector<16x1xf32>
    %463 = vector.broadcast %462 : vector<16x1xf32> to vector<16x16xf32>
    %464 = arith.mulf %459, %463 : vector<16x16xf32>
    %465 = arith.truncf %464 : vector<16x16xf32> to vector<16x16xbf16>
    %466 = vector.extract_strided_slice %390 {offsets = [0, 24], sizes = [16, 8], strides = [1, 1]} : vector<16x32xbf16> to vector<16x8xbf16>
    %cst_167 = arith.constant dense<0.000000e+00> : vector<16x8xf32>
    %467 = tpu.matmul %465, %466, %cst_167 {dimension_numbers = #tpu.dot_dimension_numbers<[1], [0], [0], [1], [0, 0, 1, 1], [], []>} : vector<16x16xbf16>, vector<16x8xbf16>, vector<16x8xf32> -> vector<16x8xf32>
    %468 = arith.truncf %467 : vector<16x8xf32> to vector<16x8xbf16>
    %469 = vector.extract_strided_slice %385 {offsets = [24, 0], sizes = [8, 32], strides = [1, 1]} : vector<32x32xbf16> to vector<8x32xbf16>
    %cst_168 = arith.constant dense<0.000000e+00> : vector<16x32xf32>
    %470 = tpu.matmul %468, %469, %cst_168 {dimension_numbers = #tpu.dot_dimension_numbers<[1], [0], [0], [1], [0, 0, 1, 1], [], []>} : vector<16x8xbf16>, vector<8x32xbf16>, vector<16x32xf32> -> vector<16x32xf32>
    %471 = arith.addf %451, %470 : vector<16x32xf32>
    %472 = vector.broadcast %387 : vector<1x32xf32> to vector<16x32xf32>
    %473 = arith.addf %471, %472 : vector<16x32xf32>
    %474 = arith.addf %339, %473 : vector<16x32xf32>
    %475 = vector.extract_strided_slice %208 {offsets = [2, 0], sizes = [1, 32], strides = [1, 1]} : vector<3x32xf32> to vector<1x32xf32>
    %476 = vector.shape_cast %475 : vector<1x32xf32> to vector<32xf32>
    %477 = vector.extract_strided_slice %210 {offsets = [2, 0], sizes = [1, 32], strides = [1, 1]} : vector<3x32xf32> to vector<1x32xf32>
    %478 = vector.shape_cast %477 : vector<1x32xf32> to vector<32xf32>
    %cst_169 = arith.constant dense<0.000000e+00> : vector<16xf32>
    %479 = vector.multi_reduction <add>, %474, %cst_169 [1] : vector<16x32xf32> to vector<16xf32>
    %480 = vector.shape_cast %479 : vector<16xf32> to vector<16x1xf32>
    %cst_170 = arith.constant 3.200000e+01 : f32
    %481 = vector.broadcast %cst_170 : f32 to vector<16x1xf32>
    %482 = arith.divf %480, %481 : vector<16x1xf32>
    %483 = vector.broadcast %482 : vector<16x1xf32> to vector<16x32xf32>
    %484 = arith.subf %474, %483 : vector<16x32xf32>
    %485 = arith.mulf %484, %484 : vector<16x32xf32>
    %cst_171 = arith.constant dense<0.000000e+00> : vector<16xf32>
    %486 = vector.multi_reduction <add>, %485, %cst_171 [1] : vector<16x32xf32> to vector<16xf32>
    %487 = vector.shape_cast %486 : vector<16xf32> to vector<16x1xf32>
    %cst_172 = arith.constant 0.0322580636 : f32
    %488 = vector.broadcast %cst_172 : f32 to vector<16x1xf32>
    %489 = arith.mulf %487, %488 : vector<16x1xf32>
    %490 = math.sqrt %489 : vector<16x1xf32>
    %cst_173 = arith.constant 9.99999997E-7 : f32
    %491 = vector.broadcast %cst_173 : f32 to vector<16x1xf32>
    %492 = arith.addf %490, %491 : vector<16x1xf32>
    %493 = tpu.reciprocal %492 : vector<16x1xf32> -> vector<16x1xf32>
    %494 = vector.shape_cast %476 : vector<32xf32> to vector<1x32xf32>
    %495 = vector.broadcast %494 : vector<1x32xf32> to vector<16x32xf32>
    %496 = arith.mulf %495, %484 : vector<16x32xf32>
    %497 = vector.broadcast %493 : vector<16x1xf32> to vector<16x32xf32>
    %498 = arith.mulf %496, %497 : vector<16x32xf32>
    %499 = vector.shape_cast %478 : vector<32xf32> to vector<1x32xf32>
    %500 = vector.broadcast %499 : vector<1x32xf32> to vector<16x32xf32>
    %501 = arith.addf %498, %500 : vector<16x32xf32>
    %c0_174 = arith.constant 0 : index
    %c0_175 = arith.constant 0 : index
    %c0_176 = arith.constant 0 : index
    %502 = vector.load %arg27[%c0_174, %c0_175, %c0_176] : memref<1x32x64xbf16, #tpu.memory_space<vmem>>, vector<1x32x64xbf16>
    %503 = vector.shape_cast %502 : vector<1x32x64xbf16> to vector<32x64xbf16>
    %c0_177 = arith.constant 0 : index
    %c0_178 = arith.constant 0 : index
    %c0_179 = arith.constant 0 : index
    %504 = vector.load %arg28[%c0_177, %c0_178, %c0_179] : memref<1x1x64xf32, #tpu.memory_space<vmem>>, vector<1x1x64xf32>
    %505 = vector.shape_cast %504 : vector<1x1x64xf32> to vector<1x64xf32>
    %c0_180 = arith.constant 0 : index
    %c0_181 = arith.constant 0 : index
    %c0_182 = arith.constant 0 : index
    %506 = vector.load %arg29[%c0_180, %c0_181, %c0_182] : memref<1x64x32xbf16, #tpu.memory_space<vmem>>, vector<1x64x32xbf16>
    %507 = vector.shape_cast %506 : vector<1x64x32xbf16> to vector<64x32xbf16>
    %c0_183 = arith.constant 0 : index
    %c0_184 = arith.constant 0 : index
    %c0_185 = arith.constant 0 : index
    %508 = vector.load %arg30[%c0_183, %c0_184, %c0_185] : memref<1x1x32xf32, #tpu.memory_space<vmem>>, vector<1x1x32xf32>
    %509 = vector.shape_cast %508 : vector<1x1x32xf32> to vector<1x32xf32>
    %510 = arith.truncf %501 : vector<16x32xf32> to vector<16x32xbf16>
    %cst_186 = arith.constant dense<0.000000e+00> : vector<16x64xf32>
    %511 = tpu.matmul %510, %503, %cst_186 {dimension_numbers = #tpu.dot_dimension_numbers<[1], [0], [0], [1], [0, 0, 1, 1], [], []>} : vector<16x32xbf16>, vector<32x64xbf16>, vector<16x64xf32> -> vector<16x64xf32>
    %512 = vector.broadcast %505 : vector<1x64xf32> to vector<16x64xf32>
    %513 = arith.addf %511, %512 : vector<16x64xf32>
    %cst_187 = arith.constant 0.000000e+00 : f32
    %514 = vector.broadcast %cst_187 : f32 to vector<16x64xf32>
    %515 = arith.maximumf %513, %514 : vector<16x64xf32>
    %516 = arith.truncf %515 : vector<16x64xf32> to vector<16x64xbf16>
    %cst_188 = arith.constant dense<0.000000e+00> : vector<16x32xf32>
    %517 = tpu.matmul %516, %507, %cst_188 {dimension_numbers = #tpu.dot_dimension_numbers<[1], [0], [0], [1], [0, 0, 1, 1], [], []>} : vector<16x64xbf16>, vector<64x32xbf16>, vector<16x32xf32> -> vector<16x32xf32>
    %518 = vector.broadcast %509 : vector<1x32xf32> to vector<16x32xf32>
    %519 = arith.addf %517, %518 : vector<16x32xf32>
    %520 = arith.addf %474, %519 : vector<16x32xf32>
    %c0_189 = arith.constant 0 : index
    %c0_190 = arith.constant 0 : index
    %521 = vector.load %arg31[%c0_189, %c0_190] : memref<1x32xf32, #tpu.memory_space<vmem>>, vector<1x32xf32>
    %c0_191 = arith.constant 0 : index
    %c0_192 = arith.constant 0 : index
    %522 = vector.load %arg32[%c0_191, %c0_192] : memref<1x32xf32, #tpu.memory_space<vmem>>, vector<1x32xf32>
    %cst_193 = arith.constant dense<0.000000e+00> : vector<16xf32>
    %523 = vector.multi_reduction <add>, %520, %cst_193 [1] : vector<16x32xf32> to vector<16xf32>
    %524 = vector.shape_cast %523 : vector<16xf32> to vector<16x1xf32>
    %cst_194 = arith.constant 3.200000e+01 : f32
    %525 = vector.broadcast %cst_194 : f32 to vector<16x1xf32>
    %526 = arith.divf %524, %525 : vector<16x1xf32>
    %527 = vector.broadcast %526 : vector<16x1xf32> to vector<16x32xf32>
    %528 = arith.subf %520, %527 : vector<16x32xf32>
    %529 = arith.mulf %528, %528 : vector<16x32xf32>
    %cst_195 = arith.constant dense<0.000000e+00> : vector<16xf32>
    %530 = vector.multi_reduction <add>, %529, %cst_195 [1] : vector<16x32xf32> to vector<16xf32>
    %531 = vector.shape_cast %530 : vector<16xf32> to vector<16x1xf32>
    %cst_196 = arith.constant 0.0322580636 : f32
    %532 = vector.broadcast %cst_196 : f32 to vector<16x1xf32>
    %533 = arith.mulf %531, %532 : vector<16x1xf32>
    %534 = math.sqrt %533 : vector<16x1xf32>
    %cst_197 = arith.constant 9.99999997E-7 : f32
    %535 = vector.broadcast %cst_197 : f32 to vector<16x1xf32>
    %536 = arith.addf %534, %535 : vector<16x1xf32>
    %537 = tpu.reciprocal %536 : vector<16x1xf32> -> vector<16x1xf32>
    %538 = vector.broadcast %521 : vector<1x32xf32> to vector<16x32xf32>
    %539 = arith.mulf %538, %528 : vector<16x32xf32>
    %540 = vector.broadcast %537 : vector<16x1xf32> to vector<16x32xf32>
    %541 = arith.mulf %539, %540 : vector<16x32xf32>
    %542 = vector.broadcast %522 : vector<1x32xf32> to vector<16x32xf32>
    %543 = arith.addf %541, %542 : vector<16x32xf32>
    %c0_198 = arith.constant 0 : index
    %c0_199 = arith.constant 0 : index
    %c0_200 = arith.constant 0 : index
    %544 = vector.load %arg33[%c0_198, %c0_199, %c0_200] : memref<1x16x32xf32, #tpu.memory_space<vmem>>, vector<1x16x32xf32>
    %545 = vector.shape_cast %544 : vector<1x16x32xf32> to vector<16x32xf32>
    %546 = vector.shape_cast %543 : vector<16x32xf32> to vector<1x16x32xf32>
    tpu.vector_store %arg33[%c0_198, %c0_199, %c0_200], %546 {strides = array<i32>} : memref<1x16x32xf32, #tpu.memory_space<vmem>>, vector<1x16x32xf32>,
    return
  }
  func.func @transform_0(%arg0: i32) -> (i32, i32, i32) {
    %c0_i32 = arith.constant 0 : i32
    %c0_i32_0 = arith.constant 0 : i32
    %c0_i32_1 = arith.constant 0 : i32
    return %arg0, %c0_i32, %c0_i32_0 : i32, i32, i32
  }
  func.func @transform_1(%arg0: i32) -> (i32, i32, i32) {
    %c0_i32 = arith.constant 0 : i32
    %c0_i32_0 = arith.constant 0 : i32
    %c0_i32_1 = arith.constant 0 : i32
    return %arg0, %c0_i32, %c0_i32_0 : i32, i32, i32
  }
  func.func @transform_2(%arg0: i32) -> (i32, i32, i32) {
    %c0_i32 = arith.constant 0 : i32
    %c0_i32_0 = arith.constant 0 : i32
    %c0_i32_1 = arith.constant 0 : i32
    %c0_i32_2 = arith.constant 0 : i32
    return %c0_i32, %c0_i32_0, %c0_i32_1 : i32, i32, i32
  }
  func.func @transform_3(%arg0: i32) -> (i32, i32, i32) {
    %c0_i32 = arith.constant 0 : i32
    %c0_i32_0 = arith.constant 0 : i32
    %c0_i32_1 = arith.constant 0 : i32
    %c0_i32_2 = arith.constant 0 : i32
    return %c0_i32, %c0_i32_0, %c0_i32_1 : i32, i32, i32
  }
  func.func @transform_4(%arg0: i32) -> (i32, i32, i32) {
    %c0_i32 = arith.constant 0 : i32
    %c0_i32_0 = arith.constant 0 : i32
    %c0_i32_1 = arith.constant 0 : i32
    %c0_i32_2 = arith.constant 0 : i32
    return %c0_i32, %c0_i32_0, %c0_i32_1 : i32, i32, i32
  }
  func.func @transform_5(%arg0: i32) -> (i32, i32, i32) {
    %c0_i32 = arith.constant 0 : i32
    %c0_i32_0 = arith.constant 0 : i32
    %c0_i32_1 = arith.constant 0 : i32
    %c0_i32_2 = arith.constant 0 : i32
    return %c0_i32, %c0_i32_0, %c0_i32_1 : i32, i32, i32
  }
  func.func @transform_6(%arg0: i32) -> (i32, i32, i32) {
    %c0_i32 = arith.constant 0 : i32
    %c0_i32_0 = arith.constant 0 : i32
    %c0_i32_1 = arith.constant 0 : i32
    %c0_i32_2 = arith.constant 0 : i32
    return %c0_i32, %c0_i32_0, %c0_i32_1 : i32, i32, i32
  }
  func.func @transform_7(%arg0: i32) -> (i32, i32, i32) {
    %c0_i32 = arith.constant 0 : i32
    %c0_i32_0 = arith.constant 0 : i32
    %c0_i32_1 = arith.constant 0 : i32
    %c0_i32_2 = arith.constant 0 : i32
    return %c0_i32, %c0_i32_0, %c0_i32_1 : i32, i32, i32
  }
  func.func @transform_8(%arg0: i32) -> (i32, i32, i32) {
    %c0_i32 = arith.constant 0 : i32
    %c0_i32_0 = arith.constant 0 : i32
    %c0_i32_1 = arith.constant 0 : i32
    %c0_i32_2 = arith.constant 0 : i32
    return %c0_i32, %c0_i32_0, %c0_i32_1 : i32, i32, i32
  }
  func.func @transform_9(%arg0: i32) -> (i32, i32, i32) {
    %c0_i32 = arith.constant 0 : i32
    %c0_i32_0 = arith.constant 0 : i32
    %c0_i32_1 = arith.constant 0 : i32
    %c0_i32_2 = arith.constant 0 : i32
    return %c0_i32, %c0_i32_0, %c0_i32_1 : i32, i32, i32
  }
  func.func @transform_10(%arg0: i32) -> (i32, i32, i32) {
    %c0_i32 = arith.constant 0 : i32
    %c0_i32_0 = arith.constant 0 : i32
    %c0_i32_1 = arith.constant 0 : i32
    %c0_i32_2 = arith.constant 0 : i32
    return %c0_i32, %c0_i32_0, %c0_i32_1 : i32, i32, i32
  }
  func.func @transform_11(%arg0: i32) -> (i32, i32, i32) {
    %c0_i32 = arith.constant 0 : i32
    %c0_i32_0 = arith.constant 0 : i32
    %c0_i32_1 = arith.constant 0 : i32
    %c0_i32_2 = arith.constant 0 : i32
    return %c0_i32, %c0_i32_0, %c0_i32_1 : i32, i32, i32
  }
  func.func @transform_12(%arg0: i32) -> (i32, i32) {
    %c0_i32 = arith.constant 0 : i32
    %c0_i32_0 = arith.constant 0 : i32
    %c0_i32_1 = arith.constant 0 : i32
    return %c0_i32, %c0_i32_0 : i32, i32
  }
  func.func @transform_13(%arg0: i32) -> (i32, i32) {
    %c0_i32 = arith.constant 0 : i32
    %c0_i32_0 = arith.constant 0 : i32
    %c0_i32_1 = arith.constant 0 : i32
    return %c0_i32, %c0_i32_0 : i32, i32
  }
  func.func @transform_14(%arg0: i32) -> (i32, i32, i32) {
    %c0_i32 = arith.constant 0 : i32
    %c0_i32_0 = arith.constant 0 : i32
    %c0_i32_1 = arith.constant 0 : i32
    %c0_i32_2 = arith.constant 0 : i32
    return %c0_i32, %c0_i32_0, %c0_i32_1 : i32, i32, i32
  }
  func.func @transform_15(%arg0: i32) -> (i32, i32, i32) {
    %c0_i32 = arith.constant 0 : i32
    %c0_i32_0 = arith.constant 0 : i32
    %c0_i32_1 = arith.constant 0 : i32
    %c0_i32_2 = arith.constant 0 : i32
    return %c0_i32, %c0_i32_0, %c0_i32_1 : i32, i32, i32
  }
  func.func @transform_16(%arg0: i32) -> (i32, i32, i32) {
    %c0_i32 = arith.constant 0 : i32
    %c0_i32_0 = arith.constant 0 : i32
    %c0_i32_1 = arith.constant 0 : i32
    %c0_i32_2 = arith.constant 0 : i32
    return %c0_i32, %c0_i32_0, %c0_i32_1 : i32, i32, i32
  }
  func.func @transform_17(%arg0: i32) -> (i32, i32, i32) {
    %c0_i32 = arith.constant 0 : i32
    %c0_i32_0 = arith.constant 0 : i32
    %c0_i32_1 = arith.constant 0 : i32
    %c0_i32_2 = arith.constant 0 : i32
    return %c0_i32, %c0_i32_0, %c0_i32_1 : i32, i32, i32
  }
  func.func @transform_18(%arg0: i32) -> (i32, i32, i32) {
    %c0_i32 = arith.constant 0 : i32
    %c0_i32_0 = arith.constant 0 : i32
    %c0_i32_1 = arith.constant 0 : i32
    %c0_i32_2 = arith.constant 0 : i32
    return %c0_i32, %c0_i32_0, %c0_i32_1 : i32, i32, i32
  }
  func.func @transform_19(%arg0: i32) -> (i32, i32, i32) {
    %c0_i32 = arith.constant 0 : i32
    %c0_i32_0 = arith.constant 0 : i32
    %c0_i32_1 = arith.constant 0 : i32
    %c0_i32_2 = arith.constant 0 : i32
    return %c0_i32, %c0_i32_0, %c0_i32_1 : i32, i32, i32
  }
  func.func @transform_20(%arg0: i32) -> (i32, i32, i32) {
    %c0_i32 = arith.constant 0 : i32
    %c0_i32_0 = arith.constant 0 : i32
    %c0_i32_1 = arith.constant 0 : i32
    %c0_i32_2 = arith.constant 0 : i32
    return %c0_i32, %c0_i32_0, %c0_i32_1 : i32, i32, i32
  }
  func.func @transform_21(%arg0: i32) -> (i32, i32, i32) {
    %c0_i32 = arith.constant 0 : i32
    %c0_i32_0 = arith.constant 0 : i32
    %c0_i32_1 = arith.constant 0 : i32
    %c0_i32_2 = arith.constant 0 : i32
    return %c0_i32, %c0_i32_0, %c0_i32_1 : i32, i32, i32
  }
  func.func @transform_22(%arg0: i32) -> (i32, i32, i32) {
    %c0_i32 = arith.constant 0 : i32
    %c0_i32_0 = arith.constant 0 : i32
    %c0_i32_1 = arith.constant 0 : i32
    %c0_i32_2 = arith.constant 0 : i32
    return %c0_i32, %c0_i32_0, %c0_i32_1 : i32, i32, i32
  }
  func.func @transform_23(%arg0: i32) -> (i32, i32, i32) {
    %c0_i32 = arith.constant 0 : i32
    %c0_i32_0 = arith.constant 0 : i32
    %c0_i32_1 = arith.constant 0 : i32
    %c0_i32_2 = arith.constant 0 : i32
    return %c0_i32, %c0_i32_0, %c0_i32_1 : i32, i32, i32
  }
  func.func @transform_24(%arg0: i32) -> (i32, i32, i32) {
    %c0_i32 = arith.constant 0 : i32
    %c0_i32_0 = arith.constant 0 : i32
    %c0_i32_1 = arith.constant 0 : i32
    %c0_i32_2 = arith.constant 0 : i32
    return %c0_i32, %c0_i32_0, %c0_i32_1 : i32, i32, i32
  }
  func.func @transform_25(%arg0: i32) -> (i32, i32, i32) {
    %c0_i32 = arith.constant 0 : i32
    %c0_i32_0 = arith.constant 0 : i32
    %c0_i32_1 = arith.constant 0 : i32
    %c0_i32_2 = arith.constant 0 : i32
    return %c0_i32, %c0_i32_0, %c0_i32_1 : i32, i32, i32
  }
  func.func @transform_26(%arg0: i32) -> (i32, i32, i32) {
    %c0_i32 = arith.constant 0 : i32
    %c0_i32_0 = arith.constant 0 : i32
    %c0_i32_1 = arith.constant 0 : i32
    %c0_i32_2 = arith.constant 0 : i32
    return %c0_i32, %c0_i32_0, %c0_i32_1 : i32, i32, i32
  }
  func.func @transform_27(%arg0: i32) -> (i32, i32, i32) {
    %c0_i32 = arith.constant 0 : i32
    %c0_i32_0 = arith.constant 0 : i32
    %c0_i32_1 = arith.constant 0 : i32
    %c0_i32_2 = arith.constant 0 : i32
    return %c0_i32, %c0_i32_0, %c0_i32_1 : i32, i32, i32
  }
  func.func @transform_28(%arg0: i32) -> (i32, i32, i32) {
    %c0_i32 = arith.constant 0 : i32
    %c0_i32_0 = arith.constant 0 : i32
    %c0_i32_1 = arith.constant 0 : i32
    %c0_i32_2 = arith.constant 0 : i32
    return %c0_i32, %c0_i32_0, %c0_i32_1 : i32, i32, i32
  }
  func.func @transform_29(%arg0: i32) -> (i32, i32, i32) {
    %c0_i32 = arith.constant 0 : i32
    %c0_i32_0 = arith.constant 0 : i32
    %c0_i32_1 = arith.constant 0 : i32
    %c0_i32_2 = arith.constant 0 : i32
    return %c0_i32, %c0_i32_0, %c0_i32_1 : i32, i32, i32
  }
  func.func @transform_30(%arg0: i32) -> (i32, i32) {
    %c0_i32 = arith.constant 0 : i32
    %c0_i32_0 = arith.constant 0 : i32
    %c0_i32_1 = arith.constant 0 : i32
    return %c0_i32, %c0_i32_0 : i32, i32
  }
  func.func @transform_31(%arg0: i32) -> (i32, i32) {
    %c0_i32 = arith.constant 0 : i32
    %c0_i32_0 = arith.constant 0 : i32
    %c0_i32_1 = arith.constant 0 : i32
    return %c0_i32, %c0_i32_0 : i32, i32
  }
  func.func @transform_32(%arg0: i32) -> (i32, i32, i32) {
    %c0_i32 = arith.constant 0 : i32
    %c0_i32_0 = arith.constant 0 : i32
    %c0_i32_1 = arith.constant 0 : i32
    return %arg0, %c0_i32, %c0_i32_0 : i32, i32, i32
  }
}

</mosaic_0001>

<bundles_post_ra>
// kernel: transformer_forward.1
= control target key start
LH: loop header
LB: loop body
LE: loop exit
PB: predicated region body
PF: predicated region fallthrough
CT: control target
= control target key end

     0   :  { %s3576_s6 = smov 1   ;;  %s3577_s10 = smov 2   ;;  %s4300_s0 = inlined_call_operand.smem [shape: u32[33], index: -1, kind: input, shape index: {}] }
   0x1   :  { %s3628_s5 = sld [smem:[%s4300_s0]]   ;;  %s3578_s14 = smov 3  }
   0x2   :  { %s3633_s9 = sld [smem:[%s4300_s0 + %s3576_s6]]   ;;  %s3579_s18 = smov 4  }
   0x3   :  { %s3638_s13 = sld [smem:[%s4300_s0 + %s3577_s10]]   ;;  %s3580_s22 = smov 5  }
   0x4   :  { %s3643_s17 = sld [smem:[%s4300_s0 + %s3578_s14]]   ;;  %s3581_s26 = smov 6  }
   0x5   :  { %s3648_s21 = sld [smem:[%s4300_s0 + %s3579_s18]]   ;;  %s3582_s30 = smov 7  }
   0x6   :  { %s3653_s25 = sld [smem:[%s4300_s0 + %s3580_s22]]   ;;  %s3583_s4 = smov 8  }
   0x7   :  { %s3658_s29 = sld [smem:[%s4300_s0 + %s3581_s26]]   ;;  %s3584_s10 = smov 9  }
   0x8   :  { %s3663_s3 = sld [smem:[%s4300_s0 + %s3582_s30]]   ;;  %s3585_s15 = smov 10  }
   0x9   :  { %s3668_s8 = sld [smem:[%s4300_s0 + %s3583_s4]]   ;;  %s3586_s20 = smov 11  }
   0xa   :  { %s3673_s14 = sld [smem:[%s4300_s0 + %s3584_s10]]   ;;  %s3587_s26 = smov 12  }
   0xb   :  { %s3678_s19 = sld [smem:[%s4300_s0 + %s3585_s15]]   ;;  %s3588_s1 = smov 13  }
   0xc   :  { %s3683_s24 = sld [smem:[%s4300_s0 + %s3586_s20]]   ;;  %s3589_s7 = smov 14  }
   0xd   :  { %s3688_s30 = sld [smem:[%s4300_s0 + %s3587_s26]]   ;;  %s3590_s15 = smov 15  }
   0xe   :  { %s3693_s6 = sld [smem:[%s4300_s0 + %s3588_s1]]   ;;  %s3591_s22 = smov 16  }
   0xf   :  { %s3698_s12 = sld [smem:[%s4300_s0 + %s3589_s7]]   ;;  %s3592_s28 = smov 17  }
  0x10   :  { %4310 = sst [smem:[#allocation2_spill]] %s3673_s14  ;;  %s3593_s7 = smov 18  }
  0x11   :  { %s3703_s20 = sld [smem:[%s4300_s0 + %s3590_s15]]   ;;  %s3594_s15 = smov 19  }
  0x12   :  { %4311 = sst [smem:[#allocation3_spill]] %s3683_s24 }
  0x13   :  { %4312 = sst [smem:[#allocation4_spill]] %s3688_s30 }
  0x14   :  { %4313 = sst [smem:[#allocation5_spill]] %s3693_s6 }
  0x15   :  { %s3708_s27 = sld [smem:[%s4300_s0 + %s3591_s22]]   ;;  %s3595_s22 = smov 20  }
  0x16   :  { %s3713_s4 = sld [smem:[%s4300_s0 + %s3592_s28]]   ;;  %s3596_s28 = smov 21  }
  0x17   :  { %s3718_s6 = sld [smem:[%s4300_s0 + %s3593_s7]]   ;;  %s3597_s7 = smov 22  }
  0x18   :  { %s3723_s30 = sld [smem:[%s4300_s0 + %s3594_s15]]   ;;  %s3598_s15 = smov 23  }
  0x19   :  { %s3728_s24 = sld [smem:[%s4300_s0 + %s3595_s22]]   ;;  %s3599_s22 = smov 24  }
  0x1a   :  { %s3733_s14 = sld [smem:[%s4300_s0 + %s3596_s28]]   ;;  %s3600_s28 = smov 25  }
  0x1d   :  { %4314 = sst [smem:[#allocation6_spill]] %s3718_s6 }
  0x1e   :  { %4315 = sst [smem:[#allocation7_spill]] %s3723_s30 }
  0x1f   :  { %4316 = sst [smem:[#allocation8_spill]] %s3728_s24 }
  0x20   :  { %4317 = sst [smem:[#allocation9_spill]] %s3733_s14 }
  0x21   :  { %s3738_s6 = sld [smem:[%s4300_s0 + %s3597_s7]]   ;;  %s3601_s7 = smov 26  }
  0x22   :  { %s3743_s30 = sld [smem:[%s4300_s0 + %s3598_s15]]   ;;  %s3602_s15 = smov 27  }
  0x23   :  { %s3748_s24 = sld [smem:[%s4300_s0 + %s3599_s22]]   ;;  %s3603_s22 = smov 28  }
  0x24   :  { %s3753_s14 = sld [smem:[%s4300_s0 + %s3600_s28]]   ;;  %s3604_s28 = smov 29  }
  0x27   :  { %4318 = sst [smem:[#allocation10_spill]] %s3738_s6 }
  0x28   :  { %4319 = sst [smem:[#allocation11_spill]] %s3743_s30 }
  0x29   :  { %4320 = sst [smem:[#allocation12_spill]] %s3748_s24 }
  0x2a   :  { %4321 = sst [smem:[#allocation13_spill]] %s3753_s14 }
  0x2b   :  { %s3758_s6 = sld [smem:[%s4300_s0 + %s3601_s7]]   ;;  %s3605_s7 = smov 30  }
  0x2c   :  { %s3763_s30 = sld [smem:[%s4300_s0 + %s3602_s15]]   ;;  %s3606_s15 = smov 31  }
  0x2d   :  { %s3768_s24 = sld [smem:[%s4300_s0 + %s3603_s22]]   ;;  %s3607_s22 = smov 32  }
  0x2e   :  { %s3773_s14 = sld [smem:[%s4300_s0 + %s3604_s28]]   ;;  %s3790_s28 = smov 0  }
  0x31   :  { %4322 = sst [smem:[#allocation14_spill]] %s3758_s6 }
  0x32   :  { %4323 = sst [smem:[#allocation15_spill]] %s3763_s30 }
  0x33   :  { %4324 = sst [smem:[#allocation16_spill]] %s3768_s24 }
  0x34   :  { %s3778_s6 = sld [smem:[%s4300_s0 + %s3605_s7]]  }
  0x35   :  { %s3783_s30 = sld [smem:[%s4300_s0 + %s3606_s15]]  }
  0x36   :  { %s3788_s24 = sld [smem:[%s4300_s0 + %s3607_s22]]  }
  0x37 LB: > { %s3183_s1 = sadd.s32 4294967295, %s3574_s28   ;;  %p3187_p0 = scmp.ge.s32.totalorder %s3574_s28, 1  ;;  %s3574_s28 = sphi %s3790_s28, %s75_s28  }
  0x38   : > { %p905_p1 = scmp.lt.s32.totalorder %s3574_s28, 5 }
  0x3a   : > { %p906_p2 = pnand %p3187_p0, %p905_p1 }
  0x3b   : > { %p992_p3 = scmp.lt.s32.totalorder (!%p906_p2), %s3183_s1, 3  ;;  %s3609_s7 = smov (!%p906_p2), 96  }
  0x3c   : > { %909 = sbr.rel (%p906_p2) target bundleno = 5614 (0x15ee), region = 148  ;;  %s4309_s10 = smov (!%p906_p2), 72  }
  0x3d   : > { %s3611_s11 = smov (!%p906_p2), 64   ;;  %s3612_s15 = smov (!%p906_p2), 88  }
  0x3e   : > { %s3613_s16 = smov (!%p906_p2), 120   ;;  %s4308_s18 = smov (!%p906_p2), 80  }
  0x3f   : > { %s3615_s22 = smov (!%p906_p2), 104   ;;  %s3616_s23 = smov (!%p906_p2), 112  }
  0x41   : > { %s4344_s1 = smov (!%p992_p3, %s3183_s1), 3  ;;  %vm1012_vm0 = vcmask 261120   ;;  %v3608_v4 = vmov 32.0   ;;  %v3324_v21 = vld [vmem:[%s3648_s21 + $0x8] sm:$0xff]  ;;  %v3323_v23 = vld [vmem:[%s3648_s21] sm:$0xff]  ;;  %vm1154_vm14 = vcmask 64512  }
  0x42   : > { %s3798_s0 = sshll.u32 %s4344_s1, 4  ;;  %3410 = vrcp.f32 %v3608_v4  ;;  %1137 = vmatpush.bf16.msra.mxu0 %v3324_v21  ;;  %v3829_v55 = vld [vmem:[%s3638_s13] sm:$0x3]  ;;  %vm1175_vm15 = vcmask 130048   ;;  %s4307_s1 = smov 56  }
  0x43   : > { %s996_s2 = scalar_lea.vmem %s3628_s5, %s3798_s0  ;;  %v1094_v59 = vperm.slane %v3829_v55, 0  ;;  %v3833_v4 = vld [vmem:[%s3643_s17] sm:$0x3]  ;;  %s3870_s26 = scalar_lea.vmem %s3633_s9, %s3798_s0 }
  0x44   : > { %v3802_v0 = vld [vmem:[%s996_s2] sm:$0xff]  ;;  %v3806_v2 = vld [vmem:[%s996_s2 + $0x8] sm:$0xff]  ;;  %s3618_s2 = smov 40  }
  0x45   : > { %v1013_v1 = vsel %vm1012_vm0, %v3802_v0, 0.0  ;;  %v1016_v3 = vsel %vm1012_vm0, %v3806_v2, 0.0  ;;  %v3395_v21 = vld [vmem:[%s3653_s25] ss:$0 sm:$0xff] }
  0x46   : > { %1014 = vadd.xlane.f32.xlu0 %v1013_v1  ;;  %1138 = vmatpush.bf16.msra.mxu0 %v3323_v23 }
  0x48   : > { %v3411_v5 = vpop.eup %3410 }
  0x49   : > { %v1020_v6 = vmul.f32 32.0, %v3411_v5  ;;  %vm1024_vm1 = vweird.f32 %v3411_v5 }
  0x4b   : > { %v1021_v7 = vsub.f32 1.0, %v1020_v6 }
  0x4d   : > { %v1022_v8 = vmul.f32 %v3411_v5, %v1021_v7 }
  0x4e   : > { %1017 = vadd.xlane.f32.xlu0 %v1016_v3 }
  0x4f   : > { %v1023_v9 = vadd.f32 %v3411_v5, %v1022_v8 }
  0x51   : > { %v3810_v10 = vsel %vm1024_vm1, %v3411_v5, %v1023_v9  ;;  %vm1291_vm1 = vcmask 1043456  }
  0xb9   : > { %v1015_v11 = vpop.xlane.xlu0 %1014 }
  0xba   : > { %v1026_v12 = vmul.f32 %v3810_v10, %v1015_v11 }
  0xbc   : > { %v3814_v13 = vsub.f32 %v3802_v0, %v1026_v12 }
  0xbe   : > { %v1030_v14 = vmul.f32 %v3814_v13, %v3814_v13  ;;  %v1095_v6 = vmul.f32 %v1094_v59, %v3814_v13 }
  0xc0   : > { %v1032_v15 = vsel %vm1012_vm0, %v1030_v14, 0.0  ;;  %v1099_v14 = vperm.slane %v3833_v4, 0 }
  0xc1   : > { %1033 = vadd.xlane.f32.xlu1 %v1032_v15  ;;  %v1018_v16 = vpop.xlane.xlu0 %1017 }
  0xc2   : > { %v1027_v17 = vmul.f32 %v3810_v10, %v1018_v16 }
  0xc4   : > { %v3821_v18 = vsub.f32 %v3806_v2, %v1027_v17 }
  0xc6   : > { %v1031_v19 = vmul.f32 %v3821_v18, %v3821_v18  ;;  %v1096_v8 = vmul.f32 %v1094_v59, %v3821_v18 }
  0xc8   : > { %v1035_v20 = vsel %vm1012_vm0, %v1031_v19, 0.0 }
  0xc9   : > { %1036 = vadd.xlane.f32.xlu1 %v1035_v20 }
 0x134   : > { %v1034_v22 = vpop.xlane.xlu1 %1033 }
 0x135   : > { %v1038_v24 = vmul.f32 0.032258064, %v1034_v22 }
 0x137   : > { %3412 = vrsqrt.f32 %v1038_v24  ;;  %vm1047_vm2 = vcmp.eq.f32.partialorder %v1038_v24, inf  ;;  %v1050_v37 = vand.u32 2147483648, %v1038_v24  ;;  %vm1049_vm3 = vcmp.eq.f32.partialorder %v1038_v24, 0.0 }
 0x13c   : > { %v1037_v25 = vpop.xlane.xlu1 %1036 }
 0x13d   : > { %v3413_v26 = vpop.eup %3412  ;;  %v1039_v27 = vmul.f32 0.032258064, %v1037_v25 }
 0x13e   : > { %v1041_v28 = vmul.f32 %v3413_v26, %v1038_v24 }
 0x13f   : > { %3414 = vrsqrt.f32 %v1039_v27  ;;  %vm1059_vm4 = vcmp.eq.f32.partialorder %v1039_v27, inf  ;;  %v1062_v45 = vand.u32 2147483648, %v1039_v27  ;;  %vm1061_vm5 = vcmp.eq.f32.partialorder %v1039_v27, 0.0 }
 0x140   : > { %v1042_v29 = vmul.f32 %v3413_v26, %v1041_v28 }
 0x142   : > { %v1043_v30 = vmul.f32 0.5, %v1042_v29 }
 0x144   : > { %v1044_v31 = vsub.f32 1.5, %v1043_v30 }
 0x145   : > { %v3415_v32 = vpop.eup %3414 }
 0x146   : > { %v1045_v33 = vmul.f32 %v3413_v26, %v1044_v31  ;;  %v1053_v34 = vmul.f32 %v3415_v32, %v1039_v27 }
 0x148   : > { %v1046_v35 = vmul.f32 %v1045_v33, %v1038_v24  ;;  %v1054_v36 = vmul.f32 %v3415_v32, %v1053_v34 }
 0x14a   : > { %v1048_v38 = vsel %vm1047_vm2, %v1038_v24, %v1046_v35  ;;  %v1055_v39 = vmul.f32 0.5, %v1054_v36  ;;  %v1107_v35 = vld [vmem:[%s3658_s29] sm:$0xf] }
 0x14b   : > { %v1051_v40 = vsel %vm1049_vm3, %v1050_v37, %v1048_v38  ;;  %v1313_v36 = vsel %vm1291_vm1, %v1107_v35, 0 }
 0x14c   : > { %v1056_v41 = vsub.f32 1.5, %v1055_v39  ;;  %v1064_v42 = vadd.f32 1e-06, %v1051_v40 }
 0x14e   : > { %v1057_v43 = vmul.f32 %v3415_v32, %v1056_v41  ;;  %3416 = vrcp.f32 %v1064_v42  ;;  %v1077_v56 = vand.u32 2147483648, %v1064_v42  ;;  %vm1071_vm7 = vweird.f32 %v1064_v42 }
 0x14f   : > { %v1075_v57 = vand.u32 2147483647, %v1064_v42 }
 0x150   : > { %v1058_v44 = vmul.f32 %v1057_v43, %v1039_v27  ;;  %v1078_v62 = vor.u32 1.1754944e-38, %v1077_v56 }
 0x151   : > { %vm1076_vm9 = vcmp.eq.f32.partialorder %v1075_v57, 8.507059e+37 }
 0x152   : > { %v1060_v46 = vsel %vm1059_vm4, %v1039_v27, %v1058_v44 }
 0x153   : > { %v1063_v47 = vsel %vm1061_vm5, %v1062_v45, %v1060_v46 }
 0x154   : > { %v3417_v48 = vpop.eup %3416  ;;  %v1065_v49 = vadd.f32 1e-06, %v1063_v47 }
 0x155   : > { %v1067_v50 = vmul.f32 %v3417_v48, %v1064_v42  ;;  %vm1072_vm6 = vweird.f32 %v3417_v48 }
 0x156   : > { %3418 = vrcp.f32 %v1065_v49  ;;  %vm1073_vm8 = vmor %vm1071_vm7, %vm1072_vm6  ;;  %v1091_v63 = vand.u32 2147483648, %v1065_v49  ;;  %v1089_v3 = vand.u32 2147483647, %v1065_v49  ;;  %vm1085_vm11 = vweird.f32 %v1065_v49 }
 0x157   : > { %v1068_v51 = vsub.f32 1.0, %v1067_v50 }
 0x158   : > { %v1092_v9 = vor.u32 1.1754944e-38, %v1091_v63  ;;  %vm1090_vm13 = vcmp.eq.f32.partialorder %v1089_v3, 8.507059e+37 }
 0x159   : > { %v1069_v52 = vmul.f32 %v3417_v48, %v1068_v51 }
 0x15b   : > { %v1070_v53 = vadd.f32 %v3417_v48, %v1069_v52  ;;  %v1785_v52 = vld [vmem:[%s3870_s26 + $0x8] sm:$0xff] }
 0x15c   : > { %v3419_v54 = vpop.eup %3418 }
 0x15d   : > { %v1081_v58 = vmul.f32 %v3419_v54, %v1065_v49  ;;  %v1074_v60 = vsel %vm1073_vm8, %v3417_v48, %v1070_v53  ;;  %vm1086_vm10 = vweird.f32 %v3419_v54 }
 0x15e   : > { %v1079_v5 = vsel %vm1076_vm9, %v1078_v62, %v1074_v60  ;;  %vm1087_vm12 = vmor %vm1085_vm11, %vm1086_vm10 }
 0x15f   : > { %v1082_v61 = vsub.f32 1.0, %v1081_v58  ;;  %v1097_v12 = vmul.f32 %v1095_v6, %v1079_v5  ;;  %v1784_v5 = vld [vmem:[%s3870_s26] sm:$0xff] }
 0x160   : > { %v1788_v6 = vsel %vm1012_vm0, %v1784_v5, 0.0 }
 0x161   : > { %v1083_v1 = vmul.f32 %v3419_v54, %v1082_v61  ;;  %v1100_v17 = vadd.f32 %v1099_v14, %v1097_v12 }
 0x163   : > { %v1084_v7 = vadd.f32 %v3419_v54, %v1083_v1 }
 0x165   : > { %v1088_v11 = vsel %vm1087_vm12, %v3419_v54, %v1084_v7  ;;  %v1791_v54 = vsel %vm1012_vm0, %v1785_v52, 0.0 }
 0x166   : > { %v1093_v15 = vsel %vm1090_vm13, %v1092_v9, %v1088_v11 }
 0x167   : > { %v1098_v16 = vmul.f32 %v1096_v8, %v1093_v15 }
 0x169   : > { %v1101_v19 = vadd.f32 %v1099_v14, %v1098_v16 }
 0x16b   : > { %v1112_v20 = vpack.c.bf16 %v1101_v19, %v1100_v17 }
 0x16d   : > { %3202 = vmatmul.msk.bf16.vlgmr.msra.gmra.mxu0 %vm1012_vm0, %v1112_v20 }
 0x1ea   : > { %v1140_v13 = vpop.f32.mrf.mxu0 }
 0x1eb   : > { %v1141_v22 = vadd.f32 %v3395_v21, %v1140_v13 }
 0x1ed   : > { %v1145_v24 = vpack.c.bf16 %v1141_v22, %v1141_v22 }
 0x1ef   : > { %v1149_v26 = vunpack.c.l.b16 %v1145_v24 }
 0x1f2   : > { %v1142_v23 = vpop.f32.mrf.mxu0 }
 0x1f3   : > { %v1143_v18 = vadd.f32 %v3395_v21, %v1142_v23 }
 0x1f5   : > { %v1146_v25 = vpack.c.bf16 %v1143_v18, %v1143_v18 }
 0x1f7   : > { %v1150_v27 = vunpack.c.l.b16 %v1146_v25 }
 0x1f9   : > { %v3840_v28 = vpack.c.b16 %v1150_v27, %v1149_v26 }
 0x1fb   : > { %1152 = vrot.lane.b32.xlu2 %v3840_v28, %s3609_s7 }
 0x255   : > { %v1153_v29 = vpop.permute.xlu2 %1152 }
 0x256   : > { %v1159_v30 = vsel %vm1154_vm14, %v1153_v29, 0 }
 0x257   : > { %1168 = vmatpush.bf16.xpose.msra.mxu1 %v1159_v30 }
 0x25e   : > { %3203 = vmatmul.msk.bf16.vlgmr.msra.gmra.mxu1 %vm1154_vm14, %v3840_v28 }
 0x25f   : > { %1322 = vmatpush.bf16.msrb.mxu1 %v1313_v36 }
 0x2db   : > { %v1170_v31 = vpop.f32.mrf.mxu1 }
 0x2dc   : > { %v1176_v32 = vsel %vm1175_vm15, %v1170_v31, -inf }
 0x2dd   : > { %1177 = vmax.xlane.f32.xlu2 %v1176_v32 }
 0x2e3   : > { %v1172_v33 = vpop.f32.mrf.mxu1 }
 0x2e4   : > { %v1179_v34 = vsel %vm1175_vm15, %v1172_v33, -inf }
 0x2e5   : > { %1180 = vmax.xlane.f32.xlu0 %v1179_v34 }
 0x2f5   : > { %1421 = vrot.lane.b32.xlu2 %v3840_v28, %s4309_s10 }
 0x350   : > { %v1178_v37 = vpop.xlane.xlu2 %1177 }
 0x351   : > { %v1182_v38 = vsub.f32 %v1170_v31, %v1178_v37 }
 0x353   : > { %v1184_v39 = vmul.f32 1.442695, %v1182_v38 }
 0x355   : > { %3420 = vpow2.f32 %v1184_v39 }
 0x358   : > { %v1422_v40 = vpop.permute.xlu2 %1421  ;;  %v1181_v41 = vpop.xlane.xlu0 %1180 }
 0x359   : > { %v1427_v42 = vsel %vm1154_vm14, %v1422_v40, 0  ;;  %v1183_v43 = vsub.f32 %v1172_v33, %v1181_v41 }
 0x35a   : > { %1436 = vmatpush.bf16.xpose.msra.mxu1 %v1427_v42 }
 0x35b   : > { %v3421_v44 = vpop.eup %3420  ;;  %v1186_v45 = vmul.f32 1.442695, %v1183_v43 }
 0x35c   : > { %v1188_v46 = vsel %vm1175_vm15, %v3421_v44, 0.0 }
 0x35d   : > { %3422 = vpow2.f32 %v1186_v45  ;;  %1189 = vadd.xlane.f32.xlu1 %v1188_v46 }
 0x363   : > { %v3423_v47 = vpop.eup %3422 }
 0x364   : > { %v1191_v48 = vsel %vm1175_vm15, %v3423_v47, 0.0 }
 0x365   : > { %1192 = vadd.xlane.f32.xlu0 %v1191_v48 }
 0x376   : > { %1199 = vrot.lane.b32.xlu1 %v3840_v28, %s3611_s11 }
 0x379   : > { %1222 = vrot.lane.b32.xlu0 %v3840_v28, %s3612_s15 }
 0x37e   : > { %1220 = vrot.lane.b32.xlu1 %v3840_v28, %s3613_s16 }
 0x381   : > { %1331 = vrot.lane.b32.xlu0 %v3840_v28, %s4308_s18 }
 0x386   : > { %1419 = vrot.lane.b32.xlu1 %v3840_v28, %s3615_s22 }
 0x389   : > { %1329 = vrot.lane.b32.xlu0 %v3840_v28, %s3616_s23 }
 0x3b0   : > { %1789 = vadd.xlane.f32.xlu1 %v1788_v6 }
 0x3b3   : > { %1792 = vadd.xlane.f32.xlu0 %v1791_v54 }
 0x3d0   : > { %v1190_v50 = vpop.xlane.xlu1 %1189 }
 0x3d8   : > { %v1193_v49 = vpop.xlane.xlu0 %1192 }
 0x3d9   : > { %3424 = vrcp.f32 %v1193_v49 }
 0x3da   : > { %3426 = vrcp.f32 %v1190_v50 }
 0x3df   : > { %v3425_v51 = vpop.eup %3424 }
 0x3e0   : > { %v3427_v53 = vpop.eup %3426  ;;  %v1197_v56 = vmul.f32 %v3425_v51, %v3423_v47 }
 0x3e1   : > { %v1196_v58 = vmul.f32 %v3427_v53, %v3421_v44 }
 0x3e3   : > { %v1198_v59 = vpack.c.bf16 %v1197_v56, %v1196_v58 }
 0x3e8   : > { %v1200_v57 = vpop.permute.xlu1 %1199 }
 0x3e9   : > { %1212 = vmatpush.bf16.msra.mxu2 %v1200_v57 }
 0x3eb   : > { %v1223_v60 = vpop.permute.xlu0 %1222 }
 0x3ec   : > { %3204 = vmatmul.msk.bf16.vlgmr.msra.gmra.mxu2 %vm1175_vm15, %v1198_v59  ;;  %v1228_v61 = vsel %vm1154_vm14, %v1223_v60, 0 }
 0x3ed   : > { %1237 = vmatpush.bf16.xpose.msra.mxu3 %v1228_v61 }
 0x3f0   : > { %v1221_v62 = vpop.permute.xlu1 %1220 }
 0x3f3   : > { %v1332_v63 = vpop.permute.xlu0 %1331 }
 0x3f4   : > { %3205 = vmatmul.msk.bf16.vlgmr.msra.gmra.mxu3 %vm1154_vm14, %v1221_v62  ;;  %v1337_v1 = vsel %vm1154_vm14, %v1332_v63, 0 }
 0x3f5   : > { %1346 = vmatpush.bf16.xpose.msrb.mxu3 %v1337_v1 }
 0x3f8   : > { %v1420_v21 = vpop.permute.xlu1 %1419 }
 0x3fb   : > { %v1330_v3 = vpop.permute.xlu0 %1329 }
 0x404   : > { %3209 = vmatmul.msk.bf16.vlgmr.msrb.gmra.mxu3 %vm1154_vm14, %v1330_v3 }
 0x423   : > { %v1790_v25 = vpop.xlane.xlu1 %1789 }
 0x424   : > { %v1794_v37 = vmul.f32 %v1790_v25, %v3810_v10 }
 0x426   : > { %v1793_v15 = vpop.xlane.xlu0 %1792  ;;  %v3906_v40 = vsub.f32 %v1784_v5, %v1794_v37 }
 0x427   : > { %v1795_v17 = vmul.f32 %v1793_v15, %v3810_v10 }
 0x428   : > { %v1798_v47 = vmul.f32 %v3906_v40, %v3906_v40 }
 0x429   : > { %v3885_v19 = vsub.f32 %v1785_v52, %v1795_v17 }
 0x42a   : > { %v1800_v51 = vsel %vm1012_vm0, %v1798_v47, 0.0 }
 0x42b   : > { %v1799_v22 = vmul.f32 %v3885_v19, %v3885_v19 }
 0x42d   : > { %v1803_v23 = vsel %vm1012_vm0, %v1799_v22, 0.0 }
 0x46f   : > { %v1214_v7 = vpop.f32.mrf.mxu2 }
 0x477   : > { %v1216_v8 = vpop.f32.mrf.mxu2  ;;  %v1239_v9 = vpop.f32.mrf.mxu3 }
 0x478   : > { %v1219_v11 = vpack.c.bf16 %v1216_v8, %v1214_v7  ;;  %v1244_v12 = vsel %vm1175_vm15, %v1239_v9, -inf }
 0x479   : > { %1245 = vmax.xlane.f32.xlu2 %v1244_v12 }
 0x47a   : > { %3208 = vmatmul.msk.bf16.vlgmr.msrb.gmra.mxu1 %vm1154_vm14, %v1219_v11 }
 0x47f   : > { %v1241_v14 = vpop.f32.mrf.mxu3 }
 0x480   : > { %v1247_v16 = vsel %vm1175_vm15, %v1241_v14, -inf }
 0x481   : > { %1248 = vmax.xlane.f32.xlu1 %v1247_v16 }
 0x487   : > { %v1348_v20 = vpop.f32.mrf.mxu3 }
 0x488   : > { %v1353_v13 = vsel %vm1175_vm15, %v1348_v20, -inf }
 0x489   : > { %1354 = vmax.xlane.f32.xlu1 %v1353_v13 }
 0x48a   : > { %3212 = vmatmul.msk.bf16.vlgmr.msra.gmra.mxu1 %vm1154_vm14, %v1420_v21 }
 0x48f   : > { %v1350_v24 = vpop.f32.mrf.mxu3 }
 0x490   : > { %v1356_v18 = vsel %vm1175_vm15, %v1350_v24, -inf }
 0x491   : > { %1357 = vmax.xlane.f32.xlu0 %v1356_v18  ;;  %1804 = vadd.xlane.f32.xlu1 %v1803_v23 }
 0x4aa   : > { %1267 = vrot.lane.b32.xlu1 %v3840_v28, %s4307_s1  ;;  %s3619_s1 = smov 48  }
 0x4ec   : > { %v1246_v29 = vpop.xlane.xlu2 %1245 }
 0x4ed   : > { %v1250_v30 = vsub.f32 %v1239_v9, %v1246_v29 }
 0x4ef   : > { %v1252_v32 = vmul.f32 1.442695, %v1250_v30 }
 0x4f1   : > { %3428 = vpow2.f32 %v1252_v32 }
 0x4f4   : > { %v1249_v27 = vpop.xlane.xlu1 %1248 }
 0x4f5   : > { %v1251_v41 = vsub.f32 %v1241_v14, %v1249_v27  ;;  %v3930_v14 = vld [vmem:[%s3698_s12] sm:$0x7] }
 0x4f6   : > { %v1862_v17 = vperm.slane %v3930_v14, 0 }
 0x4f7   : > { %v3895_v26 = vpop.f32.mrf.mxu1  ;;  %v3904_v39 = vpop.eup %3428  ;;  %v1254_v48 = vmul.f32 1.442695, %v1251_v41 }
 0x4f8   : > { %v1256_v44 = vsel %vm1175_vm15, %v3904_v39, 0.0  ;;  %v1864_v13 = vmul.f32 %v1862_v17, %v3885_v19 }
 0x4fc   : > { %v1355_v33 = vpop.xlane.xlu1 %1354 }
 0x4fd   : > { %v1359_v34 = vsub.f32 %v1348_v20, %v1355_v33 }
 0x4ff   : > { %v3897_v31 = vpop.f32.mrf.mxu1  ;;  %v1361_v38 = vmul.f32 1.442695, %v1359_v34 }
 0x501   : > { %3430 = vpow2.f32 %v1361_v38 }
 0x504   : > { %v1805_v45 = vpop.xlane.xlu1 %1804  ;;  %v1358_v49 = vpop.xlane.xlu0 %1357 }
 0x505   : > { %v1807_v46 = vmul.f32 0.032258064, %v1805_v45  ;;  %v1360_v52 = vsub.f32 %v1350_v24, %v1358_v49 }
 0x507   : > { %v3899_v35 = vpop.f32.mrf.mxu1  ;;  %v3916_v50 = vpop.eup %3430  ;;  %3432 = vrsqrt.f32 %v1807_v46  ;;  %v1363_v54 = vmul.f32 1.442695, %v1360_v52  ;;  %vm1827_vm2 = vcmp.eq.f32.partialorder %v1807_v46, inf  ;;  %v1830_v7 = vand.u32 2147483648, %v1807_v46 }
 0x508   : > { %v1443_v36 = vsel %vm1175_vm15, %v3899_v35, -inf  ;;  %3434 = vpow2.f32 %v1254_v48  ;;  %v1365_v53 = vsel %vm1175_vm15, %v3916_v50, 0.0  ;;  %vm1829_vm3 = vcmp.eq.f32.partialorder %v1807_v46, 0.0 }
 0x509   : > { %1444 = vmax.xlane.f32.xlu0 %v1443_v36  ;;  %3436 = vpow2.f32 %v1363_v54 }
 0x50d   : > { %v3433_v56 = vpop.eup %3432 }
 0x50e   : > { %v3921_v58 = vpop.eup %3434  ;;  %v1821_v59 = vmul.f32 %v3433_v56, %v1807_v46 }
 0x50f   : > { %v3908_v42 = vpop.f32.mrf.mxu1  ;;  %v1259_v60 = vsel %vm1175_vm15, %v3921_v58, 0.0  ;;  %v3925_v62 = vpop.eup %3436 }
 0x510   : > { %v1446_v43 = vsel %vm1175_vm15, %v3908_v42, -inf  ;;  %v1822_v61 = vmul.f32 %v3433_v56, %v1821_v59  ;;  %v1368_v1 = vsel %vm1175_vm15, %v3925_v62, 0.0 }
 0x511   : > { %1447 = vmax.xlane.f32.xlu2 %v1446_v43  ;;  %1257 = vadd.xlane.f32.xlu0 %v1256_v44 }
 0x512   : > { %v1823_v63 = vmul.f32 0.5, %v1822_v61 }
 0x514   : > { %v1824_v3 = vsub.f32 1.5, %v1823_v63 }
 0x516   : > { %v1825_v5 = vmul.f32 %v3433_v56, %v1824_v3 }
 0x518   : > { %v1826_v6 = vmul.f32 %v1825_v5, %v1807_v46 }
 0x519   : > { %1801 = vadd.xlane.f32.xlu2 %v1800_v51  ;;  %1366 = vadd.xlane.f32.xlu0 %v1365_v53 }
 0x51a   : > { %v1828_v8 = vsel %vm1827_vm2, %v1807_v46, %v1826_v6 }
 0x51b   : > { %v1831_v9 = vsel %vm1829_vm3, %v1830_v7, %v1828_v8  ;;  %v1787_v8 = vld [vmem:[%s3703_s20] sm:$0x7] }
 0x51c   : > { %v1268_v57 = vpop.permute.xlu1 %1267  ;;  %v1833_v11 = vadd.f32 1e-06, %v1831_v9 }
 0x51d   : > { %1280 = vmatpush.bf16.msrb.mxu2 %v1268_v57 }
 0x51e   : > { %3438 = vrcp.f32 %v1833_v11  ;;  %v1859_v21 = vand.u32 2147483648, %v1833_v11  ;;  %vm1853_vm4 = vweird.f32 %v1833_v11  ;;  %v1857_v23 = vand.u32 2147483647, %v1833_v11 }
 0x520   : > { %v1860_v24 = vor.u32 1.1754944e-38, %v1859_v21  ;;  %vm1858_vm7 = vcmp.eq.f32.partialorder %v1857_v23, 8.507059e+37 }
 0x521   : > { %1260 = vadd.xlane.f32.xlu2 %v1259_v60 }
 0x524   : > { %v3439_v12 = vpop.eup %3438 }
 0x525   : > { %v1849_v15 = vmul.f32 %v3439_v12, %v1833_v11  ;;  %vm1854_vm5 = vweird.f32 %v3439_v12 }
 0x526   : > { %vm1855_vm6 = vmor %vm1853_vm4, %vm1854_vm5 }
 0x527   : > { %v1850_v16 = vsub.f32 1.0, %v1849_v15 }
 0x529   : > { %1369 = vadd.xlane.f32.xlu2 %v1368_v1  ;;  %v1851_v20 = vmul.f32 %v3439_v12, %v1850_v16  ;;  %v1867_v16 = vperm.slane %v1787_v8, 0 }
 0x52b   : > { %v1852_v22 = vadd.f32 %v3439_v12, %v1851_v20 }
 0x52d   : > { %v1856_v18 = vsel %vm1855_vm6, %v3439_v12, %v1852_v22  ;;  %v1863_v12 = vmul.f32 %v1862_v17, %v3906_v40 }
 0x52e   : > { %v1861_v25 = vsel %vm1858_vm7, %v1860_v24, %v1856_v18 }
 0x52f   : > { %v3936_v27 = vmul.f32 %v1864_v13, %v1861_v25 }
 0x531   : > { %v1869_v21 = vadd.f32 %v1867_v16, %v3936_v27 }
 0x57c   : > { %v1445_v29 = vpop.xlane.xlu0 %1444 }
 0x57d   : > { %v1449_v30 = vsub.f32 %v3899_v35, %v1445_v29  ;;  %v1108_v29 = vld [vmem:[%s3658_s29 + $0x4] sm:$0xf] }
 0x57f   : > { %v1451_v32 = vmul.f32 1.442695, %v1449_v30 }
 0x581   : > { %3440 = vpow2.f32 %v1451_v32  ;;  %v1293_v32 = vsel %vm1291_vm1, %v1108_v29, 0 }
 0x582   : > { %1302 = vmatpush.bf16.msrb.mxu0 %v1293_v32 }
 0x584   : > { %v1448_v33 = vpop.xlane.xlu2 %1447  ;;  %v1258_v44 = vpop.xlane.xlu0 %1257 }
 0x585   : > { %v1450_v19 = vsub.f32 %v3908_v42, %v1448_v33 }
 0x587   : > { %v3940_v34 = vpop.eup %3440  ;;  %v1453_v36 = vmul.f32 1.442695, %v1450_v19 }
 0x588   : > { %v1455_v37 = vsel %vm1175_vm15, %v3940_v34, 0.0 }
 0x589   : > { %3442 = vpow2.f32 %v1453_v36  ;;  %1456 = vadd.xlane.f32.xlu0 %v1455_v37  ;;  %v3332_v37 = vld [vmem:[%s3708_s27 + $0x8] sm:$0xff] }
 0x58c   : > { %v1802_v38 = vpop.xlane.xlu2 %1801  ;;  %v1367_v23 = vpop.xlane.xlu0 %1366 }
 0x58d   : > { %v1806_v41 = vmul.f32 0.032258064, %v1802_v38 }
 0x58f   : > { %v3944_v43 = vpop.eup %3442  ;;  %3444 = vrsqrt.f32 %v1806_v41  ;;  %vm1815_vm8 = vcmp.eq.f32.partialorder %v1806_v41, inf  ;;  %v1818_v59 = vand.u32 2147483648, %v1806_v41  ;;  %vm1817_vm9 = vcmp.eq.f32.partialorder %v1806_v41, 0.0 }
 0x590   : > { %v1458_v35 = vsel %vm1175_vm15, %v3944_v43, 0.0  ;;  %3446 = vrcp.f32 %v1258_v44 }
 0x591   : > { %1459 = vadd.xlane.f32.xlu2 %v1458_v35  ;;  %v3331_v35 = vld [vmem:[%s3708_s27] sm:$0xff] }
 0x594   : > { %v1261_v42 = vpop.xlane.xlu2 %1260 }
 0x595   : > { %v3445_v45 = vpop.eup %3444  ;;  %3448 = vrcp.f32 %v1261_v42 }
 0x596   : > { %v1809_v46 = vmul.f32 %v3445_v45, %v1806_v41  ;;  %v3447_v48 = vpop.eup %3446 }
 0x597   : > { %v1264_v52 = vmul.f32 %v3447_v48, %v3904_v39 }
 0x598   : > { %v1810_v47 = vmul.f32 %v3445_v45, %v1809_v46  ;;  %v1110_v46 = vld [vmem:[%s3658_s29 + $0xc] sm:$0xf] }
 0x59a   : > { %v1811_v49 = vmul.f32 0.5, %v1810_v47  ;;  %v1491_v47 = vsel %vm1291_vm1, %v1110_v46, 0 }
 0x59b   : > { %v3449_v51 = vpop.eup %3448 }
 0x59c   : > { %v1812_v53 = vsub.f32 1.5, %v1811_v49  ;;  %v1265_v54 = vmul.f32 %v3449_v51, %v3921_v58  ;;  %v1370_v24 = vpop.xlane.xlu2 %1369 }
 0x59d   : > { %1466 = vrot.lane.b32.xlu0 %v3840_v28, %s3618_s2 }
 0x59e   : > { %v1813_v56 = vmul.f32 %v3445_v45, %v1812_v53  ;;  %v1266_v57 = vpack.c.bf16 %v1265_v54, %v1264_v52 }
 0x5a0   : > { %v1814_v60 = vmul.f32 %v1813_v56, %v1806_v41  ;;  %3206 = vmatmul.msk.bf16.vlgmr.msrb.gmra.mxu2 %vm1175_vm15, %v1266_v57  ;;  %v3396_v57 = vld [vmem:[%s3713_s4] ss:$0 sm:$0xff] }
 0x5a2   : > { %v1816_v61 = vsel %vm1815_vm8, %v1806_v41, %v1814_v60 }
 0x5a3   : > { %v1819_v63 = vsel %vm1817_vm9, %v1818_v59, %v1816_v61 }
 0x5a4   : > { %v1832_v1 = vadd.f32 1e-06, %v1819_v63 }
 0x5a6   : > { %3450 = vrcp.f32 %v1832_v1  ;;  %v1845_v3 = vand.u32 2147483648, %v1832_v1  ;;  %vm1839_vm10 = vweird.f32 %v1832_v1  ;;  %v1843_v6 = vand.u32 2147483647, %v1832_v1 }
 0x5a7   : > { %3452 = vrcp.f32 %v1370_v24 }
 0x5a8   : > { %v1846_v9 = vor.u32 1.1754944e-38, %v1845_v3  ;;  %vm1844_vm13 = vcmp.eq.f32.partialorder %v1843_v6, 8.507059e+37  ;;  %3454 = vrcp.f32 %v1367_v23 }
 0x5a9   : > { %1376 = vrot.lane.b32.xlu2 %v3840_v28, %s3619_s1 }
 0x5ac   : > { %v3451_v39 = vpop.eup %3450 }
 0x5ad   : > { %v1835_v58 = vmul.f32 %v3451_v39, %v1832_v1  ;;  %vm1840_vm11 = vweird.f32 %v3451_v39  ;;  %v3453_v14 = vpop.eup %3452 }
 0x5ae   : > { %vm1841_vm12 = vmor %vm1839_vm10, %vm1840_vm11  ;;  %v3455_v40 = vpop.eup %3454  ;;  %v1374_v17 = vmul.f32 %v3453_v14, %v3925_v62 }
 0x5af   : > { %v1836_v5 = vsub.f32 1.0, %v1835_v58  ;;  %v1373_v33 = vmul.f32 %v3455_v40, %v3916_v50 }
 0x5b1   : > { %v1837_v7 = vmul.f32 %v3451_v39, %v1836_v5  ;;  %v1375_v38 = vpack.c.bf16 %v1374_v17, %v1373_v33 }
 0x5b3   : > { %v1838_v11 = vadd.f32 %v3451_v39, %v1837_v7 }
 0x5b5   : > { %v1842_v15 = vsel %vm1841_vm12, %v3451_v39, %v1838_v11  ;;  %v3397_v11 = vld [vmem:[%s3663_s3] ss:$0 sm:$0xff] }
 0x5b6   : > { %v1847_v28 = vsel %vm1844_vm13, %v1846_v9, %v1842_v15 }
 0x5b7   : > { %v1865_v20 = vmul.f32 %v1863_v12, %v1847_v28 }
 0x5b9   : > { %v1868_v13 = vadd.f32 %v1867_v16, %v1865_v20 }
 0x5bb   : > { %v1880_v22 = vpack.c.bf16 %v1869_v21, %v1868_v13 }
 0x5fc   : > { %v1457_v18 = vpop.xlane.xlu0 %1456 }
 0x604   : > { %v1460_v25 = vpop.xlane.xlu2 %1459 }
 0x605   : > { %3456 = vrcp.f32 %v1460_v25 }
 0x606   : > { %3458 = vrcp.f32 %v1457_v18 }
 0x60b   : > { %v3457_v30 = vpop.eup %3456 }
 0x60c   : > { %v3459_v27 = vpop.eup %3458  ;;  %v1377_v19 = vpop.permute.xlu2 %1376  ;;  %v1464_v36 = vmul.f32 %v3457_v30, %v3944_v43 }
 0x60d   : > { %1389 = vmatpush.bf16.msra.mxu2 %v1377_v19  ;;  %v1463_v41 = vmul.f32 %v3459_v27, %v3940_v34  ;;  %v1109_v34 = vld [vmem:[%s3658_s29 + $0x8] sm:$0xf] }
 0x60e   : > { %v1401_v45 = vsel %vm1291_vm1, %v1109_v34, 0 }
 0x60f   : > { %v1467_v44 = vpop.permute.xlu0 %1466  ;;  %v1465_v62 = vpack.c.bf16 %v1464_v36, %v1463_v41  ;;  %1410 = vmatpush.bf16.msra.mxu0 %v1401_v45 }
 0x610   : > { %3210 = vmatmul.msk.bf16.vlgmr.msra.gmra.mxu2 %vm1175_vm15, %v1375_v38  ;;  %1479 = vmatpush.bf16.msra.mxu3 %v1467_v44 }
 0x611   : > { %1500 = vmatpush.bf16.msrb.mxu2 %v1491_v47 }
 0x613   : > { %3213 = vmatmul.msk.bf16.vlgmr.msra.gmra.mxu3 %vm1175_vm15, %v1465_v62 }
 0x614   : > { %1905 = vmatpush.bf16.msrb.mxu3 %v3332_v37 }
 0x618   : > { %1906 = vmatpush.bf16.msrb.mxu3 %v3331_v35  ;;  %v3326_v35 = vld [vmem:[%s3668_s8 + $0x8] sm:$0xff] }
 0x623   : > { %v1282_v50 = vpop.f32.mrf.mxu2  ;;  %3249 = vmatmul.msk.bf16.vlgmr.msrb.gmra.mxu3 %vm1012_vm0, %v1880_v22 }
 0x62b   : > { %v1284_v43 = vpop.f32.mrf.mxu2 }
 0x62c   : > { %v1287_v42 = vpack.c.bf16 %v1284_v43, %v1282_v50  ;;  %v3325_v50 = vld [vmem:[%s3668_s8] sm:$0xff] }
 0x62e   : > { %3207 = vmatmul.msk.bf16.vlgmr.msrb.gmra.mxu0 %vm1154_vm14, %v1287_v42 }
 0x62f   : > { %1637 = vmatpush.bf16.msrb.mxu0 %v3326_v35 }
 0x633   : > { %1638 = vmatpush.bf16.msrb.mxu0 %v3325_v50 }
 0x693   : > { %v1391_v48 = vpop.f32.mrf.mxu2 }
 0x696   : > { %v1481_v49 = vpop.f32.mrf.mxu3 }
 0x69b   : > { %v1393_v51 = vpop.f32.mrf.mxu2 }
 0x69c   : > { %v1396_v52 = vpack.c.bf16 %v1393_v51, %v1391_v48 }
 0x69e   : > { %3211 = vmatmul.msk.bf16.vlgmr.msra.gmra.mxu0 %vm1154_vm14, %v1396_v52  ;;  %v1483_v53 = vpop.f32.mrf.mxu3 }
 0x69f   : > { %v1486_v54 = vpack.c.bf16 %v1483_v53, %v1481_v49 }
 0x6a1   : > { %3214 = vmatmul.msk.bf16.vlgmr.msrb.gmra.mxu2 %vm1154_vm14, %v1486_v54 }
 0x6a6   : > { %v1908_v56 = vpop.f32.mrf.mxu3 }
 0x6a7   : > { %v1909_v59 = vadd.f32 %v3396_v57, %v1908_v56 }
 0x6a9   : > { %v1913_v61 = vpack.c.bf16 %v1909_v59, %v1909_v59 }
 0x6ab   : > { %v1917_v39 = vunpack.c.l.b16 %v1913_v61  ;;  %v1304_v5 = vpop.f32.mrf.mxu0 }
 0x6ac   : > { %v1325_v8 = vadd.f32 %v3895_v26, %v1304_v5 }
 0x6ae   : > { %v1910_v60 = vpop.f32.mrf.mxu3 }
 0x6af   : > { %v1911_v63 = vadd.f32 %v3396_v57, %v1910_v60 }
 0x6b1   : > { %v1914_v1 = vpack.c.bf16 %v1911_v63, %v1911_v63 }
 0x6b3   : > { %v1918_v58 = vunpack.c.l.b16 %v1914_v1  ;;  %v1306_v6 = vpop.f32.mrf.mxu0 }
 0x6b4   : > { %v1327_v20 = vadd.f32 %v3897_v31, %v1306_v6 }
 0x6b5   : > { %v3979_v3 = vpack.c.b16 %v1918_v58, %v1917_v39 }
 0x6b7   : > { %1920 = vrot.lane.b32.xlu1 %v3979_v3, %s3609_s7 }
 0x71b   : > { %v1412_v7 = vpop.f32.mrf.mxu0 }
 0x71c   : > { %v1417_v9 = vadd.f32 %v1412_v7, %v1325_v8 }
 0x723   : > { %v1414_v28 = vpop.f32.mrf.mxu0 }
 0x724   : > { %v1502_v12 = vpop.f32.mrf.mxu2  ;;  %v1418_v23 = vadd.f32 %v1414_v28, %v1327_v20 }
 0x725   : > { %v1507_v15 = vadd.f32 %v1502_v12, %v1417_v9 }
 0x727   : > { %v1512_v16 = vadd.f32 %v3397_v11, %v1507_v15 }
 0x729   : > { %v3987_v13 = vadd.f32 %v1512_v16, %v3802_v0  ;;  %v1921_v21 = vpop.permute.xlu1 %1920 }
 0x72a   : > { %v1926_v22 = vsel %vm1154_vm14, %v1921_v21, 0 }
 0x72b   : > { %1935 = vmatpush.bf16.xpose.msra.mxu2 %v1926_v22  ;;  %v1516_v24 = vsel %vm1012_vm0, %v3987_v13, 0.0 }
 0x72c   : > { %1517 = vadd.xlane.f32.xlu1 %v1516_v24  ;;  %v1504_v26 = vpop.f32.mrf.mxu2 }
 0x72d   : > { %v1508_v18 = vadd.f32 %v1504_v26, %v1418_v23  ;;  %v3330_v23 = vld [vmem:[%s3678_s19 + $0x18] sm:$0xff] }
 0x72e   : > { %1683 = vmatpush.bf16.msrb.mxu1 %v3330_v23 }
 0x72f   : > { %v1513_v25 = vadd.f32 %v3397_v11, %v1508_v18 }
 0x731   : > { %v3993_v14 = vadd.f32 %v1513_v25, %v3806_v2 }
 0x732   : > { %3250 = vmatmul.msk.bf16.vlgmr.msra.gmra.mxu2 %vm1154_vm14, %v3979_v3 }
 0x733   : > { %v1519_v0 = vsel %vm1012_vm0, %v3993_v14, 0.0 }
 0x734   : > { %1520 = vadd.xlane.f32.xlu0 %v1519_v0  ;;  %v1590_v0 = vperm.slane %v3829_v55, 1 }
 0x79f   : > { %v1518_v31 = vpop.xlane.xlu1 %1517 }
 0x7a0   : > { %v1522_v40 = vmul.f32 %v1518_v31, %v3810_v10 }
 0x7a2   : > { %v4001_v17 = vsub.f32 %v3987_v13, %v1522_v40 }
 0x7a4   : > { %v1526_v29 = vmul.f32 %v4001_v17, %v4001_v17 }
 0x7a6   : > { %v1528_v30 = vsel %vm1012_vm0, %v1526_v29, 0.0 }
 0x7a7   : > { %1529 = vadd.xlane.f32.xlu2 %v1528_v30  ;;  %v1521_v2 = vpop.xlane.xlu0 %1520 }
 0x7a8   : > { %v1523_v32 = vmul.f32 %v1521_v2, %v3810_v10  ;;  %v1595_v2 = vperm.slane %v3833_v4, 1 }
 0x7aa   : > { %v4008_v27 = vsub.f32 %v3993_v14, %v1523_v32 }
 0x7ac   : > { %v1527_v33 = vmul.f32 %v4008_v27, %v4008_v27 }
 0x7ae   : > { %v1531_v19 = vsel %vm1012_vm0, %v1527_v33, 0.0  ;;  %v1591_v33 = vmul.f32 %v1590_v0, %v4001_v17  ;;  %v1592_v17 = vmul.f32 %v1590_v0, %v4008_v27  ;;  %v3329_v27 = vld [vmem:[%s3678_s19 + $0x10] sm:$0xff] }
 0x7af   : > { %1532 = vadd.xlane.f32.xlu1 %v1531_v19  ;;  %1684 = vmatpush.bf16.msrb.mxu1 %v3329_v27 }
 0x7b5   : > { %v1937_v36 = vpop.f32.mrf.mxu2 }
 0x7b6   : > { %v1942_v37 = vsel %vm1175_vm15, %v1937_v36, -inf }
 0x7b7   : > { %1943 = vmax.xlane.f32.xlu0 %v1942_v37 }
 0x7bd   : > { %v1939_v38 = vpop.f32.mrf.mxu2 }
 0x7be   : > { %v1945_v41 = vsel %vm1175_vm15, %v1939_v38, -inf }
 0x7bf   : > { %1946 = vmax.xlane.f32.xlu1 %v1945_v41 }
 0x7d8   : > { %1965 = vrot.lane.b32.xlu1 %v3979_v3, %s3611_s11  ;;  %s4325_s11 = sld [smem:[#allocation6_spill]] }
 0x7e0   : > { %2096 = vrot.lane.b32.xlu1 %v3979_v3, %s4308_s18  ;;  %s4326_s18 = sld [smem:[#allocation2_spill]] }
 0x7e8   : > { %2184 = vrot.lane.b32.xlu1 %v3979_v3, %s3615_s22 }
 0x81a   : > { %v1530_v44 = vpop.xlane.xlu2 %1529 }
 0x81b   : > { %v1534_v62 = vmul.f32 0.032258064, %v1530_v44 }
 0x81d   : > { %3460 = vrsqrt.f32 %v1534_v62  ;;  %vm1543_vm2 = vcmp.eq.f32.partialorder %v1534_v62, inf  ;;  %v1546_v60 = vand.u32 2147483648, %v1534_v62  ;;  %vm1545_vm3 = vcmp.eq.f32.partialorder %v1534_v62, 0.0 }
 0x822   : > { %v1533_v43 = vpop.xlane.xlu1 %1532 }
 0x823   : > { %v3461_v42 = vpop.eup %3460  ;;  %v1535_v34 = vmul.f32 0.032258064, %v1533_v43 }
 0x824   : > { %v1537_v45 = vmul.f32 %v3461_v42, %v1534_v62 }
 0x825   : > { %3462 = vrsqrt.f32 %v1535_v34  ;;  %vm1555_vm4 = vcmp.eq.f32.partialorder %v1535_v34, inf  ;;  %v1558_v15 = vand.u32 2147483648, %v1535_v34  ;;  %vm1557_vm5 = vcmp.eq.f32.partialorder %v1535_v34, 0.0 }
 0x826   : > { %v1538_v46 = vmul.f32 %v3461_v42, %v1537_v45 }
 0x828   : > { %v1539_v47 = vmul.f32 0.5, %v1538_v46 }
 0x82a   : > { %v1540_v48 = vsub.f32 1.5, %v1539_v47  ;;  %v1944_v49 = vpop.xlane.xlu0 %1943 }
 0x82b   : > { %v3463_v51 = vpop.eup %3462  ;;  %v1948_v52 = vsub.f32 %v1937_v36, %v1944_v49  ;;  %v3327_v49 = vld [vmem:[%s3678_s19] sm:$0xff] }
 0x82c   : > { %v1541_v53 = vmul.f32 %v3461_v42, %v1540_v48  ;;  %v1549_v54 = vmul.f32 %v3463_v51, %v1535_v34  ;;  %v3328_v48 = vld [vmem:[%s3678_s19 + $0x8] sm:$0xff] }
 0x82d   : > { %v1950_v56 = vmul.f32 1.442695, %v1948_v52  ;;  %1685 = vmatpush.bf16.msrb.mxu1 %v3328_v48 }
 0x82e   : > { %v1542_v57 = vmul.f32 %v1541_v53, %v1534_v62  ;;  %v1550_v59 = vmul.f32 %v3463_v51, %v1549_v54 }
 0x82f   : > { %3464 = vpow2.f32 %v1950_v56 }
 0x830   : > { %v1544_v61 = vsel %vm1543_vm2, %v1534_v62, %v1542_v57  ;;  %v1551_v63 = vmul.f32 0.5, %v1550_v59  ;;  %vm1675_vm2 = vcmask 523264  }
 0x831   : > { %v1547_v1 = vsel %vm1545_vm3, %v1546_v60, %v1544_v61  ;;  %1686 = vmatpush.bf16.msrb.mxu1 %v3327_v49 }
 0x832   : > { %v1560_v39 = vadd.f32 1e-06, %v1547_v1  ;;  %v1552_v58 = vsub.f32 1.5, %v1551_v63  ;;  %v1947_v5 = vpop.xlane.xlu1 %1946 }
 0x833   : > { %v1949_v6 = vsub.f32 %v1939_v38, %v1947_v5 }
 0x834   : > { %3466 = vrcp.f32 %v1560_v39  ;;  %v1553_v7 = vmul.f32 %v3463_v51, %v1552_v58  ;;  %v1573_v25 = vand.u32 2147483648, %v1560_v39  ;;  %v1571_v40 = vand.u32 2147483647, %v1560_v39  ;;  %v1875_v51 = vld [vmem:[%s4325_s11] sm:$0xf] }
 0x835   : > { %v4023_v8 = vpop.eup %3464  ;;  %v1952_v9 = vmul.f32 1.442695, %v1949_v6  ;;  %vm1567_vm7 = vweird.f32 %v1560_v39  ;;  %v2078_v52 = vsel %vm1291_vm1, %v1875_v51, 0  ;;  %v3398_v6 = vld [vmem:[%s4326_s18] ss:$0 sm:$0xff]  ;;  %s4329_s18 = sld [smem:[#allocation7_spill]] }
 0x836   : > { %v1554_v11 = vmul.f32 %v1553_v7, %v1535_v34  ;;  %v1954_v12 = vsel %vm1175_vm15, %v4023_v8, 0.0  ;;  %v1574_v32 = vor.u32 1.1754944e-38, %v1573_v25  ;;  %vm1572_vm9 = vcmp.eq.f32.partialorder %v1571_v40, 8.507059e+37 }
 0x837   : > { %3468 = vpow2.f32 %v1952_v9  ;;  %1955 = vadd.xlane.f32.xlu2 %v1954_v12 }
 0x838   : > { %v1556_v16 = vsel %vm1555_vm4, %v1535_v34, %v1554_v11 }
 0x839   : > { %v1559_v28 = vsel %vm1557_vm5, %v1558_v15, %v1556_v16 }
 0x83a   : > { %v3467_v20 = vpop.eup %3466  ;;  %v1561_v21 = vadd.f32 1e-06, %v1559_v28 }
 0x83b   : > { %v1563_v22 = vmul.f32 %v3467_v20, %v1560_v39  ;;  %vm1568_vm6 = vweird.f32 %v3467_v20 }
 0x83c   : > { %3470 = vrcp.f32 %v1561_v21  ;;  %vm1569_vm8 = vmor %vm1567_vm7, %vm1568_vm6  ;;  %v1587_v55 = vand.u32 2147483648, %v1561_v21  ;;  %v1585_v62 = vand.u32 2147483647, %v1561_v21  ;;  %vm1581_vm11 = vweird.f32 %v1561_v21 }
 0x83d   : > { %v4028_v24 = vpop.eup %3468  ;;  %v1564_v26 = vsub.f32 1.0, %v1563_v22 }
 0x83e   : > { %v1957_v18 = vsel %vm1175_vm15, %v4028_v24, 0.0  ;;  %v1588_v4 = vor.u32 1.1754944e-38, %v1587_v55  ;;  %vm1586_vm13 = vcmp.eq.f32.partialorder %v1585_v62, 8.507059e+37 }
 0x83f   : > { %1958 = vadd.xlane.f32.xlu0 %v1957_v18  ;;  %v1565_v31 = vmul.f32 %v3467_v20, %v1564_v26 }
 0x841   : > { %v1566_v29 = vadd.f32 %v3467_v20, %v1565_v31 }
 0x842   : > { %v3471_v30 = vpop.eup %3470 }
 0x843   : > { %v1570_v19 = vsel %vm1569_vm8, %v3467_v20, %v1566_v29  ;;  %v1577_v36 = vmul.f32 %v3471_v30, %v1561_v21  ;;  %vm1582_vm10 = vweird.f32 %v3471_v30 }
 0x844   : > { %v1575_v37 = vsel %vm1572_vm9, %v1574_v32, %v1570_v19  ;;  %vm1583_vm12 = vmor %vm1581_vm11, %vm1582_vm10 }
 0x845   : > { %v1578_v38 = vsub.f32 1.0, %v1577_v36  ;;  %v1593_v41 = vmul.f32 %v1591_v33, %v1575_v37 }
 0x847   : > { %v1579_v44 = vmul.f32 %v3471_v30, %v1578_v38  ;;  %v1596_v35 = vadd.f32 %v1595_v2, %v1593_v41 }
 0x849   : > { %v1580_v50 = vadd.f32 %v3471_v30, %v1579_v44 }
 0x84a   : > { %v1966_v43 = vpop.permute.xlu1 %1965 }
 0x84b   : > { %1978 = vmatpush.bf16.msra.mxu0 %v1966_v43  ;;  %v1584_v42 = vsel %vm1583_vm12, %v3471_v30, %v1580_v50 }
 0x84c   : > { %v1589_v34 = vsel %vm1586_vm13, %v1588_v4, %v1584_v42 }
 0x84d   : > { %v1594_v45 = vmul.f32 %v1592_v17, %v1589_v34 }
 0x84f   : > { %1988 = vrot.lane.b32.xlu2 %v3979_v3, %s3612_s15  ;;  %v1597_v46 = vadd.f32 %v1595_v2, %v1594_v45 }
 0x851   : > { %v1612_v47 = vpack.c.bf16 %v1597_v46, %v1596_v35 }
 0x852   : > { %v2097_v16 = vpop.permute.xlu1 %2096 }
 0x853   : > { %3223 = vmatmul.msk.bf16.vlgmr.msrb.gmra.mxu0 %vm1012_vm0, %v1612_v47  ;;  %1986 = vrot.lane.b32.xlu0 %v3979_v3, %s3613_s16  ;;  %v2102_v28 = vsel %vm1154_vm14, %v2097_v16, 0 }
 0x854   : > { %2087 = vmatpush.bf16.msrb.mxu0 %v2078_v52 }
 0x857   : > { %2186 = vrot.lane.b32.xlu2 %v3979_v3, %s4309_s10  ;;  %s4327_s10 = sld [smem:[#allocation3_spill]] }
 0x85a   : > { %v2185_v26 = vpop.permute.xlu1 %2184 }
 0x85b   : > { %2094 = vrot.lane.b32.xlu0 %v3979_v3, %s3616_s23 }
 0x85d   : > { %v3399_v25 = vld [vmem:[%s4327_s10] ss:$0 sm:$0xff]  ;;  %s4328_s10 = smov 56  }
 0x8aa   : > { %v1956_v53 = vpop.xlane.xlu2 %1955 }
 0x8ab   : > { %3472 = vrcp.f32 %v1956_v53 }
 0x8b1   : > { %v3473_v59 = vpop.eup %3472 }
 0x8b2   : > { %v1989_v54 = vpop.permute.xlu2 %1988  ;;  %v1959_v56 = vpop.xlane.xlu0 %1958  ;;  %v1962_v61 = vmul.f32 %v3473_v59, %v4023_v8 }
 0x8b3   : > { %v1994_v57 = vsel %vm1154_vm14, %v1989_v54, 0  ;;  %3474 = vrcp.f32 %v1959_v56 }
 0x8b4   : > { %2003 = vmatpush.bf16.xpose.msra.mxu1 %v1994_v57 }
 0x8b9   : > { %v3475_v60 = vpop.eup %3474 }
 0x8ba   : > { %v1963_v63 = vmul.f32 %v3475_v60, %v4028_v24  ;;  %v2187_v1 = vpop.permute.xlu2 %2186 }
 0x8bb   : > { %v2192_v58 = vsel %vm1154_vm14, %v2187_v1, 0 }
 0x8bc   : > { %v1964_v39 = vpack.c.bf16 %v1963_v63, %v1962_v61 }
 0x8be   : > { %3251 = vmatmul.msk.bf16.vlgmr.msra.gmra.mxu0 %vm1175_vm15, %v1964_v39 }
 0x8bf   : > { %2201 = vmatpush.bf16.xpose.msra.mxu0 %v2192_v58 }
 0x8c5   : > { %v1987_v20 = vpop.permute.xlu0 %1986 }
 0x8cd   : > { %v2095_v21 = vpop.permute.xlu0 %2094 }
 0x8d0   : > { %v1640_v5 = vpop.f32.mrf.mxu0 }
 0x8d1   : > { %v1641_v7 = vadd.f32 %v3398_v6, %v1640_v5 }
 0x8d3   : > { %v1645_v12 = vmax.f32 %v1641_v7, 0.0 }
 0x8d8   : > { %v1642_v9 = vpop.f32.mrf.mxu0 }
 0x8d9   : > { %v1643_v11 = vadd.f32 %v3398_v6, %v1642_v9 }
 0x8db   : > { %v1646_v15 = vmax.f32 %v1643_v11, 0.0 }
 0x8dd   : > { %v1647_v8 = vpack.c.bf16 %v1646_v15, %v1645_v12 }
 0x8df   : > { %3240 = vmatmul.msk.bf16.vlgmr.msrb.gmra.mxu1 %vm1675_vm2, %v1647_v8 }
 0x8e0   : > { %2111 = vmatpush.bf16.xpose.msrb.mxu1 %v2102_v28 }
 0x8ef   : > { %3252 = vmatmul.msk.bf16.vlgmr.msra.gmra.mxu1 %vm1154_vm14, %v1987_v20 }
 0x8ff   : > { %3256 = vmatmul.msk.bf16.vlgmr.msrb.gmra.mxu1 %vm1154_vm14, %v2095_v21 }
 0x93b   : > { %v1980_v22 = vpop.f32.mrf.mxu0 }
 0x943   : > { %v1982_v23 = vpop.f32.mrf.mxu0 }
 0x944   : > { %v1985_v24 = vpack.c.bf16 %v1982_v23, %v1980_v22 }
 0x946   : > { %3255 = vmatmul.msk.bf16.vlgmr.msrb.gmra.mxu0 %vm1154_vm14, %v1985_v24 }
 0x956   : > { %3259 = vmatmul.msk.bf16.vlgmr.msra.gmra.mxu0 %vm1154_vm14, %v2185_v26 }
 0x95c   : > { %v1688_v18 = vpop.f32.mrf.mxu1 }
 0x95d   : > { %v1689_v60 = vadd.f32 %v3399_v25, %v1688_v18 }
 0x95f   : > { %v4082_v61 = vadd.f32 %v1689_v60, %v3987_v13 }
 0x961   : > { %v1697_v63 = vsel %vm1012_vm0, %v4082_v61, 0.0 }
 0x964   : > { %v1690_v0 = vpop.f32.mrf.mxu1 }
 0x965   : > { %v4063_v31 = vadd.f32 %v3399_v25, %v1690_v0 }
 0x967   : > { %v1694_v24 = vadd.f32 %v4063_v31, %v3993_v14 }
 0x969   : > { %v1700_v26 = vsel %vm1012_vm0, %v1694_v24, 0.0 }
 0x96c   : > { %v2005_v40 = vpop.f32.mrf.mxu1 }
 0x96d   : > { %v2010_v29 = vsel %vm1175_vm15, %v2005_v40, -inf }
 0x96e   : > { %2011 = vmax.xlane.f32.xlu0 %v2010_v29 }
 0x974   : > { %v2007_v30 = vpop.f32.mrf.mxu1 }
 0x975   : > { %v2013_v2 = vsel %vm1175_vm15, %v2007_v30, -inf }
 0x976   : > { %2014 = vmax.xlane.f32.xlu2 %v2013_v2 }
 0x97c   : > { %v2113_v32 = vpop.f32.mrf.mxu1 }
 0x97d   : > { %v2118_v33 = vsel %vm1175_vm15, %v2113_v32, -inf }
 0x97e   : > { %2119 = vmax.xlane.f32.xlu1 %v2118_v33 }
 0x984   : > { %v2115_v19 = vpop.f32.mrf.mxu1 }
 0x985   : > { %v2121_v36 = vsel %vm1175_vm15, %v2115_v19, -inf }
 0x986   : > { %2122 = vmax.xlane.f32.xlu0 %v2121_v36 }
 0x9c3   : > { %v4069_v37 = vpop.f32.mrf.mxu0 }
 0x9cb   : > { %v4071_v38 = vpop.f32.mrf.mxu0 }
 0x9d3   : > { %v2203_v41 = vpop.f32.mrf.mxu0 }
 0x9d4   : > { %v2208_v55 = vsel %vm1175_vm15, %v2203_v41, -inf }
 0x9d5   : > { %2209 = vmax.xlane.f32.xlu2 %v2208_v55 }
 0x9db   : > { %v2205_v44 = vpop.f32.mrf.mxu0 }
 0x9dc   : > { %v2211_v62 = vsel %vm1175_vm15, %v2205_v44, -inf }
 0x9dd   : > { %2212 = vmax.xlane.f32.xlu1 %v2211_v62 }
 0x9e1   : > { %v2012_v35 = vpop.xlane.xlu0 %2011 }
 0x9e2   : > { %v2016_v50 = vsub.f32 %v2005_v40, %v2012_v35 }
 0x9e4   : > { %v2018_v43 = vmul.f32 1.442695, %v2016_v50 }
 0x9e6   : > { %3476 = vpow2.f32 %v2018_v43 }
 0x9e9   : > { %v2015_v4 = vpop.xlane.xlu2 %2014 }
 0x9ea   : > { %v2017_v17 = vsub.f32 %v2007_v30, %v2015_v4 }
 0x9ec   : > { %v3477_v42 = vpop.eup %3476  ;;  %v2020_v34 = vmul.f32 1.442695, %v2017_v17 }
 0x9ed   : > { %v2022_v45 = vsel %vm1175_vm15, %v3477_v42, 0.0 }
 0x9ee   : > { %3478 = vpow2.f32 %v2020_v34  ;;  %2023 = vadd.xlane.f32.xlu0 %v2022_v45 }
 0x9f1   : > { %v2120_v46 = vpop.xlane.xlu1 %2119 }
 0x9f2   : > { %v2124_v47 = vsub.f32 %v2113_v32, %v2120_v46  ;;  %v1878_v46 = vld [vmem:[%s4325_s11 + $0xc] sm:$0xf] }
 0x9f4   : > { %v3479_v27 = vpop.eup %3478  ;;  %v2126_v48 = vmul.f32 1.442695, %v2124_v47  ;;  %v2256_v47 = vsel %vm1291_vm1, %v1878_v46, 0 }
 0x9f5   : > { %v2025_v49 = vsel %vm1175_vm15, %v3479_v27, 0.0 }
 0x9f6   : > { %3480 = vpow2.f32 %v2126_v48  ;;  %2026 = vadd.xlane.f32.xlu2 %v2025_v49  ;;  %2033 = vrot.lane.b32.xlu1 %v3979_v3, %s4328_s10  ;;  %s4333_s10 = sld [smem:[#allocation8_spill]] }
 0x9f9   : > { %v2123_v51 = vpop.xlane.xlu0 %2122 }
 0x9fa   : > { %v2125_v52 = vsub.f32 %v2115_v19, %v2123_v51 }
 0x9fc   : > { %v3481_v53 = vpop.eup %3480  ;;  %v2128_v54 = vmul.f32 1.442695, %v2125_v52 }
 0x9fd   : > { %v2130_v56 = vsel %vm1175_vm15, %v3481_v53, 0.0 }
 0x9fe   : > { %3482 = vpow2.f32 %v2128_v54  ;;  %2131 = vadd.xlane.f32.xlu0 %v2130_v56 }
 0xa04   : > { %v3483_v57 = vpop.eup %3482 }
 0xa05   : > { %v2133_v59 = vsel %vm1175_vm15, %v3483_v57, 0.0 }
 0xa06   : > { %2134 = vadd.xlane.f32.xlu2 %v2133_v59 }
 0xa20   : > { %1698 = vadd.xlane.f32.xlu1 %v1697_v63 }
 0xa48   : > { %v2210_v1 = vpop.xlane.xlu2 %2209 }
 0xa49   : > { %v2214_v39 = vsub.f32 %v2203_v41, %v2210_v1 }
 0xa4b   : > { %v2216_v58 = vmul.f32 1.442695, %v2214_v39 }
 0xa4d   : > { %3484 = vpow2.f32 %v2216_v58  ;;  %v3401_v58 = vld [vmem:[%s4329_s18] ss:$0 sm:$0xff]  ;;  %s4334_s18 = sld [smem:[#allocation11_spill]] }
 0xa50   : > { %v2213_v5 = vpop.xlane.xlu1 %2212 }
 0xa51   : > { %v2215_v6 = vsub.f32 %v2205_v44, %v2213_v5  ;;  %v1876_v44 = vld [vmem:[%s4325_s11 + $0x4] sm:$0xf] }
 0xa52   : > { %v2058_v62 = vsel %vm1291_vm1, %v1876_v44, 0 }
 0xa53   : > { %v3485_v7 = vpop.eup %3484  ;;  %v2218_v9 = vmul.f32 1.442695, %v2215_v6  ;;  %2067 = vmatpush.bf16.msrb.mxu2 %v2058_v62 }
 0xa54   : > { %v2220_v11 = vsel %vm1175_vm15, %v3485_v7, 0.0 }
 0xa55   : > { %3486 = vpow2.f32 %v2218_v9  ;;  %2221 = vadd.xlane.f32.xlu0 %v2220_v11  ;;  %v3564_v9 = vld [vmem:[%s3870_s26] sm:$0xff] }
 0xa5b   : > { %v3487_v12 = vpop.eup %3486 }
 0xa5c   : > { %v2223_v13 = vsel %vm1175_vm15, %v3487_v12, 0.0 }
 0xa5d   : > { %2224 = vadd.xlane.f32.xlu2 %v2223_v13 }
 0xa61   : > { %v2024_v15 = vpop.xlane.xlu0 %2023 }
 0xa62   : > { %3488 = vrcp.f32 %v2024_v15 }
 0xa68   : > { %v2034_v16 = vpop.permute.xlu1 %2033  ;;  %v3489_v28 = vpop.eup %3488 }
 0xa69   : > { %v2027_v8 = vpop.xlane.xlu2 %2026  ;;  %2046 = vmatpush.bf16.msra.mxu3 %v2034_v16  ;;  %2141 = vrot.lane.b32.xlu0 %v3979_v3, %s3619_s1  ;;  %v2030_v21 = vmul.f32 %v3489_v28, %v3477_v42  ;;  %s4330_s1 = sld [smem:[#allocation10_spill]] }
 0xa6a   : > { %3490 = vrcp.f32 %v2027_v8 }
 0xa6f   : > { %v3335_v62 = vld [vmem:[%s4330_s1] sm:$0xff] }
 0xa70   : > { %v3491_v20 = vpop.eup %3490 }
 0xa71   : > { %v2031_v22 = vmul.f32 %v3491_v20, %v3479_v27  ;;  %v2132_v18 = vpop.xlane.xlu0 %2131  ;;  %v1877_v27 = vld [vmem:[%s4325_s11 + $0x8] sm:$0xf] }
 0xa72   : > { %v2166_v48 = vsel %vm1291_vm1, %v1877_v27, 0 }
 0xa73   : > { %v2032_v23 = vpack.c.bf16 %v2031_v22, %v2030_v21  ;;  %2175 = vmatpush.bf16.msra.mxu2 %v2166_v48  ;;  %v3565_v21 = vld [vmem:[%s3870_s26 + $0x8] sm:$0xff]  ;;  %s4331_s26 = sld [smem:[#allocation4_spill]] }
 0xa75   : > { %2231 = vrot.lane.b32.xlu2 %v3979_v3, %s3618_s2  ;;  %3253 = vmatmul.msk.bf16.vlgmr.msra.gmra.mxu3 %vm1175_vm15, %v2032_v23  ;;  %s4332_s2 = sld [smem:[#allocation5_spill]] }
 0xa79   : > { %v2135_v25 = vpop.xlane.xlu2 %2134 }
 0xa93   : > { %1701 = vadd.xlane.f32.xlu0 %v1700_v26  ;;  %v1699_v16 = vpop.xlane.xlu1 %1698 }
 0xa94   : > { %v1703_v28 = vmul.f32 %v1699_v16, %v3810_v10 }
 0xac8   : > { %v2222_v0 = vpop.xlane.xlu0 %2221 }
 0xac9   : > { %3492 = vrcp.f32 %v2222_v0 }
 0xaca   : > { %3494 = vrcp.f32 %v2135_v25 }
 0xacf   : > { %v3493_v29 = vpop.eup %3492 }
 0xad0   : > { %v2225_v40 = vpop.xlane.xlu2 %2224  ;;  %v3495_v30 = vpop.eup %3494  ;;  %v2228_v32 = vmul.f32 %v3493_v29, %v3485_v7 }
 0xad1   : > { %3496 = vrcp.f32 %v2225_v40  ;;  %v2139_v14 = vmul.f32 %v3495_v30, %v3483_v57 }
 0xad2   : > { %3498 = vrcp.f32 %v2132_v18 }
 0xad7   : > { %v3497_v3 = vpop.eup %3496 }
 0xad8   : > { %v3499_v2 = vpop.eup %3498  ;;  %v2229_v33 = vmul.f32 %v3497_v3, %v3487_v12  ;;  %v2232_v19 = vpop.permute.xlu2 %2231 }
 0xad9   : > { %2244 = vmatpush.bf16.msra.mxu1 %v2232_v19  ;;  %v2138_v36 = vmul.f32 %v3499_v2, %v3481_v53 }
 0xada   : > { %v2230_v31 = vpack.c.bf16 %v2229_v33, %v2228_v32 }
 0xadb   : > { %v2142_v41 = vpop.permute.xlu0 %2141  ;;  %v2140_v55 = vpack.c.bf16 %v2139_v14, %v2138_v36 }
 0xadc   : > { %2154 = vmatpush.bf16.msrb.mxu3 %v2142_v41  ;;  %3260 = vmatmul.msk.bf16.vlgmr.msra.gmra.mxu1 %vm1175_vm15, %v2230_v31  ;;  %v3336_v41 = vld [vmem:[%s4330_s1 + $0x8] sm:$0xff] }
 0xadd   : > { %2430 = vmatpush.bf16.msrb.mxu0 %v3336_v41 }
 0xadf   : > { %3257 = vmatmul.msk.bf16.vlgmr.msrb.gmra.mxu3 %vm1175_vm15, %v2140_v55 }
 0xae0   : > { %2265 = vmatpush.bf16.msra.mxu3 %v2256_v47 }
 0xae1   : > { %2431 = vmatpush.bf16.msrb.mxu0 %v3335_v62 }
 0xaf8   : > { %v2048_v35 = vpop.f32.mrf.mxu3 }
 0xb00   : > { %v2050_v50 = vpop.f32.mrf.mxu3 }
 0xb01   : > { %v2053_v43 = vpack.c.bf16 %v2050_v50, %v2048_v35 }
 0xb03   : > { %3254 = vmatmul.msk.bf16.vlgmr.msrb.gmra.mxu2 %vm1154_vm14, %v2053_v43 }
 0xb06   : > { %v1702_v4 = vpop.xlane.xlu0 %1701 }
 0xb07   : > { %v1704_v17 = vmul.f32 %v1702_v4, %v3810_v10 }
 0xb09   : > { %v4102_v42 = vsub.f32 %v1694_v24, %v1704_v17 }
 0xb0b   : > { %v1708_v34 = vmul.f32 %v4102_v42, %v4102_v42 }
 0xb0d   : > { %v1712_v45 = vsel %vm1012_vm0, %v1708_v34, 0.0 }
 0xb0e   : > { %1713 = vadd.xlane.f32.xlu0 %v1712_v45 }
 0xb59   : > { %v2246_v49 = vpop.f32.mrf.mxu1 }
 0xb61   : > { %v2248_v51 = vpop.f32.mrf.mxu1 }
 0xb62   : > { %v2251_v52 = vpack.c.bf16 %v2248_v51, %v2246_v49  ;;  %v2156_v53 = vpop.f32.mrf.mxu3 }
 0xb64   : > { %3261 = vmatmul.msk.bf16.vlgmr.msra.gmra.mxu3 %vm1154_vm14, %v2251_v52 }
 0xb6a   : > { %v2158_v54 = vpop.f32.mrf.mxu3 }
 0xb6b   : > { %v2161_v56 = vpack.c.bf16 %v2158_v54, %v2156_v53 }
 0xb6d   : > { %3258 = vmatmul.msk.bf16.vlgmr.msra.gmra.mxu2 %vm1154_vm14, %v2161_v56 }
 0xb81   : > { %v1714_v18 = vpop.xlane.xlu0 %1713 }
 0xb82   : > { %v1716_v25 = vmul.f32 0.032258064, %v1714_v18 }
 0xb84   : > { %3500 = vrsqrt.f32 %v1716_v25  ;;  %vm1736_vm3 = vcmp.eq.f32.partialorder %v1716_v25, inf  ;;  %v1739_v17 = vand.u32 2147483648, %v1716_v25  ;;  %vm1738_vm4 = vcmp.eq.f32.partialorder %v1716_v25, 0.0 }
 0xb86   : > { %v2069_v57 = vpop.f32.mrf.mxu2 }
 0xb87   : > { %v2090_v60 = vadd.f32 %v4069_v37, %v2069_v57 }
 0xb8a   : > { %v3501_v0 = vpop.eup %3500 }
 0xb8b   : > { %v1730_v40 = vmul.f32 %v3501_v0, %v1716_v25 }
 0xb8d   : > { %v1731_v29 = vmul.f32 %v3501_v0, %v1730_v40 }
 0xb8e   : > { %v2071_v59 = vpop.f32.mrf.mxu2 }
 0xb8f   : > { %v2092_v7 = vadd.f32 %v4071_v38, %v2071_v59  ;;  %v4126_v38 = vsub.f32 %v4082_v61, %v1703_v28  ;;  %v1732_v61 = vmul.f32 0.5, %v1731_v29 }
 0xb91   : > { %v1707_v24 = vmul.f32 %v4126_v38, %v4126_v38  ;;  %v1733_v32 = vsub.f32 1.5, %v1732_v61 }
 0xb93   : > { %v1709_v26 = vsel %vm1012_vm0, %v1707_v24, 0.0  ;;  %v1734_v14 = vmul.f32 %v3501_v0, %v1733_v32  ;;  %v3402_v0 = vld [vmem:[%s4332_s2] ss:$0 sm:$0xff]  ;;  %s4336_s2 = sld [smem:[#allocation12_spill]] }
 0xb95   : > { %v1735_v44 = vmul.f32 %v1734_v14, %v1716_v25 }
 0xb97   : > { %v1737_v43 = vsel %vm1736_vm3, %v1716_v25, %v1735_v44 }
 0xb98   : > { %v1740_v45 = vsel %vm1738_vm4, %v1739_v17, %v1737_v43 }
 0xb99   : > { %v1742_v46 = vadd.f32 1e-06, %v1740_v45 }
 0xb9b   : > { %vm1762_vm8 = vweird.f32 %v1742_v46 }
 0xbe7   : > { %v2267_v63 = vpop.f32.mrf.mxu3 }
 0xbef   : > { %v2269_v8 = vpop.f32.mrf.mxu3 }
 0xbf0   : > { %v2177_v1 = vpop.f32.mrf.mxu2 }
 0xbf1   : > { %v2182_v39 = vadd.f32 %v2177_v1, %v2090_v60 }
 0xbf3   : > { %v2272_v5 = vadd.f32 %v2267_v63, %v2182_v39 }
 0xbf5   : > { %v2277_v6 = vadd.f32 %v3401_v58, %v2272_v5 }
 0xbf7   : > { %v4117_v11 = vadd.f32 %v3564_v9, %v2277_v6  ;;  %v1768_v6 = vand.u32 2147483648, %v1742_v46  ;;  %v1766_v9 = vand.u32 2147483647, %v1742_v46 }
 0xbf8   : > { %v2179_v12 = vpop.f32.mrf.mxu2 }
 0xbf9   : > { %v2183_v13 = vadd.f32 %v2179_v12, %v2092_v7  ;;  %v2281_v15 = vsel %vm1012_vm0, %v4117_v11, 0.0  ;;  %v1769_v16 = vor.u32 1.1754944e-38, %v1768_v6  ;;  %vm1767_vm11 = vcmp.eq.f32.partialorder %v1766_v9, 8.507059e+37 }
 0xbfa   : > { %2282 = vadd.xlane.f32.xlu2 %v2281_v15 }
 0xbfb   : > { %v2273_v37 = vadd.f32 %v2269_v8, %v2183_v13  ;;  %v3400_v8 = vld [vmem:[%s4331_s26] ss:$0 sm:$0xff]  ;;  %s4335_s26 = sld [smem:[#allocation9_spill]] }
 0xbfd   : > { %v2278_v20 = vadd.f32 %v3401_v58, %v2273_v37 }
 0xbff   : > { %v4123_v22 = vadd.f32 %v3565_v21, %v2278_v20  ;;  %v1775_v21 = vmul.f32 %v3400_v8, %v4102_v42 }
 0xc01   : > { %v2284_v23 = vsel %vm1012_vm0, %v4123_v22, 0.0 }
 0xc02   : > { %2285 = vadd.xlane.f32.xlu1 %v2284_v23 }
 0xc0a   : > { %1710 = vadd.xlane.f32.xlu1 %v1709_v26  ;;  %v1774_v26 = vmul.f32 %v3400_v8, %v4126_v38 }
 0xc6d   : > { %v2283_v30 = vpop.xlane.xlu2 %2282 }
 0xc6e   : > { %v2287_v3 = vmul.f32 %v2283_v30, %v3810_v10 }
 0xc70   : > { %v4135_v2 = vsub.f32 %v4117_v11, %v2287_v3 }
 0xc72   : > { %v2291_v33 = vmul.f32 %v4135_v2, %v4135_v2 }
 0xc74   : > { %v2293_v19 = vsel %vm1012_vm0, %v2291_v33, 0.0  ;;  %v3334_v33 = vld [vmem:[%s4333_s10 + $0x8] sm:$0xff] }
 0xc75   : > { %2294 = vadd.xlane.f32.xlu1 %v2293_v19  ;;  %v2286_v31 = vpop.xlane.xlu1 %2285  ;;  %2393 = vmatpush.bf16.msrb.mxu2 %v3334_v33  ;;  %v3333_v19 = vld [vmem:[%s4333_s10] sm:$0xff] }
 0xc76   : > { %v2288_v36 = vmul.f32 %v2286_v31, %v3810_v10 }
 0xc78   : > { %v4143_v55 = vsub.f32 %v4123_v22, %v2288_v36 }
 0xc79   : > { %2394 = vmatpush.bf16.msrb.mxu2 %v3333_v19 }
 0xc7a   : > { %v2292_v35 = vmul.f32 %v4143_v55, %v4143_v55 }
 0xc7c   : > { %v2296_v50 = vsel %vm1012_vm0, %v2292_v35, 0.0 }
 0xc7d   : > { %2297 = vadd.xlane.f32.xlu2 %v2296_v50  ;;  %v1711_v4 = vpop.xlane.xlu1 %1710 }
 0xc7e   : > { %v1715_v34 = vmul.f32 0.032258064, %v1711_v4 }
 0xc80   : > { %3502 = vrsqrt.f32 %v1715_v34  ;;  %vm1724_vm5 = vcmp.eq.f32.partialorder %v1715_v34, inf  ;;  %v1727_v57 = vand.u32 2147483648, %v1715_v34  ;;  %vm1726_vm6 = vcmp.eq.f32.partialorder %v1715_v34, 0.0 }
 0xc81   : > { %3504 = vrcp.f32 %v1742_v46 }
 0xc86   : > { %v3503_v47 = vpop.eup %3502 }
 0xc87   : > { %v1718_v27 = vmul.f32 %v3503_v47, %v1715_v34  ;;  %v3505_v51 = vpop.eup %3504 }
 0xc88   : > { %v1758_v54 = vmul.f32 %v3505_v51, %v1742_v46  ;;  %vm1763_vm7 = vweird.f32 %v3505_v51 }
 0xc89   : > { %v1719_v48 = vmul.f32 %v3503_v47, %v1718_v27  ;;  %vm1764_vm9 = vmor %vm1762_vm8, %vm1763_vm7 }
 0xc8a   : > { %v1759_v63 = vsub.f32 1.0, %v1758_v54 }
 0xc8b   : > { %v1720_v49 = vmul.f32 0.5, %v1719_v48 }
 0xc8c   : > { %v1760_v39 = vmul.f32 %v3505_v51, %v1759_v63 }
 0xc8d   : > { %v1721_v52 = vsub.f32 1.5, %v1720_v49 }
 0xc8e   : > { %v1761_v58 = vadd.f32 %v3505_v51, %v1760_v39 }
 0xc8f   : > { %v1722_v53 = vmul.f32 %v3503_v47, %v1721_v52 }
 0xc90   : > { %v1765_v13 = vsel %vm1764_vm9, %v3505_v51, %v1761_v58 }
 0xc91   : > { %v1723_v56 = vmul.f32 %v1722_v53, %v1715_v34  ;;  %v1770_v20 = vsel %vm1767_vm11, %v1769_v16, %v1765_v13 }
 0xc92   : > { %v1777_v25 = vmul.f32 %v1775_v21, %v1770_v20 }
 0xc93   : > { %v1725_v59 = vsel %vm1724_vm5, %v1715_v34, %v1723_v56 }
 0xc94   : > { %v1728_v60 = vsel %vm1726_vm6, %v1727_v57, %v1725_v59  ;;  %v1782_v30 = vadd.f32 %v3402_v0, %v1777_v25  ;;  %v4163_v25 = vld [vmem:[%s3703_s20] sm:$0x7] }
 0xc95   : > { %v1741_v1 = vadd.f32 1e-06, %v1728_v60 }
 0xc97   : > { %3506 = vrcp.f32 %v1741_v1  ;;  %v1754_v15 = vand.u32 2147483648, %v1741_v1  ;;  %v1752_v28 = vand.u32 2147483647, %v1741_v1  ;;  %vm1748_vm12 = vweird.f32 %v1741_v1 }
 0xc99   : > { %v1755_v24 = vor.u32 1.1754944e-38, %v1754_v15  ;;  %vm1753_vm3 = vcmp.eq.f32.partialorder %v1752_v28, 8.507059e+37 }
 0xc9d   : > { %v3507_v5 = vpop.eup %3506 }
 0xc9e   : > { %v1744_v7 = vmul.f32 %v3507_v5, %v1741_v1  ;;  %vm1749_vm10 = vweird.f32 %v3507_v5 }
 0xc9f   : > { %vm1750_vm13 = vmor %vm1748_vm12, %vm1749_vm10 }
 0xca0   : > { %v1745_v12 = vsub.f32 1.0, %v1744_v7  ;;  %v4157_v7 = vld [vmem:[%s3698_s12] sm:$0x7] }
 0xca1   : > { %v2355_v9 = vperm.slane %v4157_v7, 1 }
 0xca2   : > { %v1746_v37 = vmul.f32 %v3507_v5, %v1745_v12 }
 0xca3   : > { %v2356_v20 = vmul.f32 %v2355_v9, %v4135_v2 }
 0xca4   : > { %v1747_v23 = vadd.f32 %v3507_v5, %v1746_v37 }
 0xca6   : > { %v1751_v18 = vsel %vm1750_vm13, %v3507_v5, %v1747_v23  ;;  %v2357_v23 = vmul.f32 %v2355_v9, %v4143_v55 }
 0xca7   : > { %v1756_v40 = vsel %vm1753_vm3, %v1755_v24, %v1751_v18 }
 0xca8   : > { %v1776_v29 = vmul.f32 %v1774_v26, %v1756_v40 }
 0xcaa   : > { %v1781_v61 = vadd.f32 %v3402_v0, %v1776_v29  ;;  %v2360_v0 = vperm.slane %v4163_v25, 1 }
 0xcac   : > { %v1783_v3 = vpack.c.bf16 %v1782_v30, %v1781_v61 }
 0xcae   : > { %3279 = vmatmul.msk.bf16.vlgmr.msrb.gmra.mxu0 %vm1012_vm0, %v1783_v3 }
 0xce8   : > { %v2295_v42 = vpop.xlane.xlu1 %2294 }
 0xce9   : > { %v2299_v32 = vmul.f32 0.032258064, %v2295_v42  ;;  %v3403_v42 = vld [vmem:[%s4334_s18] ss:$0 sm:$0xff]  ;;  %s4342_s18 = sld [smem:[#allocation15_spill]] }
 0xceb   : > { %3508 = vrsqrt.f32 %v2299_v32  ;;  %vm2308_vm4 = vcmp.eq.f32.partialorder %v2299_v32, inf  ;;  %v2311_v34 = vand.u32 2147483648, %v2299_v32  ;;  %vm2310_vm5 = vcmp.eq.f32.partialorder %v2299_v32, 0.0 }
 0xcf0   : > { %v2298_v14 = vpop.xlane.xlu2 %2297 }
 0xcf1   : > { %v3509_v38 = vpop.eup %3508  ;;  %v2300_v31 = vmul.f32 0.032258064, %v2298_v14 }
 0xcf2   : > { %v2302_v36 = vmul.f32 %v3509_v38, %v2299_v32 }
 0xcf3   : > { %3510 = vrsqrt.f32 %v2300_v31  ;;  %vm2320_vm6 = vcmp.eq.f32.partialorder %v2300_v31, inf  ;;  %v2323_v52 = vand.u32 2147483648, %v2300_v31  ;;  %vm2322_vm7 = vcmp.eq.f32.partialorder %v2300_v31, 0.0 }
 0xcf4   : > { %v2303_v41 = vmul.f32 %v3509_v38, %v2302_v36 }
 0xcf6   : > { %v2304_v44 = vmul.f32 0.5, %v2303_v41 }
 0xcf8   : > { %v2305_v62 = vsub.f32 1.5, %v2304_v44 }
 0xcf9   : > { %v3511_v35 = vpop.eup %3510 }
 0xcfa   : > { %v2306_v50 = vmul.f32 %v3509_v38, %v2305_v62  ;;  %v2314_v43 = vmul.f32 %v3511_v35, %v2300_v31  ;;  %v3404_v62 = vld [vmem:[%s4335_s26] ss:$0 sm:$0xff]  ;;  %s1006_s26 = scalar_lea.vmem %s3788_s24, %s3798_s0 }
 0xcfc   : > { %v2307_v4 = vmul.f32 %v2306_v50, %v2299_v32  ;;  %v2315_v17 = vmul.f32 %v3511_v35, %v2314_v43 }
 0xcfe   : > { %v2309_v45 = vsel %vm2308_vm4, %v2299_v32, %v2307_v4  ;;  %v2316_v46 = vmul.f32 0.5, %v2315_v17 }
 0xcff   : > { %v2312_v47 = vsel %vm2310_vm5, %v2311_v34, %v2309_v45 }
 0xd00   : > { %v2325_v27 = vadd.f32 1e-06, %v2312_v47  ;;  %v2317_v48 = vsub.f32 1.5, %v2316_v46 }
 0xd02   : > { %3512 = vrcp.f32 %v2325_v27  ;;  %v2318_v49 = vmul.f32 %v3511_v35, %v2317_v48  ;;  %v2338_v58 = vand.u32 2147483648, %v2325_v27  ;;  %vm2332_vm9 = vweird.f32 %v2325_v27 }
 0xd03   : > { %v2336_v5 = vand.u32 2147483647, %v2325_v27 }
 0xd04   : > { %v2319_v51 = vmul.f32 %v2318_v49, %v2300_v31  ;;  %v2339_v15 = vor.u32 1.1754944e-38, %v2338_v58 }
 0xd05   : > { %vm2337_vm11 = vcmp.eq.f32.partialorder %v2336_v5, 8.507059e+37  ;;  %v2438_v5 = vld [vmem:[%s4336_s2] sm:$0xf] }
 0xd06   : > { %v2321_v53 = vsel %vm2320_vm6, %v2300_v31, %v2319_v51 }
 0xd07   : > { %v2324_v54 = vsel %vm2322_vm7, %v2323_v52, %v2321_v53 }
 0xd08   : > { %v3513_v56 = vpop.eup %3512  ;;  %v2326_v57 = vadd.f32 1e-06, %v2324_v54 }
 0xd09   : > { %v2328_v59 = vmul.f32 %v3513_v56, %v2325_v27  ;;  %vm2333_vm8 = vweird.f32 %v3513_v56 }
 0xd0a   : > { %3514 = vrcp.f32 %v2326_v57  ;;  %vm2334_vm10 = vmor %vm2332_vm9, %vm2333_vm8  ;;  %v2352_v16 = vand.u32 2147483648, %v2326_v57  ;;  %v2350_v37 = vand.u32 2147483647, %v2326_v57  ;;  %vm2346_vm13 = vweird.f32 %v2326_v57 }
 0xd0b   : > { %v2329_v60 = vsub.f32 1.0, %v2328_v59 }
 0xd0c   : > { %v2353_v24 = vor.u32 1.1754944e-38, %v2352_v16  ;;  %vm2351_vm4 = vcmp.eq.f32.partialorder %v2350_v37, 8.507059e+37 }
 0xd0d   : > { %v2330_v63 = vmul.f32 %v3513_v56, %v2329_v60 }
 0xd0f   : > { %v2331_v1 = vadd.f32 %v3513_v56, %v2330_v63 }
 0xd10   : > { %v3515_v39 = vpop.eup %3514 }
 0xd11   : > { %v2342_v6 = vmul.f32 %v3515_v39, %v2326_v57  ;;  %v2335_v12 = vsel %vm2334_vm10, %v3513_v56, %v2331_v1  ;;  %vm2347_vm12 = vweird.f32 %v3515_v39 }
 0xd12   : > { %v2340_v28 = vsel %vm2337_vm11, %v2339_v15, %v2335_v12  ;;  %vm2348_vm3 = vmor %vm2346_vm13, %vm2347_vm12 }
 0xd13   : > { %v2343_v13 = vsub.f32 1.0, %v2342_v6  ;;  %v2358_v18 = vmul.f32 %v2356_v20, %v2340_v28  ;;  %v2613_v6 = vsel %vm1291_vm1, %v2438_v5, 0 }
 0xd15   : > { %v2344_v8 = vmul.f32 %v3515_v39, %v2343_v13  ;;  %v2361_v61 = vadd.f32 %v2360_v0, %v2358_v18 }
 0xd17   : > { %v2345_v21 = vadd.f32 %v3515_v39, %v2344_v8 }
 0xd19   : > { %v2349_v26 = vsel %vm2348_vm3, %v3515_v39, %v2345_v21 }
 0xd1a   : > { %v2354_v40 = vsel %vm2351_vm4, %v2353_v24, %v2349_v26 }
 0xd1b   : > { %v2359_v29 = vmul.f32 %v2357_v23, %v2354_v40 }
 0xd1d   : > { %v2362_v30 = vadd.f32 %v2360_v0, %v2359_v29 }
 0xd1f   : > { %v2363_v2 = vpack.c.bf16 %v2362_v30, %v2361_v61 }
 0xd21   : > { %3270 = vmatmul.msk.bf16.vlgmr.msrb.gmra.mxu2 %vm1012_vm0, %v2363_v2 }
 0xd2b   : > { %v2433_v3 = vpop.f32.mrf.mxu0 }
 0xd2c   : > { %v2434_v55 = vadd.f32 %v3403_v42, %v2433_v3 }
 0xd2e   : > { %v2445_v33 = vpack.c.bf16 %v2434_v55, %v2434_v55 }
 0xd30   : > { %v2454_v38 = vunpack.c.l.b16 %v2445_v33 }
 0xd33   : > { %v2435_v32 = vpop.f32.mrf.mxu0 }
 0xd34   : > { %v2436_v19 = vadd.f32 %v3403_v42, %v2435_v32 }
 0xd36   : > { %v2446_v14 = vpack.c.bf16 %v2436_v19, %v2436_v19 }
 0xd38   : > { %v2455_v31 = vunpack.c.l.b16 %v2446_v14 }
 0xd3a   : > { %v4168_v36 = vpack.c.b16 %v2455_v31, %v2454_v38 }
 0xd3c   : > { %v2461_v41 = vsel %vm1154_vm14, %v4168_v36, 0 }
 0xd3d   : > { %2470 = vmatpush.bf16.xpose.msrb.mxu1 %v2461_v41 }
 0xda4   : > { %v2396_v44 = vpop.f32.mrf.mxu2 }
 0xda5   : > { %v2397_v35 = vadd.f32 %v3404_v62, %v2396_v44 }
 0xda7   : > { %v2443_v43 = vpack.c.bf16 %v2397_v35, %v2397_v35 }
 0xda9   : > { %v2449_v34 = vunpack.c.l.b16 %v2443_v43 }
 0xdac   : > { %v2398_v50 = vpop.f32.mrf.mxu2 }
 0xdad   : > { %v2399_v4 = vadd.f32 %v3404_v62, %v2398_v50 }
 0xdaf   : > { %v2444_v17 = vpack.c.bf16 %v2399_v4, %v2399_v4 }
 0xdb1   : > { %v2450_v45 = vunpack.c.l.b16 %v2444_v17 }
 0xdb3   : > { %v2451_v46 = vpack.c.b16 %v2450_v45, %v2449_v34 }
 0xdb5   : > { %3280 = vmatmul.msk.bf16.vlgmr.msrb.gmra.mxu1 %vm1154_vm14, %v2451_v46 }
 0xe32   : > { %v2472_v47 = vpop.f32.mrf.mxu1 }
 0xe33   : > { %v2477_v27 = vsel %vm1175_vm15, %v2472_v47, -inf }
 0xe34   : > { %2478 = vmax.xlane.f32.xlu0 %v2477_v27 }
 0xe3a   : > { %v2474_v48 = vpop.f32.mrf.mxu1 }
 0xe3b   : > { %v2480_v49 = vsel %vm1175_vm15, %v2474_v48, -inf }
 0xe3c   : > { %2481 = vmax.xlane.f32.xlu1 %v2480_v49 }
 0xe55   : > { %2500 = vrot.lane.b32.xlu1 %v4168_v36, %s3609_s7  ;;  %s4337_s7 = smov 72  }
 0xe5d   : > { %2631 = vrot.lane.b32.xlu1 %v4168_v36, %s3616_s23 }
 0xea7   : > { %v2479_v51 = vpop.xlane.xlu0 %2478 }
 0xea8   : > { %v2483_v52 = vsub.f32 %v2472_v47, %v2479_v51 }
 0xeaa   : > { %v2485_v53 = vmul.f32 1.442695, %v2483_v52 }
 0xeac   : > { %3516 = vpow2.f32 %v2485_v53 }
 0xeaf   : > { %v2482_v54 = vpop.xlane.xlu1 %2481 }
 0xeb0   : > { %v2484_v56 = vsub.f32 %v2474_v48, %v2482_v54 }
 0xeb2   : > { %v3517_v57 = vpop.eup %3516  ;;  %v2487_v59 = vmul.f32 1.442695, %v2484_v56 }
 0xeb3   : > { %v2489_v60 = vsel %vm1175_vm15, %v3517_v57, 0.0 }
 0xeb4   : > { %3518 = vpow2.f32 %v2487_v59  ;;  %2490 = vadd.xlane.f32.xlu2 %v2489_v60 }
 0xeba   : > { %v3519_v63 = vpop.eup %3518 }
 0xebb   : > { %v2492_v1 = vsel %vm1175_vm15, %v3519_v63, 0.0 }
 0xebc   : > { %2493 = vadd.xlane.f32.xlu0 %v2492_v1 }
 0xec7   : > { %v2501_v39 = vpop.permute.xlu1 %2500 }
 0xec8   : > { %2513 = vmatpush.bf16.msrb.mxu3 %v2501_v39 }
 0xecc   : > { %2523 = vrot.lane.b32.xlu2 %v4168_v36, %s3613_s16  ;;  %2622 = vmatpush.bf16.msra.mxu3 %v2613_v6 }
 0xecf   : > { %v2632_v9 = vpop.permute.xlu1 %2631 }
 0xed0   : > { %2521 = vrot.lane.b32.xlu0 %v2451_v46, %s3613_s16  ;;  %v2637_v16 = vsel %vm1154_vm14, %v2632_v9, 0  ;;  %s4339_s16 = sld [smem:[#allocation13_spill]] }
 0xed4   : > { %2719 = vrot.lane.b32.xlu2 %v2451_v46, %s3615_s22 }
 0xed8   : > { %2721 = vrot.lane.b32.xlu0 %v4168_v36, %s3615_s22  ;;  %s4340_s22 = sld [smem:[#allocation14_spill]] }
 0xee0   : > { %2629 = vrot.lane.b32.xlu0 %v2451_v46, %s3616_s23  ;;  %s4341_s23 = sld [smem:[#allocation16_spill]] }
 0xf27   : > { %v2491_v58 = vpop.xlane.xlu2 %2490 }
 0xf28   : > { %3520 = vrcp.f32 %v2491_v58 }
 0xf2e   : > { %v3521_v8 = vpop.eup %3520 }
 0xf2f   : > { %v2524_v12 = vpop.permute.xlu2 %2523  ;;  %v2494_v13 = vpop.xlane.xlu0 %2493  ;;  %v2497_v28 = vmul.f32 %v3521_v8, %v3517_v57 }
 0xf30   : > { %v2529_v15 = vsel %vm1154_vm14, %v2524_v12, 0  ;;  %3522 = vrcp.f32 %v2494_v13 }
 0xf31   : > { %2538 = vmatpush.bf16.xpose.msra.mxu2 %v2529_v15 }
 0xf36   : > { %v3523_v37 = vpop.eup %3522 }
 0xf37   : > { %v2498_v20 = vmul.f32 %v3523_v37, %v3519_v63  ;;  %v2720_v32 = vpop.permute.xlu2 %2719 }
 0xf39   : > { %2646 = vmatpush.bf16.xpose.msrb.mxu2 %v2637_v16  ;;  %v2499_v21 = vpack.c.bf16 %v2498_v20, %v2497_v28 }
 0xf3b   : > { %3281 = vmatmul.msk.bf16.vlgmr.msrb.gmra.mxu3 %vm1175_vm15, %v2499_v21 }
 0xf42   : > { %v2522_v23 = vpop.permute.xlu0 %2521 }
 0xf43   : > { %3282 = vmatmul.msk.bf16.vlgmr.msra.gmra.mxu2 %vm1154_vm14, %v2522_v23 }
 0xf4a   : > { %v2722_v24 = vpop.permute.xlu0 %2721 }
 0xf4b   : > { %v2727_v26 = vsel %vm1154_vm14, %v2722_v24, 0 }
 0xf4c   : > { %2736 = vmatpush.bf16.xpose.msrb.mxu3 %v2727_v26 }
 0xf52   : > { %v2630_v18 = vpop.permute.xlu0 %2629 }
 0xf53   : > { %3286 = vmatmul.msk.bf16.vlgmr.msrb.gmra.mxu2 %vm1154_vm14, %v2630_v18 }
 0xfbe   : > { %v2515_v0 = vpop.f32.mrf.mxu3 }
 0xfc6   : > { %v2517_v40 = vpop.f32.mrf.mxu3  ;;  %v2540_v29 = vpop.f32.mrf.mxu2 }
 0xfc7   : > { %v2520_v61 = vpack.c.bf16 %v2517_v40, %v2515_v0  ;;  %v2545_v30 = vsel %vm1175_vm15, %v2540_v29, -inf  ;;  %v2439_v0 = vld [vmem:[%s4336_s2 + $0x4] sm:$0xf] }
 0xfc8   : > { %2546 = vmax.xlane.f32.xlu1 %v2545_v30  ;;  %v2593_v40 = vsel %vm1291_vm1, %v2439_v0, 0  ;;  %v3337_v0 = vld [vmem:[%s4340_s22] sm:$0xff] }
 0xfc9   : > { %3285 = vmatmul.msk.bf16.vlgmr.msra.gmra.mxu3 %vm1154_vm14, %v2520_v61  ;;  %2602 = vmatpush.bf16.msra.mxu1 %v2593_v40 }
 0xfce   : > { %v2542_v2 = vpop.f32.mrf.mxu2 }
 0xfcf   : > { %v2548_v3 = vsel %vm1175_vm15, %v2542_v2, -inf }
 0xfd0   : > { %2549 = vmax.xlane.f32.xlu2 %v2548_v3 }
 0xfd6   : > { %v2648_v42 = vpop.f32.mrf.mxu2 }
 0xfd7   : > { %v2653_v55 = vsel %vm1175_vm15, %v2648_v42, -inf }
 0xfd8   : > { %2654 = vmax.xlane.f32.xlu1 %v2653_v55 }
 0xfd9   : > { %3289 = vmatmul.msk.bf16.vlgmr.msrb.gmra.mxu3 %vm1154_vm14, %v2720_v32 }
 0xfde   : > { %v2650_v34 = vpop.f32.mrf.mxu2 }
 0xfdf   : > { %v2656_v27 = vsel %vm1175_vm15, %v2650_v34, -inf }
0x103b   : > { %v2547_v62 = vpop.xlane.xlu1 %2546 }
0x103c   : > { %v2551_v35 = vsub.f32 %v2540_v29, %v2547_v62 }
0x103e   : > { %v2553_v4 = vmul.f32 1.442695, %v2551_v35 }
0x1043   : > { %v2550_v33 = vpop.xlane.xlu2 %2549 }
0x1044   : > { %v2552_v19 = vsub.f32 %v2542_v2, %v2550_v33 }
0x1046   : > { %v2555_v14 = vmul.f32 1.442695, %v2552_v19 }
0x1048   : > { %3524 = vpow2.f32 %v2555_v14 }
0x1049   : > { %3526 = vpow2.f32 %v2553_v4 }
0x104b   : > { %v2655_v17 = vpop.xlane.xlu1 %2654 }
0x104c   : > { %v4202_v38 = vpop.f32.mrf.mxu3  ;;  %v2659_v45 = vsub.f32 %v2648_v42, %v2655_v17  ;;  %v2440_v17 = vld [vmem:[%s4336_s2 + $0x8] sm:$0xf] }
0x104e   : > { %v3525_v31 = vpop.eup %3524  ;;  %v2661_v48 = vmul.f32 1.442695, %v2659_v45 }
0x104f   : > { %v2560_v41 = vsel %vm1175_vm15, %v3525_v31, 0.0  ;;  %v3527_v49 = vpop.eup %3526 }
0x1050   : > { %2561 = vadd.xlane.f32.xlu1 %v2560_v41  ;;  %3528 = vpow2.f32 %v2661_v48  ;;  %v2557_v51 = vsel %vm1175_vm15, %v3527_v49, 0.0 }
0x1054   : > { %v4205_v44 = vpop.f32.mrf.mxu3 }
0x1056   : > { %v4211_v52 = vpop.eup %3528 }
0x1057   : > { %v2665_v53 = vsel %vm1175_vm15, %v4211_v52, 0.0 }
0x105c   : > { %v2738_v50 = vpop.f32.mrf.mxu3 }
0x105d   : > { %v2743_v43 = vsel %vm1175_vm15, %v2738_v50, -inf }
0x105e   : > { %2744 = vmax.xlane.f32.xlu0 %v2743_v43  ;;  %v2441_v43 = vld [vmem:[%s4336_s2 + $0xc] sm:$0xf] }
0x105f   : > { %v2791_v4 = vsel %vm1291_vm1, %v2441_v43, 0 }
0x1064   : > { %v2740_v46 = vpop.f32.mrf.mxu3 }
0x1065   : > { %v2746_v47 = vsel %vm1175_vm15, %v2740_v46, -inf }
0x1066   : > { %2747 = vmax.xlane.f32.xlu2 %v2746_v47  ;;  %2657 = vmax.xlane.f32.xlu0 %v2656_v27 }
0x106e   : > { %2558 = vadd.xlane.f32.xlu2 %v2557_v51 }
0x1076   : > { %2666 = vadd.xlane.f32.xlu2 %v2665_v53 }
0x107a   : > { %2568 = vrot.lane.b32.xlu0 %v4168_v36, %s3612_s15  ;;  %s4338_s15 = smov 80  }
0x10c3   : > { %v2562_v6 = vpop.xlane.xlu1 %2561 }
0x10d1   : > { %v2745_v54 = vpop.xlane.xlu0 %2744 }
0x10d2   : > { %v2749_v56 = vsub.f32 %v2738_v50, %v2745_v54 }
0x10d4   : > { %v2751_v57 = vmul.f32 1.442695, %v2749_v56 }
0x10d6   : > { %3530 = vpow2.f32 %v2751_v57 }
0x10d9   : > { %v2748_v59 = vpop.xlane.xlu2 %2747  ;;  %v2658_v60 = vpop.xlane.xlu0 %2657 }
0x10da   : > { %v2660_v63 = vsub.f32 %v2650_v34, %v2658_v60  ;;  %v2750_v58 = vsub.f32 %v2740_v46, %v2748_v59  ;;  %v2701_v34 = vsel %vm1291_vm1, %v2440_v17, 0  ;;  %v3405_v59 = vld [vmem:[%s4339_s16] ss:$0 sm:$0xff] }
0x10db   : > { %2710 = vmatpush.bf16.msrb.mxu1 %v2701_v34 }
0x10dc   : > { %v3531_v1 = vpop.eup %3530  ;;  %v2663_v39 = vmul.f32 1.442695, %v2660_v63  ;;  %v2753_v9 = vmul.f32 1.442695, %v2750_v58 }
0x10dd   : > { %v2755_v5 = vsel %vm1175_vm15, %v3531_v1, 0.0 }
0x10de   : > { %2756 = vadd.xlane.f32.xlu2 %v2755_v5  ;;  %3532 = vpow2.f32 %v2663_v39 }
0x10e1   : > { %v2559_v12 = vpop.xlane.xlu2 %2558 }
0x10e2   : > { %3534 = vrcp.f32 %v2559_v12 }
0x10e3   : > { %3536 = vrcp.f32 %v2562_v6 }
0x10e4   : > { %v3533_v13 = vpop.eup %3532  ;;  %3538 = vpow2.f32 %v2753_v9 }
0x10e5   : > { %v2668_v15 = vsel %vm1175_vm15, %v3533_v13, 0.0 }
0x10e6   : > { %2669 = vadd.xlane.f32.xlu1 %v2668_v15 }
0x10e8   : > { %v3535_v16 = vpop.eup %3534 }
0x10e9   : > { %v3537_v8 = vpop.eup %3536  ;;  %v2565_v37 = vmul.f32 %v3535_v16, %v3527_v49  ;;  %v2667_v26 = vpop.xlane.xlu2 %2666 }
0x10ea   : > { %v3539_v28 = vpop.eup %3538  ;;  %v2566_v20 = vmul.f32 %v3537_v8, %v3525_v31 }
0x10eb   : > { %v2758_v24 = vsel %vm1175_vm15, %v3539_v28, 0.0 }
0x10ec   : > { %v2569_v21 = vpop.permute.xlu0 %2568  ;;  %v2567_v23 = vpack.c.bf16 %v2566_v20, %v2565_v37 }
0x10ed   : > { %2581 = vmatpush.bf16.msra.mxu0 %v2569_v21 }
0x10ee   : > { %2759 = vadd.xlane.f32.xlu1 %v2758_v24 }
0x10f0   : > { %3283 = vmatmul.msk.bf16.vlgmr.msra.gmra.mxu0 %vm1175_vm15, %v2567_v23 }
0x10f6   : > { %2766 = vrot.lane.b32.xlu2 %v4168_v36, %s4337_s7 }
0x1107   : > { %2676 = vrot.lane.b32.xlu1 %v4168_v36, %s4338_s15 }
0x1151   : > { %v2757_v18 = vpop.xlane.xlu2 %2756 }
0x1152   : > { %3540 = vrcp.f32 %v2757_v18  ;;  %v3338_v18 = vld [vmem:[%s4340_s22 + $0x8] sm:$0xff] }
0x1158   : > { %v3541_v2 = vpop.eup %3540 }
0x1159   : > { %v2767_v29 = vpop.permute.xlu2 %2766  ;;  %v2670_v61 = vpop.xlane.xlu1 %2669  ;;  %v2763_v42 = vmul.f32 %v3541_v2, %v3531_v1 }
0x115a   : > { %2779 = vmatpush.bf16.msra.mxu2 %v2767_v29 }
0x1161   : > { %v2760_v30 = vpop.xlane.xlu1 %2759 }
0x1162   : > { %3542 = vrcp.f32 %v2760_v30 }
0x1163   : > { %3544 = vrcp.f32 %v2670_v61 }
0x1164   : > { %3546 = vrcp.f32 %v2667_v26 }
0x1168   : > { %v3543_v3 = vpop.eup %3542 }
0x1169   : > { %v2764_v55 = vmul.f32 %v3543_v3, %v3539_v28  ;;  %v3545_v36 = vpop.eup %3544 }
0x116a   : > { %v3547_v31 = vpop.eup %3546  ;;  %v2674_v41 = vmul.f32 %v3545_v36, %v3533_v13 }
0x116b   : > { %v2765_v32 = vpack.c.bf16 %v2764_v55, %v2763_v42  ;;  %v2673_v62 = vmul.f32 %v3547_v31, %v4211_v52 }
0x116d   : > { %v2583_v33 = vpop.f32.mrf.mxu0  ;;  %3290 = vmatmul.msk.bf16.vlgmr.msra.gmra.mxu2 %vm1175_vm15, %v2765_v32  ;;  %v2675_v50 = vpack.c.bf16 %v2674_v41, %v2673_v62 }
0x1175   : > { %v2585_v19 = vpop.f32.mrf.mxu0 }
0x1176   : > { %v2588_v14 = vpack.c.bf16 %v2585_v19, %v2583_v33 }
0x1178   : > { %3284 = vmatmul.msk.bf16.vlgmr.msra.gmra.mxu1 %vm1154_vm14, %v2588_v14 }
0x1179   : > { %v2677_v35 = vpop.permute.xlu1 %2676  ;;  %2937 = vmatpush.bf16.msra.mxu1 %v3338_v18  ;;  %v3406_v18 = vld [vmem:[%s4342_s18] ss:$0 sm:$0xff] }
0x117a   : > { %2689 = vmatpush.bf16.msrb.mxu0 %v2677_v35 }
0x117d   : > { %3287 = vmatmul.msk.bf16.vlgmr.msrb.gmra.mxu0 %vm1175_vm15, %v2675_v50  ;;  %2938 = vmatpush.bf16.msra.mxu1 %v3337_v0 }
0x117e   : > { %2800 = vmatpush.bf16.msra.mxu0 %v2791_v4 }
0x11f0   : > { %v2781_v45 = vpop.f32.mrf.mxu2 }
0x11f5   : > { %v2604_v51 = vpop.f32.mrf.mxu1 }
0x11f6   : > { %v2625_v53 = vadd.f32 %v4202_v38, %v2604_v51 }
0x11f8   : > { %v2783_v46 = vpop.f32.mrf.mxu2 }
0x11f9   : > { %v2786_v47 = vpack.c.bf16 %v2783_v46, %v2781_v45 }
0x11fa   : > { %v2691_v27 = vpop.f32.mrf.mxu0 }
0x11fb   : > { %3291 = vmatmul.msk.bf16.vlgmr.msra.gmra.mxu0 %vm1154_vm14, %v2786_v47 }
0x11fd   : > { %v2606_v52 = vpop.f32.mrf.mxu1 }
0x11fe   : > { %v2627_v1 = vadd.f32 %v4205_v44, %v2606_v52 }
0x1202   : > { %v2693_v48 = vpop.f32.mrf.mxu0 }
0x1203   : > { %v2696_v49 = vpack.c.bf16 %v2693_v48, %v2691_v27 }
0x1205   : > { %3288 = vmatmul.msk.bf16.vlgmr.msrb.gmra.mxu1 %vm1154_vm14, %v2696_v49 }
0x1278   : > { %v2802_v54 = vpop.f32.mrf.mxu0 }
0x1280   : > { %v2804_v9 = vpop.f32.mrf.mxu0 }
0x1282   : > { %v2712_v56 = vpop.f32.mrf.mxu1 }
0x1283   : > { %v2717_v57 = vadd.f32 %v2712_v56, %v2625_v53 }
0x1285   : > { %v2807_v60 = vadd.f32 %v2802_v54, %v2717_v57  ;;  %v2890_v57 = vperm.slane %v4157_v7, 2 }
0x1287   : > { %v2812_v63 = vadd.f32 %v3405_v59, %v2807_v60 }
0x1289   : > { %v4241_v39 = vadd.f32 %v2812_v63, %v4117_v11 }
0x128a   : > { %v2714_v58 = vpop.f32.mrf.mxu1 }
0x128b   : > { %v2718_v5 = vadd.f32 %v2714_v58, %v2627_v1  ;;  %v2816_v6 = vsel %vm1012_vm0, %v4241_v39, 0.0 }
0x128c   : > { %2817 = vadd.xlane.f32.xlu0 %v2816_v6 }
0x128d   : > { %v2808_v12 = vadd.f32 %v2804_v9, %v2718_v5 }
0x128f   : > { %v2813_v38 = vadd.f32 %v3405_v59, %v2808_v12 }
0x1291   : > { %v4246_v13 = vadd.f32 %v2813_v38, %v4123_v22 }
0x1293   : > { %v2819_v15 = vsel %vm1012_vm0, %v4246_v13, 0.0 }
0x1294   : > { %2820 = vadd.xlane.f32.xlu2 %v2819_v15 }
0x12ff   : > { %v2818_v44 = vpop.xlane.xlu0 %2817 }
0x1300   : > { %v2822_v11 = vmul.f32 %v2818_v44, %v3810_v10 }
0x1302   : > { %v4252_v16 = vsub.f32 %v4241_v39, %v2822_v11  ;;  %v2895_v11 = vperm.slane %v4163_v25, 2 }
0x1304   : > { %v2826_v8 = vmul.f32 %v4252_v16, %v4252_v16  ;;  %v2891_v9 = vmul.f32 %v2890_v57, %v4252_v16 }
0x1306   : > { %v2828_v37 = vsel %vm1012_vm0, %v2826_v8, 0.0 }
0x1307   : > { %2829 = vadd.xlane.f32.xlu1 %v2828_v37  ;;  %v2821_v22 = vpop.xlane.xlu2 %2820 }
0x1308   : > { %v2823_v28 = vmul.f32 %v2821_v22, %v3810_v10 }
0x130a   : > { %v4259_v20 = vsub.f32 %v4246_v13, %v2823_v28 }
0x130c   : > { %v2827_v21 = vmul.f32 %v4259_v20, %v4259_v20  ;;  %v2892_v38 = vmul.f32 %v2890_v57, %v4259_v20  ;;  %v3341_v20 = vld [vmem:[%s4341_s23 + $0x10] sm:$0xff] }
0x130e   : > { %v2831_v23 = vsel %vm1012_vm0, %v2827_v21, 0.0  ;;  %v3342_v21 = vld [vmem:[%s4341_s23 + $0x18] sm:$0xff] }
0x130f   : > { %2832 = vadd.xlane.f32.xlu0 %v2831_v23  ;;  %2982 = vmatpush.bf16.msra.mxu3 %v3342_v21  ;;  %v3340_v23 = vld [vmem:[%s4341_s23 + $0x8] sm:$0xff] }
0x1313   : > { %2983 = vmatpush.bf16.msra.mxu3 %v3341_v20 }
0x1317   : > { %2984 = vmatpush.bf16.msra.mxu3 %v3340_v23 }
0x137a   : > { %v2830_v24 = vpop.xlane.xlu1 %2829 }
0x137b   : > { %v2834_v26 = vmul.f32 0.032258064, %v2830_v24  ;;  %v3339_v24 = vld [vmem:[%s4341_s23] sm:$0xff] }
0x137c   : > { %2985 = vmatpush.bf16.msra.mxu3 %v3339_v24 }
0x137d   : > { %3548 = vrsqrt.f32 %v2834_v26  ;;  %vm2843_vm14 = vcmp.eq.f32.partialorder %v2834_v26, inf  ;;  %v2846_v14 = vand.u32 2147483648, %v2834_v26  ;;  %vm2845_vm15 = vcmp.eq.f32.partialorder %v2834_v26, 0.0 }
0x1382   : > { %v2833_v40 = vpop.xlane.xlu0 %2832 }
0x1383   : > { %v3549_v29 = vpop.eup %3548  ;;  %v2835_v61 = vmul.f32 0.032258064, %v2833_v40 }
0x1384   : > { %v2837_v30 = vmul.f32 %v3549_v29, %v2834_v26 }
0x1385   : > { %3550 = vrsqrt.f32 %v2835_v61  ;;  %vm2855_vm1 = vcmp.eq.f32.partialorder %v2835_v61, inf  ;;  %v2858_v17 = vand.u32 2147483648, %v2835_v61  ;;  %vm2857_vm5 = vcmp.eq.f32.partialorder %v2835_v61, 0.0 }
0x1386   : > { %v2838_v2 = vmul.f32 %v3549_v29, %v2837_v30 }
0x1388   : > { %v2839_v3 = vmul.f32 0.5, %v2838_v2  ;;  %v3407_v2 = vld [vmem:[%s3773_s14] ss:$0 sm:$0xff] }
0x138a   : > { %v2840_v42 = vsub.f32 1.5, %v2839_v3 }
0x138b   : > { %v3551_v55 = vpop.eup %3550 }
0x138c   : > { %v2841_v32 = vmul.f32 %v3549_v29, %v2840_v42  ;;  %v2849_v33 = vmul.f32 %v3551_v55, %v2835_v61 }
0x138e   : > { %v2842_v36 = vmul.f32 %v2841_v32, %v2834_v26  ;;  %v2850_v19 = vmul.f32 %v3551_v55, %v2849_v33 }
0x1390   : > { %v2844_v31 = vsel %vm2843_vm14, %v2834_v26, %v2842_v36  ;;  %v2851_v41 = vmul.f32 0.5, %v2850_v19 }
0x1391   : > { %v2847_v62 = vsel %vm2845_vm15, %v2846_v14, %v2844_v31 }
0x1392   : > { %v2860_v35 = vadd.f32 1e-06, %v2847_v62  ;;  %v2852_v50 = vsub.f32 1.5, %v2851_v41 }
0x1394   : > { %3552 = vrcp.f32 %v2860_v35  ;;  %v2853_v43 = vmul.f32 %v3551_v55, %v2852_v50  ;;  %v2873_v53 = vand.u32 2147483648, %v2860_v35  ;;  %vm2867_vm7 = vweird.f32 %v2860_v35 }
0x1395   : > { %v2871_v54 = vand.u32 2147483647, %v2860_v35 }
0x1396   : > { %v2854_v4 = vmul.f32 %v2853_v43, %v2835_v61  ;;  %v2874_v63 = vor.u32 1.1754944e-38, %v2873_v53 }
0x1397   : > { %vm2872_vm9 = vcmp.eq.f32.partialorder %v2871_v54, 8.507059e+37 }
0x1398   : > { %v2856_v34 = vsel %vm2855_vm1, %v2835_v61, %v2854_v4 }
0x1399   : > { %v2859_v45 = vsel %vm2857_vm5, %v2858_v17, %v2856_v34 }
0x139a   : > { %v3553_v46 = vpop.eup %3552  ;;  %v2861_v47 = vadd.f32 1e-06, %v2859_v45 }
0x139b   : > { %v2863_v27 = vmul.f32 %v3553_v46, %v2860_v35  ;;  %vm2868_vm6 = vweird.f32 %v3553_v46 }
0x139c   : > { %3554 = vrcp.f32 %v2861_v47  ;;  %vm2869_vm8 = vmor %vm2867_vm7, %vm2868_vm6  ;;  %v2887_v1 = vand.u32 2147483648, %v2861_v47  ;;  %v2885_v5 = vand.u32 2147483647, %v2861_v47  ;;  %vm2881_vm11 = vweird.f32 %v2861_v47 }
0x139d   : > { %v2864_v48 = vsub.f32 1.0, %v2863_v27 }
0x139e   : > { %v2888_v7 = vor.u32 1.1754944e-38, %v2887_v1  ;;  %vm2886_vm13 = vcmp.eq.f32.partialorder %v2885_v5, 8.507059e+37 }
0x139f   : > { %v2865_v49 = vmul.f32 %v3553_v46, %v2864_v48 }
0x13a1   : > { %v2866_v51 = vadd.f32 %v3553_v46, %v2865_v49 }
0x13a2   : > { %v3555_v52 = vpop.eup %3554 }
0x13a3   : > { %v2877_v56 = vmul.f32 %v3555_v52, %v2861_v47  ;;  %v2870_v59 = vsel %vm2869_vm8, %v3553_v46, %v2866_v51  ;;  %vm2882_vm10 = vweird.f32 %v3555_v52 }
0x13a4   : > { %v2875_v6 = vsel %vm2872_vm9, %v2874_v63, %v2870_v59  ;;  %vm2883_vm12 = vmor %vm2881_vm11, %vm2882_vm10 }
0x13a5   : > { %v2878_v60 = vsub.f32 1.0, %v2877_v56  ;;  %v2893_v44 = vmul.f32 %v2891_v9, %v2875_v6 }
0x13a7   : > { %v2879_v58 = vmul.f32 %v3555_v52, %v2878_v60  ;;  %v2896_v22 = vadd.f32 %v2895_v11, %v2893_v44 }
0x13a9   : > { %v2880_v12 = vadd.f32 %v3555_v52, %v2879_v58 }
0x13ab   : > { %v2884_v15 = vsel %vm2883_vm12, %v3555_v52, %v2880_v12 }
0x13ac   : > { %v2889_v8 = vsel %vm2886_vm13, %v2888_v7, %v2884_v15 }
0x13ad   : > { %v2894_v37 = vmul.f32 %v2892_v38, %v2889_v8 }
0x13af   : > { %v2897_v16 = vadd.f32 %v2895_v11, %v2894_v37 }
0x13b1   : > { %v2912_v28 = vpack.c.bf16 %v2897_v16, %v2896_v22  ;;  %v3408_v22 = vld [vmem:[%s3778_s6] ss:$0 sm:$0xff] }
0x13b3   : > { %3300 = vmatmul.msk.bf16.vlgmr.msra.gmra.mxu1 %vm1012_vm0, %v2912_v28 }
0x1430   : > { %v2940_v26 = vpop.f32.mrf.mxu1 }
0x1431   : > { %v2941_v25 = vadd.f32 %v3406_v18, %v2940_v26  ;;  %v3409_v26 = vld [vmem:[%s3783_s30] ss:$0 sm:$0xff] }
0x1433   : > { %v2945_v29 = vmax.f32 %v2941_v25, 0.0 }
0x1438   : > { %v2942_v0 = vpop.f32.mrf.mxu1 }
0x1439   : > { %v2943_v40 = vadd.f32 %v3406_v18, %v2942_v0 }
0x143b   : > { %v2946_v61 = vmax.f32 %v2943_v40, 0.0 }
0x143d   : > { %v2947_v30 = vpack.c.bf16 %v2946_v61, %v2945_v29 }
0x143f   : > { %3317 = vmatmul.msk.bf16.vlgmr.msra.gmra.mxu3 %vm1675_vm2, %v2947_v30 }
0x14c2   : > { %v2987_v3 = vpop.f32.mrf.mxu3 }
0x14c3   : > { %v2988_v42 = vadd.f32 %v3407_v2, %v2987_v3 }
0x14c5   : > { %v2992_v55 = vadd.f32 %v2988_v42, %v4241_v39 }
0x14c7   : > { %v2996_v32 = vsel %vm1012_vm0, %v2992_v55, 0.0 }
0x14c8   : > { %2997 = vadd.xlane.f32.xlu0 %v2996_v32 }
0x14ca   : > { %v2989_v33 = vpop.f32.mrf.mxu3 }
0x14cb   : > { %v2990_v36 = vadd.f32 %v3407_v2, %v2989_v33 }
0x14cd   : > { %v2993_v19 = vadd.f32 %v2990_v36, %v4246_v13 }
0x14cf   : > { %v2999_v14 = vsel %vm1012_vm0, %v2993_v19, 0.0 }
0x14d0   : > { %3000 = vadd.xlane.f32.xlu0 %v2999_v14 }
0x153b   : > { %v2998_v31 = vpop.xlane.xlu0 %2997 }
0x153c   : > { %v3002_v41 = vmul.f32 %v2998_v31, %v3810_v10 }
0x153e   : > { %v3004_v62 = vsub.f32 %v2992_v55, %v3002_v41 }
0x1540   : > { %v3006_v35 = vmul.f32 %v3004_v62, %v3004_v62  ;;  %v3073_v24 = vmul.f32 %v3408_v22, %v3004_v62 }
0x1542   : > { %v3008_v50 = vsel %vm1012_vm0, %v3006_v35, 0.0 }
0x1543   : > { %3009 = vadd.xlane.f32.xlu2 %v3008_v50  ;;  %v3001_v43 = vpop.xlane.xlu0 %3000 }
0x1544   : > { %v3003_v39 = vmul.f32 %v3001_v43, %v3810_v10 }
0x1546   : > { %v4285_v4 = vsub.f32 %v2993_v19, %v3003_v39 }
0x1548   : > { %v3007_v17 = vmul.f32 %v4285_v4, %v4285_v4  ;;  %v3074_v32 = vmul.f32 %v3408_v22, %v4285_v4 }
0x154a   : > { %v3011_v13 = vsel %vm1012_vm0, %v3007_v17, 0.0 }
0x154b   : > { %3012 = vadd.xlane.f32.xlu1 %v3011_v13 }
0x15b6   : > { %v3010_v34 = vpop.xlane.xlu2 %3009 }
0x15b7   : > { %v3014_v45 = vmul.f32 0.032258064, %v3010_v34 }
0x15b9   : > { %3556 = vrsqrt.f32 %v3014_v45  ;;  %vm3023_vm2 = vcmp.eq.f32.partialorder %v3014_v45, inf  ;;  %v3026_v59 = vand.u32 2147483648, %v3014_v45  ;;  %vm3025_vm3 = vcmp.eq.f32.partialorder %v3014_v45, 0.0 }
0x15be   : > { %v3013_v46 = vpop.xlane.xlu1 %3012 }
0x15bf   : > { %v3557_v47 = vpop.eup %3556  ;;  %v3015_v27 = vmul.f32 0.032258064, %v3013_v46 }
0x15c0   : > { %v3017_v48 = vmul.f32 %v3557_v47, %v3014_v45 }
0x15c1   : > { %3558 = vrsqrt.f32 %v3015_v27  ;;  %vm3035_vm4 = vcmp.eq.f32.partialorder %v3015_v27, inf  ;;  %v3038_v12 = vand.u32 2147483648, %v3015_v27  ;;  %vm3037_vm14 = vcmp.eq.f32.partialorder %v3015_v27, 0.0 }
0x15c2   : > { %v3018_v49 = vmul.f32 %v3557_v47, %v3017_v48 }
0x15c4   : > { %v3019_v51 = vmul.f32 0.5, %v3018_v49 }
0x15c6   : > { %v3020_v52 = vsub.f32 1.5, %v3019_v51 }
0x15c7   : > { %v3559_v10 = vpop.eup %3558 }
0x15c8   : > { %v3021_v53 = vmul.f32 %v3557_v47, %v3020_v52  ;;  %v3029_v54 = vmul.f32 %v3559_v10, %v3015_v27 }
0x15ca   : > { %v3022_v56 = vmul.f32 %v3021_v53, %v3014_v45  ;;  %v3030_v57 = vmul.f32 %v3559_v10, %v3029_v54 }
0x15cc   : > { %v3024_v60 = vsel %vm3023_vm2, %v3014_v45, %v3022_v56  ;;  %v3031_v63 = vmul.f32 0.5, %v3030_v57 }
0x15cd   : > { %v3027_v1 = vsel %vm3025_vm3, %v3026_v59, %v3024_v60 }
0x15ce   : > { %v3040_v58 = vadd.f32 1e-06, %v3027_v1  ;;  %v3032_v5 = vsub.f32 1.5, %v3031_v63 }
0x15d0   : > { %3560 = vrcp.f32 %v3040_v58  ;;  %v3033_v6 = vmul.f32 %v3559_v10, %v3032_v5  ;;  %v3053_v37 = vand.u32 2147483648, %v3040_v58  ;;  %v3051_v28 = vand.u32 2147483647, %v3040_v58 }
0x15d1   : > { %vm3047_vm1 = vweird.f32 %v3040_v58 }
0x15d2   : > { %v3034_v9 = vmul.f32 %v3033_v6, %v3015_v27  ;;  %v3054_v20 = vor.u32 1.1754944e-38, %v3053_v37  ;;  %vm3052_vm6 = vcmp.eq.f32.partialorder %v3051_v28, 8.507059e+37 }
0x15d4   : > { %v3036_v38 = vsel %vm3035_vm4, %v3015_v27, %v3034_v9 }
0x15d5   : > { %v3039_v15 = vsel %vm3037_vm14, %v3038_v12, %v3036_v38 }
0x15d6   : > { %v3561_v7 = vpop.eup %3560  ;;  %v3041_v11 = vadd.f32 1e-06, %v3039_v15 }
0x15d7   : > { %v3043_v44 = vmul.f32 %v3561_v7, %v3040_v58  ;;  %vm3048_vm15 = vweird.f32 %v3561_v7 }
0x15d8   : > { %3562 = vrcp.f32 %v3041_v11  ;;  %vm3049_vm5 = vmor %vm3047_vm1, %vm3048_vm15  ;;  %v3067_v30 = vand.u32 2147483648, %v3041_v11  ;;  %v3065_v3 = vand.u32 2147483647, %v3041_v11  ;;  %vm3061_vm8 = vweird.f32 %v3041_v11 }
0x15d9   : > { %v3044_v8 = vsub.f32 1.0, %v3043_v44 }
0x15da   : > { %v3068_v55 = vor.u32 1.1754944e-38, %v3067_v30  ;;  %vm3066_vm10 = vcmp.eq.f32.partialorder %v3065_v3, 8.507059e+37 }
0x15db   : > { %v3045_v16 = vmul.f32 %v3561_v7, %v3044_v8 }
0x15dd   : > { %v3046_v21 = vadd.f32 %v3561_v7, %v3045_v16 }
0x15de   : > { %v3563_v23 = vpop.eup %3562 }
0x15df   : > { %v3050_v18 = vsel %vm3049_vm5, %v3561_v7, %v3046_v21  ;;  %v3057_v0 = vmul.f32 %v3563_v23, %v3041_v11  ;;  %vm3062_vm7 = vweird.f32 %v3563_v23 }
0x15e0   : > { %v3055_v25 = vsel %vm3052_vm6, %v3054_v20, %v3050_v18  ;;  %vm3063_vm9 = vmor %vm3061_vm8, %vm3062_vm7 }
0x15e1   : > { %v3075_v40 = vmul.f32 %v3073_v24, %v3055_v25  ;;  %v3058_v29 = vsub.f32 1.0, %v3057_v0 }
0x15e3   : > { %v3080_v61 = vadd.f32 %v3409_v26, %v3075_v40  ;;  %v3059_v2 = vmul.f32 %v3563_v23, %v3058_v29 }
0x15e5   : > { %3082 = vst.msk [vmem:[%s1006_s26] sm:$0xff] %vm1012_vm0, %v3080_v61  ;;  %v3060_v42 = vadd.f32 %v3563_v23, %v3059_v2 }
0x15e7   : > { %v3064_v33 = vsel %vm3063_vm9, %v3563_v23, %v3060_v42 }
0x15e8   : > { %v3069_v36 = vsel %vm3066_vm10, %v3068_v55, %v3064_v33 }
0x15e9   : > { %v3076_v19 = vmul.f32 %v3074_v32, %v3069_v36 }
0x15eb   : > { %v3081_v14 = vadd.f32 %v3409_v26, %v3076_v19 }
0x15ed   : > { %3083 = vst.msk [vmem:[%s1006_s26 + $0x8] sm:$0xff] %vm1012_vm0, %v3081_v14 }
0x15ee PF: > { %s75_s28 = sadd.s32 1, %s3574_s28  }
0x15ef   : > { %p72_p4 = scmp.ge.s32.totalorder %s75_s28, 6  }
0x15f1   :  { %74 = sbr.rel (!%p72_p4) target bundleno = 55 (0x37), region = 213 }

</bundles_post_ra>
